<compile_context>
chip_gen: v6e
topology: v6e:2x2x1
jax: 0.10.0
libtpu: 0.0.40
codegen_flags: <defaults>
</compile_context>

<pallas_src>
import functools
import math

import jax
import jax.numpy as jnp
from jax import lax
from jax.experimental import pallas as pl
from jax.experimental.pallas import tpu as pltpu

_LANE = 128


def _pad_lanes(n):
  return ((n + _LANE - 1) // _LANE) * _LANE


def _layout(H, ng):
  """Packed-parameter layout: ordered (name, true_width) per buffer."""
  D = 2 * H
  pf = [('enc_emb_w', H), ('dec_emb_w', D)]                               # rows = F
  ph = [('wih_cat', 8 * H)]                                               # rows = H
  pd = [('whh_cat', 4 * D), ('dec_wih', 4 * D), ('dec_whh', 4 * D)]       # rows = D
  for g in range(ng):
    pd += [('g_wq%d' % g, D), ('g_wr%d' % g, D)]
  pd += [('p_wq', D), ('p_wr', D)]
  pb = [('enc_emb_b', H), ('b_cat', 8 * H), ('dec_emb_b', D), ('dec_b', 4 * D)]  # rows = 1
  for g in range(ng):
    pb += [('g_bq%d' % g, D), ('g_br%d' % g, D), ('g_v%d' % g, D)]
  pb += [('p_bq', D), ('p_br', D), ('p_v', D)]
  return pf, ph, pd, pb


def _offsets(entries):
  off, c = {}, 0
  for name, w in entries:
    off[name] = (c, w)
    c += _pad_lanes(w)       # every segment starts on a 128-lane boundary
  return off


def _view(ref, off, name):
  s, w = off[name]
  return ref[:, s:s + w]


# ------------------------------ fused kernel ------------------------------

def _fused_pointer_kernel(
    # inputs
    x_ref, mask_ref, pf_ref, ph_ref, pd_ref, pb_ref,
    # outputs
    attn_ref, ptr_ref, enc_ref, hf_ref, hb_ref, emb_ref,
    *, sos, num_glimps):
  f32 = jnp.float32
  S, F = x_ref.shape
  H = ph_ref.shape[0]
  D = 2 * H
  out_len = attn_ref.shape[0]
  ng = num_glimps
  pf_l, ph_l, pd_l, pb_l = _layout(H, ng)
  pf_o, pd_o, pb_o = _offsets(pf_l), _offsets(pd_l), _offsets(pb_l)

  x = x_ref[...]                                     # (S, F)
  mask_penalty = (1.0 - mask_ref[...]) * 1e6         # (1, S)

  # ---- encoder embedding: Linear(F -> H) for the whole sequence ----
  embdds = (jnp.dot(x, _view(pf_ref, pf_o, 'enc_emb_w'), preferred_element_type=f32)
            + _view(pb_ref, pb_o, 'enc_emb_b'))                           # (S, H)
  emb_ref[...] = embdds

  # ---- bidirectional encoder LSTM fused into ONE recurrence ----
  # gate columns: [i_f,i_b | f_f,f_b | o_f,o_b | g_f,g_b], each block H lanes.
  xih_all = (jnp.dot(embdds, ph_ref[...], preferred_element_type=f32)
             + _view(pb_ref, pb_o, 'b_cat'))                              # (S, 8H)
  # pair forward row t with backward row S-1-t: row-reversed copy for bwd lanes
  iot_r = lax.broadcasted_iota(jnp.int32, (S, S), 0)
  iot_c = lax.broadcasted_iota(jnp.int32, (S, S), 1)
  rev = (iot_c == (S - 1 - iot_r)).astype(f32)                            # flip permutation
  xih_rev = jnp.dot(rev, xih_all, preferred_element_type=f32)
  col = lax.broadcasted_iota(jnp.int32, (S, 8 * H), 1)
  if (2 * H) & (2 * H - 1) == 0:
    blk = jnp.bitwise_and(col, 2 * H - 1)
  else:
    blk = col % (2 * H)
  xih_paired = jnp.where(blk < H, xih_all, xih_rev)                       # (S, 8H)

  whh_cat = _view(pd_ref, pd_o, 'whh_cat')           # (2H, 8H) block-diagonal
  h_cat = jnp.zeros((1, D), f32)                     # [h_fwd | h_bwd]
  c_cat = jnp.zeros((1, D), f32)
  for t in range(S):                                 # static unroll, both directions per step
    tb = S - 1 - t
    gates = xih_paired[t:t + 1, :] + jnp.dot(h_cat, whh_cat, preferred_element_type=f32)
    sig = jax.nn.sigmoid(gates[:, 0:6 * H])          # i|f|o of both directions, one EUP call
    g_g = jnp.tanh(gates[:, 6 * H:8 * H])
    c_cat = sig[:, 2 * H:4 * H] * c_cat + sig[:, 0:2 * H] * g_g
    h_cat = sig[:, 4 * H:6 * H] * jnp.tanh(c_cat)
    enc_ref[t:t + 1, 0:H] = h_cat[:, 0:H]            # forward half of enc_out row t
    enc_ref[tb:tb + 1, H:D] = h_cat[:, H:D]          # backward half of enc_out row tb

  hf_ref[...] = h_cat[:, 0:H]
  hb_ref[...] = h_cat[:, H:D]
  enc_out = enc_ref[...]                             # (S, 2H)

  # decoder initial state == torch.reshape(h_n,(1,2H)) / reshape(c_n,(1,2H))
  dec_h = h_cat
  dec_c = c_cat

  # ---- loop-invariant attention projections (Conv1d(2H,2H,1) per position) ----
  glimpse_e = [jnp.dot(enc_out, _view(pd_ref, pd_o, 'g_wr%d' % g), preferred_element_type=f32)
               + _view(pb_ref, pb_o, 'g_br%d' % g) for g in range(ng)]    # (S, D)
  pointer_e = (jnp.dot(enc_out, _view(pd_ref, pd_o, 'p_wr'), preferred_element_type=f32)
               + _view(pb_ref, pb_o, 'p_br'))                             # (S, D)
  # algebraic hoist of query projections: (p @ e) @ Wq == p @ (e @ Wq)
  hoist_g = [jnp.dot(glimpse_e[g - 1], _view(pd_ref, pd_o, 'g_wq%d' % g),
                     preferred_element_type=f32) for g in range(1, ng)]
  if ng > 0:
    hoist_p = jnp.dot(glimpse_e[ng - 1], _view(pd_ref, pd_o, 'p_wq'),
                      preferred_element_type=f32)                         # (S, D)

  # ---- decoder gate table: folds embedding + ih matmuls + input gather ----
  dec_emb_w = _view(pf_ref, pf_o, 'dec_emb_w')
  dec_emb_b = _view(pb_ref, pb_o, 'dec_emb_b')
  dec_b = _view(pb_ref, pb_o, 'dec_b')
  dec_wih = _view(pd_ref, pd_o, 'dec_wih')
  emb_all = jnp.dot(x, dec_emb_w, preferred_element_type=f32) + dec_emb_b        # (S, D)
  xg_all = jnp.dot(emb_all, dec_wih, preferred_element_type=f32) + dec_b         # (S, 4D)
  sos_row = jnp.full((1, F), sos, f32)
  emb_sos = jnp.dot(sos_row, dec_emb_w, preferred_element_type=f32) + dec_emb_b
  xg_in = jnp.dot(emb_sos, dec_wih, preferred_element_type=f32) + dec_b          # (1, 4D)

  v_g = [_view(pb_ref, pb_o, 'g_v%d' % g) for g in range(ng)]
  bq_g = [_view(pb_ref, pb_o, 'g_bq%d' % g) for g in range(ng)]
  p_v = _view(pb_ref, pb_o, 'p_v')
  p_bq = _view(pb_ref, pb_o, 'p_bq')
  lane_idx = lax.broadcasted_iota(jnp.int32, (1, S), 1).astype(f32)

  def attn_logits(qp, e_proj, v):
    t = jnp.tanh(e_proj + qp)                                              # (S, D)
    u = lax.dot_general(v, t, (((1,), (1,)), ((), ())),
                        preferred_element_type=f32)                        # (1, S)
    return u - mask_penalty

  for i in range(out_len):                           # static unroll over output_length
    # decoder LSTMCell, fused gates [i | f | o | g] (D lanes each)
    dec_whh = _view(pd_ref, pd_o, 'dec_whh')         # re-read per step (bounds vreg liveness)
    gates = xg_in + jnp.dot(dec_h, dec_whh, preferred_element_type=f32)    # (1, 4D)
    sig = jax.nn.sigmoid(gates[:, 0:3 * D])
    dec_c = sig[:, D:2 * D] * dec_c + sig[:, 0:D] * jnp.tanh(gates[:, 3 * D:4 * D])
    dec_h = sig[:, 2 * D:3 * D] * jnp.tanh(dec_c)

    # glimpse attention(s)
    if ng > 0:
      qp = (jnp.dot(dec_h, _view(pd_ref, pd_o, 'g_wq0'), preferred_element_type=f32)
            + bq_g[0])
      u = attn_logits(qp, glimpse_e[0], v_g[0])
      m = jnp.max(u, axis=1, keepdims=True)
      ex = jnp.exp(u - m)
      p = ex * pl.reciprocal(jnp.sum(ex, axis=1, keepdims=True), approx=True)
      for g in range(1, ng):
        qp = jnp.dot(p, hoist_g[g - 1], preferred_element_type=f32) + bq_g[g]
        u = attn_logits(qp, glimpse_e[g], v_g[g])
        m = jnp.max(u, axis=1, keepdims=True)
        ex = jnp.exp(u - m)
        p = ex * pl.reciprocal(jnp.sum(ex, axis=1, keepdims=True), approx=True)
      qp_ptr = jnp.dot(p, hoist_p, preferred_element_type=f32) + p_bq
    else:
      qp_ptr = jnp.dot(dec_h, _view(pd_ref, pd_o, 'p_wq'),
                       preferred_element_type=f32) + p_bq

    # pointer attention: softmax (stored), argmax of logits, next-input gates
    u = attn_logits(qp_ptr, pointer_e, p_v)
    m = jnp.max(u, axis=1, keepdims=True)
    ex = jnp.exp(u - m)
    attn_ref[i:i + 1, :] = ex / jnp.sum(ex, axis=1, keepdims=True)         # exact; off chain
    # argmax(softmax(u)) == argmax(u); first maximal index like torch.max(dim=1)
    idx = jnp.min(jnp.where(u >= m, lane_idx, float(S)), axis=1, keepdims=True)
    ptr_ref[i:i + 1, :] = idx
    onehot = (lane_idx == idx).astype(f32)                                 # (1, S)
    # ih-gate preactivations of input_seq[:, ptr, :] (replaces gather+2 matmuls)
    xg_in = jnp.dot(onehot, xg_all, preferred_element_type=f32)


# ----------------------------- parameter init -----------------------------

def init_params(key, in_features, hidden, num_glimps):
  """Logical (torch-style) parameters; fused LSTM gate order is [i, f, g, o]."""
  H, D, F = hidden, 2 * hidden, in_features
  keys = iter(jax.random.split(key, 64))

  def u(shape, scale):
    return jax.random.uniform(next(keys), shape, jnp.float32, -scale, scale)

  p = {}
  p['enc_emb_w'] = u((F, H), 1.0 / math.sqrt(F))
  p['enc_emb_b'] = u((1, H), 1.0 / math.sqrt(F))
  for d in ('f', 'b'):
    p['enc_wih_' + d] = u((H, 4 * H), 1.0 / math.sqrt(H))
    p['enc_whh_' + d] = u((H, 4 * H), 1.0 / math.sqrt(H))
    p['enc_b_' + d] = u((1, 4 * H), 1.0 / math.sqrt(H))
  p['dec_emb_w'] = u((F, D), 1.0 / math.sqrt(F))
  p['dec_emb_b'] = u((1, D), 1.0 / math.sqrt(F))
  p['dec_wih'] = u((D, 4 * D), 1.0 / math.sqrt(D))
  p['dec_whh'] = u((D, 4 * D), 1.0 / math.sqrt(D))
  p['dec_b'] = u((1, 4 * D), 1.0 / math.sqrt(D))
  p['g_wq'] = u((num_glimps, D, D), 1.0 / math.sqrt(D))
  p['g_bq'] = u((num_glimps, 1, D), 1.0 / math.sqrt(D))
  p['g_wr'] = u((num_glimps, D, D), 1.0 / math.sqrt(D))
  p['g_br'] = u((num_glimps, 1, D), 1.0 / math.sqrt(D))
  p['g_v'] = u((num_glimps, 1, D), 1.0 / math.sqrt(H))
  p['p_wq'] = u((D, D), 1.0 / math.sqrt(D))
  p['p_bq'] = u((1, D), 1.0 / math.sqrt(D))
  p['p_wr'] = u((D, D), 1.0 / math.sqrt(D))
  p['p_br'] = u((1, D), 1.0 / math.sqrt(D))
  p['p_v'] = u((1, D), 1.0 / math.sqrt(H))
  return p


def _ifgo_to_ifog(w, hd):
  # torch fused-gate column order [i, f, g, o] -> kernel order [i, f, o, g]
  i, f, g, o = (w[:, k * hd:(k + 1) * hd] for k in range(4))
  return jnp.concatenate([i, f, o, g], axis=1)


def pack_params(p, num_glimps):
  """Pack the logical params into 4 lane-padded buffers (done once, host/XLA side)."""
  F, H = p['enc_emb_w'].shape
  D = 2 * H
  ng = num_glimps
  f32 = jnp.float32

  # fused bidirectional encoder weights, columns [i_f,i_b|f_f,f_b|o_f,o_b|g_f,g_b]
  wf = _ifgo_to_ifog(p['enc_wih_f'], H)
  wb = _ifgo_to_ifog(p['enc_wih_b'], H)
  wih_cat = jnp.concatenate(
      [jnp.concatenate([wf[:, k * H:(k + 1) * H], wb[:, k * H:(k + 1) * H]], axis=1)
       for k in range(4)], axis=1)                                       # (H, 8H)
  uf = _ifgo_to_ifog(p['enc_whh_f'], H)
  ub = _ifgo_to_ifog(p['enc_whh_b'], H)
  zH = jnp.zeros((H, H), f32)
  whh_cat = jnp.concatenate(
      [jnp.concatenate(
          [jnp.concatenate([uf[:, k * H:(k + 1) * H], zH], axis=0),
           jnp.concatenate([zH, ub[:, k * H:(k + 1) * H]], axis=0)], axis=1)
       for k in range(4)], axis=1)                                       # (2H, 8H) block-diag
  bf = _ifgo_to_ifog(p['enc_b_f'], H)
  bb = _ifgo_to_ifog(p['enc_b_b'], H)
  b_cat = jnp.concatenate(
      [jnp.concatenate([bf[:, k * H:(k + 1) * H], bb[:, k * H:(k + 1) * H]], axis=1)
       for k in range(4)], axis=1)                                       # (1, 8H)

  mats = {
      'enc_emb_w': p['enc_emb_w'], 'dec_emb_w': p['dec_emb_w'],
      'wih_cat': wih_cat, 'whh_cat': whh_cat,
      'dec_wih': _ifgo_to_ifog(p['dec_wih'], D),
      'dec_whh': _ifgo_to_ifog(p['dec_whh'], D),
      'p_wq': p['p_wq'], 'p_wr': p['p_wr'],
      'enc_emb_b': p['enc_emb_b'], 'b_cat': b_cat,
      'dec_emb_b': p['dec_emb_b'], 'dec_b': _ifgo_to_ifog(p['dec_b'], D),
      'p_bq': p['p_bq'], 'p_br': p['p_br'], 'p_v': p['p_v'],
  }
  for g in range(ng):
    mats['g_wq%d' % g] = p['g_wq'][g]
    mats['g_wr%d' % g] = p['g_wr'][g]
    mats['g_bq%d' % g] = p['g_bq'][g]
    mats['g_br%d' % g] = p['g_br'][g]
    mats['g_v%d' % g] = p['g_v'][g]

  pf_l, ph_l, pd_l, pb_l = _layout(H, ng)

  def pack(entries, rows):
    parts = []
    for name, w in entries:
      m = mats[name]
      pw = _pad_lanes(w)
      if pw != w:
        m = jnp.concatenate([m, jnp.zeros((rows, pw - w), f32)], axis=1)
      parts.append(m)
    return jnp.concatenate(parts, axis=1)

  return pack(pf_l, F), pack(ph_l, H), pack(pd_l, D), pack(pb_l, 1)


# ------------------------------- forward ---------------------------------

def masked_pointer_forward(params, input_seq, masks, output_length,
                           sos_symbol=-1.0, num_glimps=1):
  B, S, F = input_seq.shape
  assert B == 1, "module reshapes the encoder hidden to (1, 2H); batch must be 1"
  H = params['enc_emb_w'].shape[1]
  D = 2 * H

  x = input_seq[0].astype(jnp.float32)                       # (S, F)
  mask_row = jnp.asarray(masks, jnp.float32).reshape(1, S)   # (1, S)
  pf, ph, pd, pb = pack_params(params, num_glimps)

  kernel = functools.partial(_fused_pointer_kernel, sos=float(sos_symbol),
                             num_glimps=num_glimps)
  out_shapes = (
      jax.ShapeDtypeStruct((output_length, S), jnp.float32),  # attentions
      jax.ShapeDtypeStruct((output_length, 1), jnp.float32),  # pointers (f32 lane indices)
      jax.ShapeDtypeStruct((S, D), jnp.float32),              # encoder_output
      jax.ShapeDtypeStruct((1, H), jnp.float32),              # h_n forward
      jax.ShapeDtypeStruct((1, H), jnp.float32),              # h_n backward
      jax.ShapeDtypeStruct((S, H), jnp.float32),              # embdds
  )
  args = (x, mask_row, pf, ph, pd, pb)

  attn, ptrs, enc_out, hf, hb, embdds = pl.pallas_call(
      kernel,
      out_shape=out_shapes,
      in_specs=[pl.BlockSpec(memory_space=pltpu.MemorySpace.VMEM) for _ in args],
      out_specs=tuple(pl.BlockSpec(memory_space=pltpu.MemorySpace.VMEM)
                      for _ in out_shapes),
  )(*args)

  attentions = attn[None]                                    # (1, out_len, S)
  pointers = ptrs[:, 0].astype(jnp.int32)[None]              # (1, out_len) integer indices
  # `_` in the reference module is the max softmax value of the LAST decoder step
  last_max = jnp.max(attn[output_length - 1:output_length, :], axis=1)   # (1,)
  encoder_output = enc_out[None]                             # (1, S, 2H)
  h_n = jnp.stack([hf, hb], axis=0)                          # (2, 1, H)
  return attentions, pointers, last_max, encoder_output, h_n, embdds[None]


# --------------------------------- main -----------------------------------

if __name__ == "__main__":
  IN_FEATURES = 2
  HIDDEN = 32
  SEQ = 8
  OUT_LEN = 4
  NUM_GLIMPS = 1

  key = jax.random.PRNGKey(0)
  kp, kx = jax.random.split(key)
  params = init_params(kp, IN_FEATURES, HIDDEN, NUM_GLIMPS)
  input_seq = jax.random.normal(kx, (1, SEQ, IN_FEATURES), jnp.float32)
  masks = jnp.array([1, 1, 1, 0, 1, 1, 0, 1], jnp.float32)

  forward = jax.jit(functools.partial(masked_pointer_forward,
                                      output_length=OUT_LEN,
                                      sos_symbol=-1.0,
                                      num_glimps=NUM_GLIMPS))
  outs = forward(params, input_seq, masks)
  jax.block_until_ready(outs)
  print("KERNEL_OK")
</pallas_src>

<mosaic_0001>
module attributes {stable_mosaic.version = 11 : i64} {
  func.func @_fused_pointer_kernel(%arg0: memref<8x2xf32, #tpu.memory_space<vmem>>, %arg1: memref<1x8xf32, #tpu.memory_space<vmem>>, %arg2: memref<2x256xf32, #tpu.memory_space<vmem>>, %arg3: memref<32x256xf32, #tpu.memory_space<vmem>>, %arg4: memref<64x1280xf32, #tpu.memory_space<vmem>>, %arg5: memref<1x1536xf32, #tpu.memory_space<vmem>>, %arg6: memref<4x8xf32, #tpu.memory_space<vmem>>, %arg7: memref<4x1xf32, #tpu.memory_space<vmem>>, %arg8: memref<8x64xf32, #tpu.memory_space<vmem>>, %arg9: memref<1x32xf32, #tpu.memory_space<vmem>>, %arg10: memref<1x32xf32, #tpu.memory_space<vmem>>, %arg11: memref<8x32xf32, #tpu.memory_space<vmem>>) attributes {dimension_semantics = [], scalar_prefetch = 0 : i64, scratch_operands = 0 : i64, tpu.core_type = #tpu.core_type<tc>} {
    %c0 = arith.constant 0 : index
    %c0_0 = arith.constant 0 : index
    %0 = vector.load %arg0[%c0, %c0_0] : memref<8x2xf32, #tpu.memory_space<vmem>>, vector<8x2xf32>
    %c0_1 = arith.constant 0 : index
    %c0_2 = arith.constant 0 : index
    %1 = vector.load %arg1[%c0_1, %c0_2] : memref<1x8xf32, #tpu.memory_space<vmem>>, vector<1x8xf32>
    %cst = arith.constant 1.000000e+00 : f32
    %2 = vector.broadcast %cst : f32 to vector<1x8xf32>
    %3 = arith.subf %2, %1 : vector<1x8xf32>
    %cst_3 = arith.constant 1.000000e+06 : f32
    %4 = vector.broadcast %cst_3 : f32 to vector<1x8xf32>
    %5 = arith.mulf %3, %4 : vector<1x8xf32>
    %c0_4 = arith.constant 0 : index
    %c0_5 = arith.constant 0 : index
    %6 = vector.load %arg2[%c0_4, %c0_5] : memref<2x256xf32, #tpu.memory_space<vmem>>, vector<2x32xf32>
    %cst_6 = arith.constant dense<0.000000e+00> : vector<8x32xf32>
    %7 = tpu.matmul %0, %6, %cst_6 {dimension_numbers = #tpu.dot_dimension_numbers<[1], [0], [0], [1], [0, 0, 1, 1], [], []>} : vector<8x2xf32>, vector<2x32xf32>, vector<8x32xf32> -> vector<8x32xf32>
    %c0_7 = arith.constant 0 : index
    %c0_8 = arith.constant 0 : index
    %8 = vector.load %arg5[%c0_7, %c0_8] : memref<1x1536xf32, #tpu.memory_space<vmem>>, vector<1x32xf32>
    %9 = vector.broadcast %8 : vector<1x32xf32> to vector<8x32xf32>
    %10 = arith.addf %7, %9 : vector<8x32xf32>
    %c0_9 = arith.constant 0 : index
    %c0_10 = arith.constant 0 : index
    %11 = vector.load %arg11[%c0_9, %c0_10] : memref<8x32xf32, #tpu.memory_space<vmem>>, vector<8x32xf32>
    tpu.vector_store %arg11[%c0_9, %c0_10], %10 {strides = array<i32>} : memref<8x32xf32, #tpu.memory_space<vmem>>, vector<8x32xf32>,
    %c0_11 = arith.constant 0 : index
    %c0_12 = arith.constant 0 : index
    %12 = vector.load %arg3[%c0_11, %c0_12] : memref<32x256xf32, #tpu.memory_space<vmem>>, vector<32x256xf32>
    %cst_13 = arith.constant dense<0.000000e+00> : vector<8x256xf32>
    %13 = tpu.matmul %10, %12, %cst_13 {dimension_numbers = #tpu.dot_dimension_numbers<[1], [0], [0], [1], [0, 0, 1, 1], [], []>} : vector<8x32xf32>, vector<32x256xf32>, vector<8x256xf32> -> vector<8x256xf32>
    %c0_14 = arith.constant 0 : index
    %c128 = arith.constant 128 : index
    %14 = vector.load %arg5[%c0_14, %c128] : memref<1x1536xf32, #tpu.memory_space<vmem>>, vector<1x256xf32>
    %15 = vector.broadcast %14 : vector<1x256xf32> to vector<8x256xf32>
    %16 = arith.addf %13, %15 : vector<8x256xf32>
    %17 = tpu.iota {dimensions = array<i32: 0>} : vector<8x8xi32>
    %18 = tpu.iota {dimensions = array<i32: 1>} : vector<8x8xi32>
    %c7_i32 = arith.constant 7 : i32
    %19 = vector.broadcast %c7_i32 : i32 to vector<8x8xi32>
    %20 = arith.subi %19, %17 : vector<8x8xi32>
    %21 = arith.cmpi eq, %18, %20 : vector<8x8xi32>
    %22 = arith.extui %21 : vector<8x8xi1> to vector<8x8xi32>
    %23 = arith.sitofp %22 : vector<8x8xi32> to vector<8x8xf32>
    %cst_15 = arith.constant dense<0.000000e+00> : vector<8x256xf32>
    %24 = tpu.matmul %23, %16, %cst_15 {dimension_numbers = #tpu.dot_dimension_numbers<[1], [0], [0], [1], [0, 0, 1, 1], [], []>} : vector<8x8xf32>, vector<8x256xf32>, vector<8x256xf32> -> vector<8x256xf32>
    %25 = tpu.iota {dimensions = array<i32: 1>} : vector<8x256xi32>
    %c63_i32 = arith.constant 63 : i32
    %26 = vector.broadcast %c63_i32 : i32 to vector<8x256xi32>
    %27 = arith.andi %25, %26 : vector<8x256xi32>
    %c32_i32 = arith.constant 32 : i32
    %28 = vector.broadcast %c32_i32 : i32 to vector<8x256xi32>
    %29 = arith.cmpi slt, %27, %28 : vector<8x256xi32>
    %30 = arith.select %29, %16, %24 : vector<8x256xi1>, vector<8x256xf32>
    %c0_16 = arith.constant 0 : index
    %c0_17 = arith.constant 0 : index
    %31 = vector.load %arg4[%c0_16, %c0_17] : memref<64x1280xf32, #tpu.memory_space<vmem>>, vector<64x256xf32>
    %cst_18 = arith.constant 0.000000e+00 : f32
    %32 = vector.broadcast %cst_18 : f32 to vector<1x64xf32>
    %cst_19 = arith.constant 0.000000e+00 : f32
    %33 = vector.broadcast %cst_19 : f32 to vector<1x64xf32>
    %34 = vector.extract_strided_slice %30 {offsets = [0, 0], sizes = [1, 256], strides = [1, 1]} : vector<8x256xf32> to vector<1x256xf32>
    %cst_20 = arith.constant dense<0.000000e+00> : vector<1x256xf32>
    %35 = tpu.matmul %32, %31, %cst_20 {dimension_numbers = #tpu.dot_dimension_numbers<[1], [0], [0], [1], [0, 0, 1, 1], [], []>} : vector<1x64xf32>, vector<64x256xf32>, vector<1x256xf32> -> vector<1x256xf32>
    %36 = arith.addf %34, %35 : vector<1x256xf32>
    %37 = vector.extract_strided_slice %36 {offsets = [0, 0], sizes = [1, 192], strides = [1, 1]} : vector<1x256xf32> to vector<1x192xf32>
    %38 = arith.negf %37 : vector<1x192xf32>
    %39 = math.exp %38 : vector<1x192xf32>
    %cst_21 = arith.constant 1.000000e+00 : f32
    %40 = vector.broadcast %cst_21 : f32 to vector<1x192xf32>
    %41 = arith.addf %40, %39 : vector<1x192xf32>
    %42 = arith.divf %40, %41 : vector<1x192xf32>
    %43 = vector.extract_strided_slice %36 {offsets = [0, 192], sizes = [1, 64], strides = [1, 1]} : vector<1x256xf32> to vector<1x64xf32>
    %44 = math.tanh %43 : vector<1x64xf32>
    %45 = vector.extract_strided_slice %42 {offsets = [0, 64], sizes = [1, 64], strides = [1, 1]} : vector<1x192xf32> to vector<1x64xf32>
    %46 = arith.mulf %45, %33 : vector<1x64xf32>
    %47 = vector.extract_strided_slice %42 {offsets = [0, 0], sizes = [1, 64], strides = [1, 1]} : vector<1x192xf32> to vector<1x64xf32>
    %48 = arith.mulf %47, %44 : vector<1x64xf32>
    %49 = arith.addf %46, %48 : vector<1x64xf32>
    %50 = vector.extract_strided_slice %42 {offsets = [0, 128], sizes = [1, 64], strides = [1, 1]} : vector<1x192xf32> to vector<1x64xf32>
    %51 = math.tanh %49 : vector<1x64xf32>
    %52 = arith.mulf %50, %51 : vector<1x64xf32>
    %53 = vector.extract_strided_slice %52 {offsets = [0, 0], sizes = [1, 32], strides = [1, 1]} : vector<1x64xf32> to vector<1x32xf32>
    %c0_22 = arith.constant 0 : index
    %c0_23 = arith.constant 0 : index
    %54 = vector.load %arg8[%c0_22, %c0_23] : memref<8x64xf32, #tpu.memory_space<vmem>>, vector<1x32xf32>
    tpu.vector_store %arg8[%c0_22, %c0_23], %53 {strides = array<i32>} : memref<8x64xf32, #tpu.memory_space<vmem>>, vector<1x32xf32>,
    %55 = vector.extract_strided_slice %52 {offsets = [0, 32], sizes = [1, 32], strides = [1, 1]} : vector<1x64xf32> to vector<1x32xf32>
    %c7 = arith.constant 7 : index
    %c32 = arith.constant 32 : index
    %56 = vector.load %arg8[%c7, %c32] : memref<8x64xf32, #tpu.memory_space<vmem>>, vector<1x32xf32>
    tpu.vector_store %arg8[%c7, %c32], %55 {strides = array<i32>} : memref<8x64xf32, #tpu.memory_space<vmem>>, vector<1x32xf32>,
    %57 = vector.extract_strided_slice %30 {offsets = [1, 0], sizes = [1, 256], strides = [1, 1]} : vector<8x256xf32> to vector<1x256xf32>
    %cst_24 = arith.constant dense<0.000000e+00> : vector<1x256xf32>
    %58 = tpu.matmul %52, %31, %cst_24 {dimension_numbers = #tpu.dot_dimension_numbers<[1], [0], [0], [1], [0, 0, 1, 1], [], []>} : vector<1x64xf32>, vector<64x256xf32>, vector<1x256xf32> -> vector<1x256xf32>
    %59 = arith.addf %57, %58 : vector<1x256xf32>
    %60 = vector.extract_strided_slice %59 {offsets = [0, 0], sizes = [1, 192], strides = [1, 1]} : vector<1x256xf32> to vector<1x192xf32>
    %61 = arith.negf %60 : vector<1x192xf32>
    %62 = math.exp %61 : vector<1x192xf32>
    %cst_25 = arith.constant 1.000000e+00 : f32
    %63 = vector.broadcast %cst_25 : f32 to vector<1x192xf32>
    %64 = arith.addf %63, %62 : vector<1x192xf32>
    %65 = arith.divf %63, %64 : vector<1x192xf32>
    %66 = vector.extract_strided_slice %59 {offsets = [0, 192], sizes = [1, 64], strides = [1, 1]} : vector<1x256xf32> to vector<1x64xf32>
    %67 = math.tanh %66 : vector<1x64xf32>
    %68 = vector.extract_strided_slice %65 {offsets = [0, 64], sizes = [1, 64], strides = [1, 1]} : vector<1x192xf32> to vector<1x64xf32>
    %69 = arith.mulf %68, %49 : vector<1x64xf32>
    %70 = vector.extract_strided_slice %65 {offsets = [0, 0], sizes = [1, 64], strides = [1, 1]} : vector<1x192xf32> to vector<1x64xf32>
    %71 = arith.mulf %70, %67 : vector<1x64xf32>
    %72 = arith.addf %69, %71 : vector<1x64xf32>
    %73 = vector.extract_strided_slice %65 {offsets = [0, 128], sizes = [1, 64], strides = [1, 1]} : vector<1x192xf32> to vector<1x64xf32>
    %74 = math.tanh %72 : vector<1x64xf32>
    %75 = arith.mulf %73, %74 : vector<1x64xf32>
    %76 = vector.extract_strided_slice %75 {offsets = [0, 0], sizes = [1, 32], strides = [1, 1]} : vector<1x64xf32> to vector<1x32xf32>
    %c1 = arith.constant 1 : index
    %c0_26 = arith.constant 0 : index
    %77 = vector.load %arg8[%c1, %c0_26] : memref<8x64xf32, #tpu.memory_space<vmem>>, vector<1x32xf32>
    tpu.vector_store %arg8[%c1, %c0_26], %76 {strides = array<i32>} : memref<8x64xf32, #tpu.memory_space<vmem>>, vector<1x32xf32>,
    %78 = vector.extract_strided_slice %75 {offsets = [0, 32], sizes = [1, 32], strides = [1, 1]} : vector<1x64xf32> to vector<1x32xf32>
    %c6 = arith.constant 6 : index
    %c32_27 = arith.constant 32 : index
    %79 = vector.load %arg8[%c6, %c32_27] : memref<8x64xf32, #tpu.memory_space<vmem>>, vector<1x32xf32>
    tpu.vector_store %arg8[%c6, %c32_27], %78 {strides = array<i32>} : memref<8x64xf32, #tpu.memory_space<vmem>>, vector<1x32xf32>,
    %80 = vector.extract_strided_slice %30 {offsets = [2, 0], sizes = [1, 256], strides = [1, 1]} : vector<8x256xf32> to vector<1x256xf32>
    %cst_28 = arith.constant dense<0.000000e+00> : vector<1x256xf32>
    %81 = tpu.matmul %75, %31, %cst_28 {dimension_numbers = #tpu.dot_dimension_numbers<[1], [0], [0], [1], [0, 0, 1, 1], [], []>} : vector<1x64xf32>, vector<64x256xf32>, vector<1x256xf32> -> vector<1x256xf32>
    %82 = arith.addf %80, %81 : vector<1x256xf32>
    %83 = vector.extract_strided_slice %82 {offsets = [0, 0], sizes = [1, 192], strides = [1, 1]} : vector<1x256xf32> to vector<1x192xf32>
    %84 = arith.negf %83 : vector<1x192xf32>
    %85 = math.exp %84 : vector<1x192xf32>
    %cst_29 = arith.constant 1.000000e+00 : f32
    %86 = vector.broadcast %cst_29 : f32 to vector<1x192xf32>
    %87 = arith.addf %86, %85 : vector<1x192xf32>
    %88 = arith.divf %86, %87 : vector<1x192xf32>
    %89 = vector.extract_strided_slice %82 {offsets = [0, 192], sizes = [1, 64], strides = [1, 1]} : vector<1x256xf32> to vector<1x64xf32>
    %90 = math.tanh %89 : vector<1x64xf32>
    %91 = vector.extract_strided_slice %88 {offsets = [0, 64], sizes = [1, 64], strides = [1, 1]} : vector<1x192xf32> to vector<1x64xf32>
    %92 = arith.mulf %91, %72 : vector<1x64xf32>
    %93 = vector.extract_strided_slice %88 {offsets = [0, 0], sizes = [1, 64], strides = [1, 1]} : vector<1x192xf32> to vector<1x64xf32>
    %94 = arith.mulf %93, %90 : vector<1x64xf32>
    %95 = arith.addf %92, %94 : vector<1x64xf32>
    %96 = vector.extract_strided_slice %88 {offsets = [0, 128], sizes = [1, 64], strides = [1, 1]} : vector<1x192xf32> to vector<1x64xf32>
    %97 = math.tanh %95 : vector<1x64xf32>
    %98 = arith.mulf %96, %97 : vector<1x64xf32>
    %99 = vector.extract_strided_slice %98 {offsets = [0, 0], sizes = [1, 32], strides = [1, 1]} : vector<1x64xf32> to vector<1x32xf32>
    %c2 = arith.constant 2 : index
    %c0_30 = arith.constant 0 : index
    %100 = vector.load %arg8[%c2, %c0_30] : memref<8x64xf32, #tpu.memory_space<vmem>>, vector<1x32xf32>
    tpu.vector_store %arg8[%c2, %c0_30], %99 {strides = array<i32>} : memref<8x64xf32, #tpu.memory_space<vmem>>, vector<1x32xf32>,
    %101 = vector.extract_strided_slice %98 {offsets = [0, 32], sizes = [1, 32], strides = [1, 1]} : vector<1x64xf32> to vector<1x32xf32>
    %c5 = arith.constant 5 : index
    %c32_31 = arith.constant 32 : index
    %102 = vector.load %arg8[%c5, %c32_31] : memref<8x64xf32, #tpu.memory_space<vmem>>, vector<1x32xf32>
    tpu.vector_store %arg8[%c5, %c32_31], %101 {strides = array<i32>} : memref<8x64xf32, #tpu.memory_space<vmem>>, vector<1x32xf32>,
    %103 = vector.extract_strided_slice %30 {offsets = [3, 0], sizes = [1, 256], strides = [1, 1]} : vector<8x256xf32> to vector<1x256xf32>
    %cst_32 = arith.constant dense<0.000000e+00> : vector<1x256xf32>
    %104 = tpu.matmul %98, %31, %cst_32 {dimension_numbers = #tpu.dot_dimension_numbers<[1], [0], [0], [1], [0, 0, 1, 1], [], []>} : vector<1x64xf32>, vector<64x256xf32>, vector<1x256xf32> -> vector<1x256xf32>
    %105 = arith.addf %103, %104 : vector<1x256xf32>
    %106 = vector.extract_strided_slice %105 {offsets = [0, 0], sizes = [1, 192], strides = [1, 1]} : vector<1x256xf32> to vector<1x192xf32>
    %107 = arith.negf %106 : vector<1x192xf32>
    %108 = math.exp %107 : vector<1x192xf32>
    %cst_33 = arith.constant 1.000000e+00 : f32
    %109 = vector.broadcast %cst_33 : f32 to vector<1x192xf32>
    %110 = arith.addf %109, %108 : vector<1x192xf32>
    %111 = arith.divf %109, %110 : vector<1x192xf32>
    %112 = vector.extract_strided_slice %105 {offsets = [0, 192], sizes = [1, 64], strides = [1, 1]} : vector<1x256xf32> to vector<1x64xf32>
    %113 = math.tanh %112 : vector<1x64xf32>
    %114 = vector.extract_strided_slice %111 {offsets = [0, 64], sizes = [1, 64], strides = [1, 1]} : vector<1x192xf32> to vector<1x64xf32>
    %115 = arith.mulf %114, %95 : vector<1x64xf32>
    %116 = vector.extract_strided_slice %111 {offsets = [0, 0], sizes = [1, 64], strides = [1, 1]} : vector<1x192xf32> to vector<1x64xf32>
    %117 = arith.mulf %116, %113 : vector<1x64xf32>
    %118 = arith.addf %115, %117 : vector<1x64xf32>
    %119 = vector.extract_strided_slice %111 {offsets = [0, 128], sizes = [1, 64], strides = [1, 1]} : vector<1x192xf32> to vector<1x64xf32>
    %120 = math.tanh %118 : vector<1x64xf32>
    %121 = arith.mulf %119, %120 : vector<1x64xf32>
    %122 = vector.extract_strided_slice %121 {offsets = [0, 0], sizes = [1, 32], strides = [1, 1]} : vector<1x64xf32> to vector<1x32xf32>
    %c3 = arith.constant 3 : index
    %c0_34 = arith.constant 0 : index
    %123 = vector.load %arg8[%c3, %c0_34] : memref<8x64xf32, #tpu.memory_space<vmem>>, vector<1x32xf32>
    tpu.vector_store %arg8[%c3, %c0_34], %122 {strides = array<i32>} : memref<8x64xf32, #tpu.memory_space<vmem>>, vector<1x32xf32>,
    %124 = vector.extract_strided_slice %121 {offsets = [0, 32], sizes = [1, 32], strides = [1, 1]} : vector<1x64xf32> to vector<1x32xf32>
    %c4 = arith.constant 4 : index
    %c32_35 = arith.constant 32 : index
    %125 = vector.load %arg8[%c4, %c32_35] : memref<8x64xf32, #tpu.memory_space<vmem>>, vector<1x32xf32>
    tpu.vector_store %arg8[%c4, %c32_35], %124 {strides = array<i32>} : memref<8x64xf32, #tpu.memory_space<vmem>>, vector<1x32xf32>,
    %126 = vector.extract_strided_slice %30 {offsets = [4, 0], sizes = [1, 256], strides = [1, 1]} : vector<8x256xf32> to vector<1x256xf32>
    %cst_36 = arith.constant dense<0.000000e+00> : vector<1x256xf32>
    %127 = tpu.matmul %121, %31, %cst_36 {dimension_numbers = #tpu.dot_dimension_numbers<[1], [0], [0], [1], [0, 0, 1, 1], [], []>} : vector<1x64xf32>, vector<64x256xf32>, vector<1x256xf32> -> vector<1x256xf32>
    %128 = arith.addf %126, %127 : vector<1x256xf32>
    %129 = vector.extract_strided_slice %128 {offsets = [0, 0], sizes = [1, 192], strides = [1, 1]} : vector<1x256xf32> to vector<1x192xf32>
    %130 = arith.negf %129 : vector<1x192xf32>
    %131 = math.exp %130 : vector<1x192xf32>
    %cst_37 = arith.constant 1.000000e+00 : f32
    %132 = vector.broadcast %cst_37 : f32 to vector<1x192xf32>
    %133 = arith.addf %132, %131 : vector<1x192xf32>
    %134 = arith.divf %132, %133 : vector<1x192xf32>
    %135 = vector.extract_strided_slice %128 {offsets = [0, 192], sizes = [1, 64], strides = [1, 1]} : vector<1x256xf32> to vector<1x64xf32>
    %136 = math.tanh %135 : vector<1x64xf32>
    %137 = vector.extract_strided_slice %134 {offsets = [0, 64], sizes = [1, 64], strides = [1, 1]} : vector<1x192xf32> to vector<1x64xf32>
    %138 = arith.mulf %137, %118 : vector<1x64xf32>
    %139 = vector.extract_strided_slice %134 {offsets = [0, 0], sizes = [1, 64], strides = [1, 1]} : vector<1x192xf32> to vector<1x64xf32>
    %140 = arith.mulf %139, %136 : vector<1x64xf32>
    %141 = arith.addf %138, %140 : vector<1x64xf32>
    %142 = vector.extract_strided_slice %134 {offsets = [0, 128], sizes = [1, 64], strides = [1, 1]} : vector<1x192xf32> to vector<1x64xf32>
    %143 = math.tanh %141 : vector<1x64xf32>
    %144 = arith.mulf %142, %143 : vector<1x64xf32>
    %145 = vector.extract_strided_slice %144 {offsets = [0, 0], sizes = [1, 32], strides = [1, 1]} : vector<1x64xf32> to vector<1x32xf32>
    %c4_38 = arith.constant 4 : index
    %c0_39 = arith.constant 0 : index
    %146 = vector.load %arg8[%c4_38, %c0_39] : memref<8x64xf32, #tpu.memory_space<vmem>>, vector<1x32xf32>
    tpu.vector_store %arg8[%c4_38, %c0_39], %145 {strides = array<i32>} : memref<8x64xf32, #tpu.memory_space<vmem>>, vector<1x32xf32>,
    %147 = vector.extract_strided_slice %144 {offsets = [0, 32], sizes = [1, 32], strides = [1, 1]} : vector<1x64xf32> to vector<1x32xf32>
    %c3_40 = arith.constant 3 : index
    %c32_41 = arith.constant 32 : index
    %148 = vector.load %arg8[%c3_40, %c32_41] : memref<8x64xf32, #tpu.memory_space<vmem>>, vector<1x32xf32>
    tpu.vector_store %arg8[%c3_40, %c32_41], %147 {strides = array<i32>} : memref<8x64xf32, #tpu.memory_space<vmem>>, vector<1x32xf32>,
    %149 = vector.extract_strided_slice %30 {offsets = [5, 0], sizes = [1, 256], strides = [1, 1]} : vector<8x256xf32> to vector<1x256xf32>
    %cst_42 = arith.constant dense<0.000000e+00> : vector<1x256xf32>
    %150 = tpu.matmul %144, %31, %cst_42 {dimension_numbers = #tpu.dot_dimension_numbers<[1], [0], [0], [1], [0, 0, 1, 1], [], []>} : vector<1x64xf32>, vector<64x256xf32>, vector<1x256xf32> -> vector<1x256xf32>
    %151 = arith.addf %149, %150 : vector<1x256xf32>
    %152 = vector.extract_strided_slice %151 {offsets = [0, 0], sizes = [1, 192], strides = [1, 1]} : vector<1x256xf32> to vector<1x192xf32>
    %153 = arith.negf %152 : vector<1x192xf32>
    %154 = math.exp %153 : vector<1x192xf32>
    %cst_43 = arith.constant 1.000000e+00 : f32
    %155 = vector.broadcast %cst_43 : f32 to vector<1x192xf32>
    %156 = arith.addf %155, %154 : vector<1x192xf32>
    %157 = arith.divf %155, %156 : vector<1x192xf32>
    %158 = vector.extract_strided_slice %151 {offsets = [0, 192], sizes = [1, 64], strides = [1, 1]} : vector<1x256xf32> to vector<1x64xf32>
    %159 = math.tanh %158 : vector<1x64xf32>
    %160 = vector.extract_strided_slice %157 {offsets = [0, 64], sizes = [1, 64], strides = [1, 1]} : vector<1x192xf32> to vector<1x64xf32>
    %161 = arith.mulf %160, %141 : vector<1x64xf32>
    %162 = vector.extract_strided_slice %157 {offsets = [0, 0], sizes = [1, 64], strides = [1, 1]} : vector<1x192xf32> to vector<1x64xf32>
    %163 = arith.mulf %162, %159 : vector<1x64xf32>
    %164 = arith.addf %161, %163 : vector<1x64xf32>
    %165 = vector.extract_strided_slice %157 {offsets = [0, 128], sizes = [1, 64], strides = [1, 1]} : vector<1x192xf32> to vector<1x64xf32>
    %166 = math.tanh %164 : vector<1x64xf32>
    %167 = arith.mulf %165, %166 : vector<1x64xf32>
    %168 = vector.extract_strided_slice %167 {offsets = [0, 0], sizes = [1, 32], strides = [1, 1]} : vector<1x64xf32> to vector<1x32xf32>
    %c5_44 = arith.constant 5 : index
    %c0_45 = arith.constant 0 : index
    %169 = vector.load %arg8[%c5_44, %c0_45] : memref<8x64xf32, #tpu.memory_space<vmem>>, vector<1x32xf32>
    tpu.vector_store %arg8[%c5_44, %c0_45], %168 {strides = array<i32>} : memref<8x64xf32, #tpu.memory_space<vmem>>, vector<1x32xf32>,
    %170 = vector.extract_strided_slice %167 {offsets = [0, 32], sizes = [1, 32], strides = [1, 1]} : vector<1x64xf32> to vector<1x32xf32>
    %c2_46 = arith.constant 2 : index
    %c32_47 = arith.constant 32 : index
    %171 = vector.load %arg8[%c2_46, %c32_47] : memref<8x64xf32, #tpu.memory_space<vmem>>, vector<1x32xf32>
    tpu.vector_store %arg8[%c2_46, %c32_47], %170 {strides = array<i32>} : memref<8x64xf32, #tpu.memory_space<vmem>>, vector<1x32xf32>,
    %172 = vector.extract_strided_slice %30 {offsets = [6, 0], sizes = [1, 256], strides = [1, 1]} : vector<8x256xf32> to vector<1x256xf32>
    %cst_48 = arith.constant dense<0.000000e+00> : vector<1x256xf32>
    %173 = tpu.matmul %167, %31, %cst_48 {dimension_numbers = #tpu.dot_dimension_numbers<[1], [0], [0], [1], [0, 0, 1, 1], [], []>} : vector<1x64xf32>, vector<64x256xf32>, vector<1x256xf32> -> vector<1x256xf32>
    %174 = arith.addf %172, %173 : vector<1x256xf32>
    %175 = vector.extract_strided_slice %174 {offsets = [0, 0], sizes = [1, 192], strides = [1, 1]} : vector<1x256xf32> to vector<1x192xf32>
    %176 = arith.negf %175 : vector<1x192xf32>
    %177 = math.exp %176 : vector<1x192xf32>
    %cst_49 = arith.constant 1.000000e+00 : f32
    %178 = vector.broadcast %cst_49 : f32 to vector<1x192xf32>
    %179 = arith.addf %178, %177 : vector<1x192xf32>
    %180 = arith.divf %178, %179 : vector<1x192xf32>
    %181 = vector.extract_strided_slice %174 {offsets = [0, 192], sizes = [1, 64], strides = [1, 1]} : vector<1x256xf32> to vector<1x64xf32>
    %182 = math.tanh %181 : vector<1x64xf32>
    %183 = vector.extract_strided_slice %180 {offsets = [0, 64], sizes = [1, 64], strides = [1, 1]} : vector<1x192xf32> to vector<1x64xf32>
    %184 = arith.mulf %183, %164 : vector<1x64xf32>
    %185 = vector.extract_strided_slice %180 {offsets = [0, 0], sizes = [1, 64], strides = [1, 1]} : vector<1x192xf32> to vector<1x64xf32>
    %186 = arith.mulf %185, %182 : vector<1x64xf32>
    %187 = arith.addf %184, %186 : vector<1x64xf32>
    %188 = vector.extract_strided_slice %180 {offsets = [0, 128], sizes = [1, 64], strides = [1, 1]} : vector<1x192xf32> to vector<1x64xf32>
    %189 = math.tanh %187 : vector<1x64xf32>
    %190 = arith.mulf %188, %189 : vector<1x64xf32>
    %191 = vector.extract_strided_slice %190 {offsets = [0, 0], sizes = [1, 32], strides = [1, 1]} : vector<1x64xf32> to vector<1x32xf32>
    %c6_50 = arith.constant 6 : index
    %c0_51 = arith.constant 0 : index
    %192 = vector.load %arg8[%c6_50, %c0_51] : memref<8x64xf32, #tpu.memory_space<vmem>>, vector<1x32xf32>
    tpu.vector_store %arg8[%c6_50, %c0_51], %191 {strides = array<i32>} : memref<8x64xf32, #tpu.memory_space<vmem>>, vector<1x32xf32>,
    %193 = vector.extract_strided_slice %190 {offsets = [0, 32], sizes = [1, 32], strides = [1, 1]} : vector<1x64xf32> to vector<1x32xf32>
    %c1_52 = arith.constant 1 : index
    %c32_53 = arith.constant 32 : index
    %194 = vector.load %arg8[%c1_52, %c32_53] : memref<8x64xf32, #tpu.memory_space<vmem>>, vector<1x32xf32>
    tpu.vector_store %arg8[%c1_52, %c32_53], %193 {strides = array<i32>} : memref<8x64xf32, #tpu.memory_space<vmem>>, vector<1x32xf32>,
    %195 = vector.extract_strided_slice %30 {offsets = [7, 0], sizes = [1, 256], strides = [1, 1]} : vector<8x256xf32> to vector<1x256xf32>
    %cst_54 = arith.constant dense<0.000000e+00> : vector<1x256xf32>
    %196 = tpu.matmul %190, %31, %cst_54 {dimension_numbers = #tpu.dot_dimension_numbers<[1], [0], [0], [1], [0, 0, 1, 1], [], []>} : vector<1x64xf32>, vector<64x256xf32>, vector<1x256xf32> -> vector<1x256xf32>
    %197 = arith.addf %195, %196 : vector<1x256xf32>
    %198 = vector.extract_strided_slice %197 {offsets = [0, 0], sizes = [1, 192], strides = [1, 1]} : vector<1x256xf32> to vector<1x192xf32>
    %199 = arith.negf %198 : vector<1x192xf32>
    %200 = math.exp %199 : vector<1x192xf32>
    %cst_55 = arith.constant 1.000000e+00 : f32
    %201 = vector.broadcast %cst_55 : f32 to vector<1x192xf32>
    %202 = arith.addf %201, %200 : vector<1x192xf32>
    %203 = arith.divf %201, %202 : vector<1x192xf32>
    %204 = vector.extract_strided_slice %197 {offsets = [0, 192], sizes = [1, 64], strides = [1, 1]} : vector<1x256xf32> to vector<1x64xf32>
    %205 = math.tanh %204 : vector<1x64xf32>
    %206 = vector.extract_strided_slice %203 {offsets = [0, 64], sizes = [1, 64], strides = [1, 1]} : vector<1x192xf32> to vector<1x64xf32>
    %207 = arith.mulf %206, %187 : vector<1x64xf32>
    %208 = vector.extract_strided_slice %203 {offsets = [0, 0], sizes = [1, 64], strides = [1, 1]} : vector<1x192xf32> to vector<1x64xf32>
    %209 = arith.mulf %208, %205 : vector<1x64xf32>
    %210 = arith.addf %207, %209 : vector<1x64xf32>
    %211 = vector.extract_strided_slice %203 {offsets = [0, 128], sizes = [1, 64], strides = [1, 1]} : vector<1x192xf32> to vector<1x64xf32>
    %212 = math.tanh %210 : vector<1x64xf32>
    %213 = arith.mulf %211, %212 : vector<1x64xf32>
    %214 = vector.extract_strided_slice %213 {offsets = [0, 0], sizes = [1, 32], strides = [1, 1]} : vector<1x64xf32> to vector<1x32xf32>
    %c7_56 = arith.constant 7 : index
    %c0_57 = arith.constant 0 : index
    %215 = vector.load %arg8[%c7_56, %c0_57] : memref<8x64xf32, #tpu.memory_space<vmem>>, vector<1x32xf32>
    tpu.vector_store %arg8[%c7_56, %c0_57], %214 {strides = array<i32>} : memref<8x64xf32, #tpu.memory_space<vmem>>, vector<1x32xf32>,
    %216 = vector.extract_strided_slice %213 {offsets = [0, 32], sizes = [1, 32], strides = [1, 1]} : vector<1x64xf32> to vector<1x32xf32>
    %c0_58 = arith.constant 0 : index
    %c32_59 = arith.constant 32 : index
    %217 = vector.load %arg8[%c0_58, %c32_59] : memref<8x64xf32, #tpu.memory_space<vmem>>, vector<1x32xf32>
    tpu.vector_store %arg8[%c0_58, %c32_59], %216 {strides = array<i32>} : memref<8x64xf32, #tpu.memory_space<vmem>>, vector<1x32xf32>,
    %218 = vector.extract_strided_slice %213 {offsets = [0, 0], sizes = [1, 32], strides = [1, 1]} : vector<1x64xf32> to vector<1x32xf32>
    %c0_60 = arith.constant 0 : index
    %c0_61 = arith.constant 0 : index
    %219 = vector.load %arg9[%c0_60, %c0_61] : memref<1x32xf32, #tpu.memory_space<vmem>>, vector<1x32xf32>
    tpu.vector_store %arg9[%c0_60, %c0_61], %218 {strides = array<i32>} : memref<1x32xf32, #tpu.memory_space<vmem>>, vector<1x32xf32>,
    %220 = vector.extract_strided_slice %213 {offsets = [0, 32], sizes = [1, 32], strides = [1, 1]} : vector<1x64xf32> to vector<1x32xf32>
    %c0_62 = arith.constant 0 : index
    %c0_63 = arith.constant 0 : index
    %221 = vector.load %arg10[%c0_62, %c0_63] : memref<1x32xf32, #tpu.memory_space<vmem>>, vector<1x32xf32>
    tpu.vector_store %arg10[%c0_62, %c0_63], %220 {strides = array<i32>} : memref<1x32xf32, #tpu.memory_space<vmem>>, vector<1x32xf32>,
    %c0_64 = arith.constant 0 : index
    %c0_65 = arith.constant 0 : index
    %222 = vector.load %arg8[%c0_64, %c0_65] : memref<8x64xf32, #tpu.memory_space<vmem>>, vector<8x64xf32>
    %c0_66 = arith.constant 0 : index
    %c896 = arith.constant 896 : index
    %223 = vector.load %arg4[%c0_66, %c896] : memref<64x1280xf32, #tpu.memory_space<vmem>>, vector<64x64xf32>
    %cst_67 = arith.constant dense<0.000000e+00> : vector<8x64xf32>
    %224 = tpu.matmul %222, %223, %cst_67 {dimension_numbers = #tpu.dot_dimension_numbers<[1], [0], [0], [1], [0, 0, 1, 1], [], []>} : vector<8x64xf32>, vector<64x64xf32>, vector<8x64xf32> -> vector<8x64xf32>
    %c0_68 = arith.constant 0 : index
    %c896_69 = arith.constant 896 : index
    %225 = vector.load %arg5[%c0_68, %c896_69] : memref<1x1536xf32, #tpu.memory_space<vmem>>, vector<1x64xf32>
    %226 = vector.broadcast %225 : vector<1x64xf32> to vector<8x64xf32>
    %227 = arith.addf %224, %226 : vector<8x64xf32>
    %c0_70 = arith.constant 0 : index
    %c1152 = arith.constant 1152 : index
    %228 = vector.load %arg4[%c0_70, %c1152] : memref<64x1280xf32, #tpu.memory_space<vmem>>, vector<64x64xf32>
    %cst_71 = arith.constant dense<0.000000e+00> : vector<8x64xf32>
    %229 = tpu.matmul %222, %228, %cst_71 {dimension_numbers = #tpu.dot_dimension_numbers<[1], [0], [0], [1], [0, 0, 1, 1], [], []>} : vector<8x64xf32>, vector<64x64xf32>, vector<8x64xf32> -> vector<8x64xf32>
    %c0_72 = arith.constant 0 : index
    %c1280 = arith.constant 1280 : index
    %230 = vector.load %arg5[%c0_72, %c1280] : memref<1x1536xf32, #tpu.memory_space<vmem>>, vector<1x64xf32>
    %231 = vector.broadcast %230 : vector<1x64xf32> to vector<8x64xf32>
    %232 = arith.addf %229, %231 : vector<8x64xf32>
    %c0_73 = arith.constant 0 : index
    %c1024 = arith.constant 1024 : index
    %233 = vector.load %arg4[%c0_73, %c1024] : memref<64x1280xf32, #tpu.memory_space<vmem>>, vector<64x64xf32>
    %cst_74 = arith.constant dense<0.000000e+00> : vector<8x64xf32>
    %234 = tpu.matmul %227, %233, %cst_74 {dimension_numbers = #tpu.dot_dimension_numbers<[1], [0], [0], [1], [0, 0, 1, 1], [], []>} : vector<8x64xf32>, vector<64x64xf32>, vector<8x64xf32> -> vector<8x64xf32>
    %c0_75 = arith.constant 0 : index
    %c128_76 = arith.constant 128 : index
    %235 = vector.load %arg2[%c0_75, %c128_76] : memref<2x256xf32, #tpu.memory_space<vmem>>, vector<2x64xf32>
    %c0_77 = arith.constant 0 : index
    %c384 = arith.constant 384 : index
    %236 = vector.load %arg5[%c0_77, %c384] : memref<1x1536xf32, #tpu.memory_space<vmem>>, vector<1x64xf32>
    %c0_78 = arith.constant 0 : index
    %c512 = arith.constant 512 : index
    %237 = vector.load %arg5[%c0_78, %c512] : memref<1x1536xf32, #tpu.memory_space<vmem>>, vector<1x256xf32>
    %c0_79 = arith.constant 0 : index
    %c256 = arith.constant 256 : index
    %238 = vector.load %arg4[%c0_79, %c256] : memref<64x1280xf32, #tpu.memory_space<vmem>>, vector<64x256xf32>
    %cst_80 = arith.constant dense<0.000000e+00> : vector<8x64xf32>
    %239 = tpu.matmul %0, %235, %cst_80 {dimension_numbers = #tpu.dot_dimension_numbers<[1], [0], [0], [1], [0, 0, 1, 1], [], []>} : vector<8x2xf32>, vector<2x64xf32>, vector<8x64xf32> -> vector<8x64xf32>
    %240 = vector.broadcast %236 : vector<1x64xf32> to vector<8x64xf32>
    %241 = arith.addf %239, %240 : vector<8x64xf32>
    %cst_81 = arith.constant dense<0.000000e+00> : vector<8x256xf32>
    %242 = tpu.matmul %241, %238, %cst_81 {dimension_numbers = #tpu.dot_dimension_numbers<[1], [0], [0], [1], [0, 0, 1, 1], [], []>} : vector<8x64xf32>, vector<64x256xf32>, vector<8x256xf32> -> vector<8x256xf32>
    %243 = vector.broadcast %237 : vector<1x256xf32> to vector<8x256xf32>
    %244 = arith.addf %242, %243 : vector<8x256xf32>
    %cst_82 = arith.constant -1.000000e+00 : f32
    %245 = vector.broadcast %cst_82 : f32 to vector<1x2xf32>
    %cst_83 = arith.constant dense<0.000000e+00> : vector<1x64xf32>
    %246 = tpu.matmul %245, %235, %cst_83 {dimension_numbers = #tpu.dot_dimension_numbers<[1], [0], [0], [1], [0, 0, 1, 1], [], []>} : vector<1x2xf32>, vector<2x64xf32>, vector<1x64xf32> -> vector<1x64xf32>
    %247 = arith.addf %246, %236 : vector<1x64xf32>
    %cst_84 = arith.constant dense<0.000000e+00> : vector<1x256xf32>
    %248 = tpu.matmul %247, %238, %cst_84 {dimension_numbers = #tpu.dot_dimension_numbers<[1], [0], [0], [1], [0, 0, 1, 1], [], []>} : vector<1x64xf32>, vector<64x256xf32>, vector<1x256xf32> -> vector<1x256xf32>
    %249 = arith.addf %248, %237 : vector<1x256xf32>
    %c0_85 = arith.constant 0 : index
    %c1024_86 = arith.constant 1024 : index
    %250 = vector.load %arg5[%c0_85, %c1024_86] : memref<1x1536xf32, #tpu.memory_space<vmem>>, vector<1x64xf32>
    %c0_87 = arith.constant 0 : index
    %c768 = arith.constant 768 : index
    %251 = vector.load %arg5[%c0_87, %c768] : memref<1x1536xf32, #tpu.memory_space<vmem>>, vector<1x64xf32>
    %c0_88 = arith.constant 0 : index
    %c1408 = arith.constant 1408 : index
    %252 = vector.load %arg5[%c0_88, %c1408] : memref<1x1536xf32, #tpu.memory_space<vmem>>, vector<1x64xf32>
    %c0_89 = arith.constant 0 : index
    %c1152_90 = arith.constant 1152 : index
    %253 = vector.load %arg5[%c0_89, %c1152_90] : memref<1x1536xf32, #tpu.memory_space<vmem>>, vector<1x64xf32>
    %254 = tpu.iota {dimensions = array<i32: 1>} : vector<1x8xi32>
    %255 = arith.sitofp %254 : vector<1x8xi32> to vector<1x8xf32>
    %c0_91 = arith.constant 0 : index
    %c512_92 = arith.constant 512 : index
    %256 = vector.load %arg4[%c0_91, %c512_92] : memref<64x1280xf32, #tpu.memory_space<vmem>>, vector<64x256xf32>
    %cst_93 = arith.constant dense<0.000000e+00> : vector<1x256xf32>
    %257 = tpu.matmul %213, %256, %cst_93 {dimension_numbers = #tpu.dot_dimension_numbers<[1], [0], [0], [1], [0, 0, 1, 1], [], []>} : vector<1x64xf32>, vector<64x256xf32>, vector<1x256xf32> -> vector<1x256xf32>
    %258 = arith.addf %249, %257 : vector<1x256xf32>
    %259 = vector.extract_strided_slice %258 {offsets = [0, 0], sizes = [1, 192], strides = [1, 1]} : vector<1x256xf32> to vector<1x192xf32>
    %260 = arith.negf %259 : vector<1x192xf32>
    %261 = math.exp %260 : vector<1x192xf32>
    %cst_94 = arith.constant 1.000000e+00 : f32
    %262 = vector.broadcast %cst_94 : f32 to vector<1x192xf32>
    %263 = arith.addf %262, %261 : vector<1x192xf32>
    %264 = arith.divf %262, %263 : vector<1x192xf32>
    %265 = vector.extract_strided_slice %264 {offsets = [0, 64], sizes = [1, 64], strides = [1, 1]} : vector<1x192xf32> to vector<1x64xf32>
    %266 = arith.mulf %265, %210 : vector<1x64xf32>
    %267 = vector.extract_strided_slice %264 {offsets = [0, 0], sizes = [1, 64], strides = [1, 1]} : vector<1x192xf32> to vector<1x64xf32>
    %268 = vector.extract_strided_slice %258 {offsets = [0, 192], sizes = [1, 64], strides = [1, 1]} : vector<1x256xf32> to vector<1x64xf32>
    %269 = math.tanh %268 : vector<1x64xf32>
    %270 = arith.mulf %267, %269 : vector<1x64xf32>
    %271 = arith.addf %266, %270 : vector<1x64xf32>
    %272 = vector.extract_strided_slice %264 {offsets = [0, 128], sizes = [1, 64], strides = [1, 1]} : vector<1x192xf32> to vector<1x64xf32>
    %273 = math.tanh %271 : vector<1x64xf32>
    %274 = arith.mulf %272, %273 : vector<1x64xf32>
    %c0_95 = arith.constant 0 : index
    %c768_96 = arith.constant 768 : index
    %275 = vector.load %arg4[%c0_95, %c768_96] : memref<64x1280xf32, #tpu.memory_space<vmem>>, vector<64x64xf32>
    %cst_97 = arith.constant dense<0.000000e+00> : vector<1x64xf32>
    %276 = tpu.matmul %274, %275, %cst_97 {dimension_numbers = #tpu.dot_dimension_numbers<[1], [0], [0], [1], [0, 0, 1, 1], [], []>} : vector<1x64xf32>, vector<64x64xf32>, vector<1x64xf32> -> vector<1x64xf32>
    %277 = arith.addf %276, %251 : vector<1x64xf32>
    %278 = vector.broadcast %277 : vector<1x64xf32> to vector<8x64xf32>
    %279 = arith.addf %227, %278 : vector<8x64xf32>
    %280 = math.tanh %279 : vector<8x64xf32>
    %cst_98 = arith.constant dense<0.000000e+00> : vector<1x8xf32>
    %281 = tpu.matmul %250, %280, %cst_98 {dimension_numbers = #tpu.dot_dimension_numbers<[1], [1], [0], [0], [0, 0, 1, 0], [], []>} : vector<1x64xf32>, vector<8x64xf32>, vector<1x8xf32> -> vector<1x8xf32>
    %282 = arith.subf %281, %5 : vector<1x8xf32>
    %cst_99 = arith.constant dense<0xFF800000> : vector<1xf32>
    %283 = vector.multi_reduction <maximumf>, %282, %cst_99 [1] : vector<1x8xf32> to vector<1xf32>
    %284 = vector.shape_cast %283 : vector<1xf32> to vector<1x1xf32>
    %285 = vector.broadcast %284 : vector<1x1xf32> to vector<1x8xf32>
    %286 = arith.subf %282, %285 : vector<1x8xf32>
    %287 = math.exp %286 : vector<1x8xf32>
    %cst_100 = arith.constant dense<0.000000e+00> : vector<1xf32>
    %288 = vector.multi_reduction <add>, %287, %cst_100 [1] : vector<1x8xf32> to vector<1xf32>
    %289 = vector.shape_cast %288 : vector<1xf32> to vector<1x1xf32>
    %290 = tpu.reciprocal %289 {approx = true} : vector<1x1xf32> -> vector<1x1xf32>
    %291 = vector.broadcast %290 : vector<1x1xf32> to vector<1x8xf32>
    %292 = arith.mulf %287, %291 : vector<1x8xf32>
    %cst_101 = arith.constant dense<0.000000e+00> : vector<1x64xf32>
    %293 = tpu.matmul %292, %234, %cst_101 {dimension_numbers = #tpu.dot_dimension_numbers<[1], [0], [0], [1], [0, 0, 1, 1], [], []>} : vector<1x8xf32>, vector<8x64xf32>, vector<1x64xf32> -> vector<1x64xf32>
    %294 = arith.addf %293, %253 : vector<1x64xf32>
    %295 = vector.broadcast %294 : vector<1x64xf32> to vector<8x64xf32>
    %296 = arith.addf %232, %295 : vector<8x64xf32>
    %297 = math.tanh %296 : vector<8x64xf32>
    %cst_102 = arith.constant dense<0.000000e+00> : vector<1x8xf32>
    %298 = tpu.matmul %252, %297, %cst_102 {dimension_numbers = #tpu.dot_dimension_numbers<[1], [1], [0], [0], [0, 0, 1, 0], [], []>} : vector<1x64xf32>, vector<8x64xf32>, vector<1x8xf32> -> vector<1x8xf32>
    %299 = arith.subf %298, %5 : vector<1x8xf32>
    %cst_103 = arith.constant dense<0xFF800000> : vector<1xf32>
    %300 = vector.multi_reduction <maximumf>, %299, %cst_103 [1] : vector<1x8xf32> to vector<1xf32>
    %301 = vector.shape_cast %300 : vector<1xf32> to vector<1x1xf32>
    %302 = vector.broadcast %301 : vector<1x1xf32> to vector<1x8xf32>
    %303 = arith.subf %299, %302 : vector<1x8xf32>
    %304 = math.exp %303 : vector<1x8xf32>
    %cst_104 = arith.constant dense<0.000000e+00> : vector<1xf32>
    %305 = vector.multi_reduction <add>, %304, %cst_104 [1] : vector<1x8xf32> to vector<1xf32>
    %306 = vector.shape_cast %305 : vector<1xf32> to vector<1x1xf32>
    %307 = vector.broadcast %306 : vector<1x1xf32> to vector<1x8xf32>
    %308 = arith.divf %304, %307 : vector<1x8xf32>
    %c0_105 = arith.constant 0 : index
    %c0_106 = arith.constant 0 : index
    %309 = vector.load %arg6[%c0_105, %c0_106] : memref<4x8xf32, #tpu.memory_space<vmem>>, vector<1x8xf32>
    tpu.vector_store %arg6[%c0_105, %c0_106], %308 {strides = array<i32>} : memref<4x8xf32, #tpu.memory_space<vmem>>, vector<1x8xf32>,
    %310 = vector.broadcast %301 : vector<1x1xf32> to vector<1x8xf32>
    %311 = arith.cmpf oge, %299, %310 : vector<1x8xf32>
    %cst_107 = arith.constant 8.000000e+00 : f32
    %312 = vector.broadcast %cst_107 : f32 to vector<1x8xf32>
    %313 = arith.select %311, %255, %312 : vector<1x8xi1>, vector<1x8xf32>
    %cst_108 = arith.constant dense<0x7F800000> : vector<1xf32>
    %314 = vector.multi_reduction <minimumf>, %313, %cst_108 [1] : vector<1x8xf32> to vector<1xf32>
    %315 = vector.shape_cast %314 : vector<1xf32> to vector<1x1xf32>
    %c0_109 = arith.constant 0 : index
    %c0_110 = arith.constant 0 : index
    %316 = vector.load %arg7[%c0_109, %c0_110] : memref<4x1xf32, #tpu.memory_space<vmem>>, vector<1x1xf32>
    tpu.vector_store %arg7[%c0_109, %c0_110], %315 {strides = array<i32>} : memref<4x1xf32, #tpu.memory_space<vmem>>, vector<1x1xf32>,
    %317 = vector.broadcast %315 : vector<1x1xf32> to vector<1x8xf32>
    %318 = arith.cmpf oeq, %255, %317 : vector<1x8xf32>
    %319 = arith.extui %318 : vector<1x8xi1> to vector<1x8xi32>
    %320 = arith.sitofp %319 : vector<1x8xi32> to vector<1x8xf32>
    %cst_111 = arith.constant dense<0.000000e+00> : vector<1x256xf32>
    %321 = tpu.matmul %320, %244, %cst_111 {dimension_numbers = #tpu.dot_dimension_numbers<[1], [0], [0], [1], [0, 0, 1, 1], [], []>} : vector<1x8xf32>, vector<8x256xf32>, vector<1x256xf32> -> vector<1x256xf32>
    %c0_112 = arith.constant 0 : index
    %c512_113 = arith.constant 512 : index
    %322 = vector.load %arg4[%c0_112, %c512_113] : memref<64x1280xf32, #tpu.memory_space<vmem>>, vector<64x256xf32>
    %cst_114 = arith.constant dense<0.000000e+00> : vector<1x256xf32>
    %323 = tpu.matmul %274, %322, %cst_114 {dimension_numbers = #tpu.dot_dimension_numbers<[1], [0], [0], [1], [0, 0, 1, 1], [], []>} : vector<1x64xf32>, vector<64x256xf32>, vector<1x256xf32> -> vector<1x256xf32>
    %324 = arith.addf %321, %323 : vector<1x256xf32>
    %325 = vector.extract_strided_slice %324 {offsets = [0, 0], sizes = [1, 192], strides = [1, 1]} : vector<1x256xf32> to vector<1x192xf32>
    %326 = arith.negf %325 : vector<1x192xf32>
    %327 = math.exp %326 : vector<1x192xf32>
    %cst_115 = arith.constant 1.000000e+00 : f32
    %328 = vector.broadcast %cst_115 : f32 to vector<1x192xf32>
    %329 = arith.addf %328, %327 : vector<1x192xf32>
    %330 = arith.divf %328, %329 : vector<1x192xf32>
    %331 = vector.extract_strided_slice %330 {offsets = [0, 64], sizes = [1, 64], strides = [1, 1]} : vector<1x192xf32> to vector<1x64xf32>
    %332 = arith.mulf %331, %271 : vector<1x64xf32>
    %333 = vector.extract_strided_slice %330 {offsets = [0, 0], sizes = [1, 64], strides = [1, 1]} : vector<1x192xf32> to vector<1x64xf32>
    %334 = vector.extract_strided_slice %324 {offsets = [0, 192], sizes = [1, 64], strides = [1, 1]} : vector<1x256xf32> to vector<1x64xf32>
    %335 = math.tanh %334 : vector<1x64xf32>
    %336 = arith.mulf %333, %335 : vector<1x64xf32>
    %337 = arith.addf %332, %336 : vector<1x64xf32>
    %338 = vector.extract_strided_slice %330 {offsets = [0, 128], sizes = [1, 64], strides = [1, 1]} : vector<1x192xf32> to vector<1x64xf32>
    %339 = math.tanh %337 : vector<1x64xf32>
    %340 = arith.mulf %338, %339 : vector<1x64xf32>
    %c0_116 = arith.constant 0 : index
    %c768_117 = arith.constant 768 : index
    %341 = vector.load %arg4[%c0_116, %c768_117] : memref<64x1280xf32, #tpu.memory_space<vmem>>, vector<64x64xf32>
    %cst_118 = arith.constant dense<0.000000e+00> : vector<1x64xf32>
    %342 = tpu.matmul %340, %341, %cst_118 {dimension_numbers = #tpu.dot_dimension_numbers<[1], [0], [0], [1], [0, 0, 1, 1], [], []>} : vector<1x64xf32>, vector<64x64xf32>, vector<1x64xf32> -> vector<1x64xf32>
    %343 = arith.addf %342, %251 : vector<1x64xf32>
    %344 = vector.broadcast %343 : vector<1x64xf32> to vector<8x64xf32>
    %345 = arith.addf %227, %344 : vector<8x64xf32>
    %346 = math.tanh %345 : vector<8x64xf32>
    %cst_119 = arith.constant dense<0.000000e+00> : vector<1x8xf32>
    %347 = tpu.matmul %250, %346, %cst_119 {dimension_numbers = #tpu.dot_dimension_numbers<[1], [1], [0], [0], [0, 0, 1, 0], [], []>} : vector<1x64xf32>, vector<8x64xf32>, vector<1x8xf32> -> vector<1x8xf32>
    %348 = arith.subf %347, %5 : vector<1x8xf32>
    %cst_120 = arith.constant dense<0xFF800000> : vector<1xf32>
    %349 = vector.multi_reduction <maximumf>, %348, %cst_120 [1] : vector<1x8xf32> to vector<1xf32>
    %350 = vector.shape_cast %349 : vector<1xf32> to vector<1x1xf32>
    %351 = vector.broadcast %350 : vector<1x1xf32> to vector<1x8xf32>
    %352 = arith.subf %348, %351 : vector<1x8xf32>
    %353 = math.exp %352 : vector<1x8xf32>
    %cst_121 = arith.constant dense<0.000000e+00> : vector<1xf32>
    %354 = vector.multi_reduction <add>, %353, %cst_121 [1] : vector<1x8xf32> to vector<1xf32>
    %355 = vector.shape_cast %354 : vector<1xf32> to vector<1x1xf32>
    %356 = tpu.reciprocal %355 {approx = true} : vector<1x1xf32> -> vector<1x1xf32>
    %357 = vector.broadcast %356 : vector<1x1xf32> to vector<1x8xf32>
    %358 = arith.mulf %353, %357 : vector<1x8xf32>
    %cst_122 = arith.constant dense<0.000000e+00> : vector<1x64xf32>
    %359 = tpu.matmul %358, %234, %cst_122 {dimension_numbers = #tpu.dot_dimension_numbers<[1], [0], [0], [1], [0, 0, 1, 1], [], []>} : vector<1x8xf32>, vector<8x64xf32>, vector<1x64xf32> -> vector<1x64xf32>
    %360 = arith.addf %359, %253 : vector<1x64xf32>
    %361 = vector.broadcast %360 : vector<1x64xf32> to vector<8x64xf32>
    %362 = arith.addf %232, %361 : vector<8x64xf32>
    %363 = math.tanh %362 : vector<8x64xf32>
    %cst_123 = arith.constant dense<0.000000e+00> : vector<1x8xf32>
    %364 = tpu.matmul %252, %363, %cst_123 {dimension_numbers = #tpu.dot_dimension_numbers<[1], [1], [0], [0], [0, 0, 1, 0], [], []>} : vector<1x64xf32>, vector<8x64xf32>, vector<1x8xf32> -> vector<1x8xf32>
    %365 = arith.subf %364, %5 : vector<1x8xf32>
    %cst_124 = arith.constant dense<0xFF800000> : vector<1xf32>
    %366 = vector.multi_reduction <maximumf>, %365, %cst_124 [1] : vector<1x8xf32> to vector<1xf32>
    %367 = vector.shape_cast %366 : vector<1xf32> to vector<1x1xf32>
    %368 = vector.broadcast %367 : vector<1x1xf32> to vector<1x8xf32>
    %369 = arith.subf %365, %368 : vector<1x8xf32>
    %370 = math.exp %369 : vector<1x8xf32>
    %cst_125 = arith.constant dense<0.000000e+00> : vector<1xf32>
    %371 = vector.multi_reduction <add>, %370, %cst_125 [1] : vector<1x8xf32> to vector<1xf32>
    %372 = vector.shape_cast %371 : vector<1xf32> to vector<1x1xf32>
    %373 = vector.broadcast %372 : vector<1x1xf32> to vector<1x8xf32>
    %374 = arith.divf %370, %373 : vector<1x8xf32>
    %c1_126 = arith.constant 1 : index
    %c0_127 = arith.constant 0 : index
    %375 = vector.load %arg6[%c1_126, %c0_127] : memref<4x8xf32, #tpu.memory_space<vmem>>, vector<1x8xf32>
    tpu.vector_store %arg6[%c1_126, %c0_127], %374 {strides = array<i32>} : memref<4x8xf32, #tpu.memory_space<vmem>>, vector<1x8xf32>,
    %376 = vector.broadcast %367 : vector<1x1xf32> to vector<1x8xf32>
    %377 = arith.cmpf oge, %365, %376 : vector<1x8xf32>
    %cst_128 = arith.constant 8.000000e+00 : f32
    %378 = vector.broadcast %cst_128 : f32 to vector<1x8xf32>
    %379 = arith.select %377, %255, %378 : vector<1x8xi1>, vector<1x8xf32>
    %cst_129 = arith.constant dense<0x7F800000> : vector<1xf32>
    %380 = vector.multi_reduction <minimumf>, %379, %cst_129 [1] : vector<1x8xf32> to vector<1xf32>
    %381 = vector.shape_cast %380 : vector<1xf32> to vector<1x1xf32>
    %c1_130 = arith.constant 1 : index
    %c0_131 = arith.constant 0 : index
    %382 = vector.load %arg7[%c1_130, %c0_131] : memref<4x1xf32, #tpu.memory_space<vmem>>, vector<1x1xf32>
    tpu.vector_store %arg7[%c1_130, %c0_131], %381 {strides = array<i32>} : memref<4x1xf32, #tpu.memory_space<vmem>>, vector<1x1xf32>,
    %383 = vector.broadcast %381 : vector<1x1xf32> to vector<1x8xf32>
    %384 = arith.cmpf oeq, %255, %383 : vector<1x8xf32>
    %385 = arith.extui %384 : vector<1x8xi1> to vector<1x8xi32>
    %386 = arith.sitofp %385 : vector<1x8xi32> to vector<1x8xf32>
    %cst_132 = arith.constant dense<0.000000e+00> : vector<1x256xf32>
    %387 = tpu.matmul %386, %244, %cst_132 {dimension_numbers = #tpu.dot_dimension_numbers<[1], [0], [0], [1], [0, 0, 1, 1], [], []>} : vector<1x8xf32>, vector<8x256xf32>, vector<1x256xf32> -> vector<1x256xf32>
    %c0_133 = arith.constant 0 : index
    %c512_134 = arith.constant 512 : index
    %388 = vector.load %arg4[%c0_133, %c512_134] : memref<64x1280xf32, #tpu.memory_space<vmem>>, vector<64x256xf32>
    %cst_135 = arith.constant dense<0.000000e+00> : vector<1x256xf32>
    %389 = tpu.matmul %340, %388, %cst_135 {dimension_numbers = #tpu.dot_dimension_numbers<[1], [0], [0], [1], [0, 0, 1, 1], [], []>} : vector<1x64xf32>, vector<64x256xf32>, vector<1x256xf32> -> vector<1x256xf32>
    %390 = arith.addf %387, %389 : vector<1x256xf32>
    %391 = vector.extract_strided_slice %390 {offsets = [0, 0], sizes = [1, 192], strides = [1, 1]} : vector<1x256xf32> to vector<1x192xf32>
    %392 = arith.negf %391 : vector<1x192xf32>
    %393 = math.exp %392 : vector<1x192xf32>
    %cst_136 = arith.constant 1.000000e+00 : f32
    %394 = vector.broadcast %cst_136 : f32 to vector<1x192xf32>
    %395 = arith.addf %394, %393 : vector<1x192xf32>
    %396 = arith.divf %394, %395 : vector<1x192xf32>
    %397 = vector.extract_strided_slice %396 {offsets = [0, 64], sizes = [1, 64], strides = [1, 1]} : vector<1x192xf32> to vector<1x64xf32>
    %398 = arith.mulf %397, %337 : vector<1x64xf32>
    %399 = vector.extract_strided_slice %396 {offsets = [0, 0], sizes = [1, 64], strides = [1, 1]} : vector<1x192xf32> to vector<1x64xf32>
    %400 = vector.extract_strided_slice %390 {offsets = [0, 192], sizes = [1, 64], strides = [1, 1]} : vector<1x256xf32> to vector<1x64xf32>
    %401 = math.tanh %400 : vector<1x64xf32>
    %402 = arith.mulf %399, %401 : vector<1x64xf32>
    %403 = arith.addf %398, %402 : vector<1x64xf32>
    %404 = vector.extract_strided_slice %396 {offsets = [0, 128], sizes = [1, 64], strides = [1, 1]} : vector<1x192xf32> to vector<1x64xf32>
    %405 = math.tanh %403 : vector<1x64xf32>
    %406 = arith.mulf %404, %405 : vector<1x64xf32>
    %c0_137 = arith.constant 0 : index
    %c768_138 = arith.constant 768 : index
    %407 = vector.load %arg4[%c0_137, %c768_138] : memref<64x1280xf32, #tpu.memory_space<vmem>>, vector<64x64xf32>
    %cst_139 = arith.constant dense<0.000000e+00> : vector<1x64xf32>
    %408 = tpu.matmul %406, %407, %cst_139 {dimension_numbers = #tpu.dot_dimension_numbers<[1], [0], [0], [1], [0, 0, 1, 1], [], []>} : vector<1x64xf32>, vector<64x64xf32>, vector<1x64xf32> -> vector<1x64xf32>
    %409 = arith.addf %408, %251 : vector<1x64xf32>
    %410 = vector.broadcast %409 : vector<1x64xf32> to vector<8x64xf32>
    %411 = arith.addf %227, %410 : vector<8x64xf32>
    %412 = math.tanh %411 : vector<8x64xf32>
    %cst_140 = arith.constant dense<0.000000e+00> : vector<1x8xf32>
    %413 = tpu.matmul %250, %412, %cst_140 {dimension_numbers = #tpu.dot_dimension_numbers<[1], [1], [0], [0], [0, 0, 1, 0], [], []>} : vector<1x64xf32>, vector<8x64xf32>, vector<1x8xf32> -> vector<1x8xf32>
    %414 = arith.subf %413, %5 : vector<1x8xf32>
    %cst_141 = arith.constant dense<0xFF800000> : vector<1xf32>
    %415 = vector.multi_reduction <maximumf>, %414, %cst_141 [1] : vector<1x8xf32> to vector<1xf32>
    %416 = vector.shape_cast %415 : vector<1xf32> to vector<1x1xf32>
    %417 = vector.broadcast %416 : vector<1x1xf32> to vector<1x8xf32>
    %418 = arith.subf %414, %417 : vector<1x8xf32>
    %419 = math.exp %418 : vector<1x8xf32>
    %cst_142 = arith.constant dense<0.000000e+00> : vector<1xf32>
    %420 = vector.multi_reduction <add>, %419, %cst_142 [1] : vector<1x8xf32> to vector<1xf32>
    %421 = vector.shape_cast %420 : vector<1xf32> to vector<1x1xf32>
    %422 = tpu.reciprocal %421 {approx = true} : vector<1x1xf32> -> vector<1x1xf32>
    %423 = vector.broadcast %422 : vector<1x1xf32> to vector<1x8xf32>
    %424 = arith.mulf %419, %423 : vector<1x8xf32>
    %cst_143 = arith.constant dense<0.000000e+00> : vector<1x64xf32>
    %425 = tpu.matmul %424, %234, %cst_143 {dimension_numbers = #tpu.dot_dimension_numbers<[1], [0], [0], [1], [0, 0, 1, 1], [], []>} : vector<1x8xf32>, vector<8x64xf32>, vector<1x64xf32> -> vector<1x64xf32>
    %426 = arith.addf %425, %253 : vector<1x64xf32>
    %427 = vector.broadcast %426 : vector<1x64xf32> to vector<8x64xf32>
    %428 = arith.addf %232, %427 : vector<8x64xf32>
    %429 = math.tanh %428 : vector<8x64xf32>
    %cst_144 = arith.constant dense<0.000000e+00> : vector<1x8xf32>
    %430 = tpu.matmul %252, %429, %cst_144 {dimension_numbers = #tpu.dot_dimension_numbers<[1], [1], [0], [0], [0, 0, 1, 0], [], []>} : vector<1x64xf32>, vector<8x64xf32>, vector<1x8xf32> -> vector<1x8xf32>
    %431 = arith.subf %430, %5 : vector<1x8xf32>
    %cst_145 = arith.constant dense<0xFF800000> : vector<1xf32>
    %432 = vector.multi_reduction <maximumf>, %431, %cst_145 [1] : vector<1x8xf32> to vector<1xf32>
    %433 = vector.shape_cast %432 : vector<1xf32> to vector<1x1xf32>
    %434 = vector.broadcast %433 : vector<1x1xf32> to vector<1x8xf32>
    %435 = arith.subf %431, %434 : vector<1x8xf32>
    %436 = math.exp %435 : vector<1x8xf32>
    %cst_146 = arith.constant dense<0.000000e+00> : vector<1xf32>
    %437 = vector.multi_reduction <add>, %436, %cst_146 [1] : vector<1x8xf32> to vector<1xf32>
    %438 = vector.shape_cast %437 : vector<1xf32> to vector<1x1xf32>
    %439 = vector.broadcast %438 : vector<1x1xf32> to vector<1x8xf32>
    %440 = arith.divf %436, %439 : vector<1x8xf32>
    %c2_147 = arith.constant 2 : index
    %c0_148 = arith.constant 0 : index
    %441 = vector.load %arg6[%c2_147, %c0_148] : memref<4x8xf32, #tpu.memory_space<vmem>>, vector<1x8xf32>
    tpu.vector_store %arg6[%c2_147, %c0_148], %440 {strides = array<i32>} : memref<4x8xf32, #tpu.memory_space<vmem>>, vector<1x8xf32>,
    %442 = vector.broadcast %433 : vector<1x1xf32> to vector<1x8xf32>
    %443 = arith.cmpf oge, %431, %442 : vector<1x8xf32>
    %cst_149 = arith.constant 8.000000e+00 : f32
    %444 = vector.broadcast %cst_149 : f32 to vector<1x8xf32>
    %445 = arith.select %443, %255, %444 : vector<1x8xi1>, vector<1x8xf32>
    %cst_150 = arith.constant dense<0x7F800000> : vector<1xf32>
    %446 = vector.multi_reduction <minimumf>, %445, %cst_150 [1] : vector<1x8xf32> to vector<1xf32>
    %447 = vector.shape_cast %446 : vector<1xf32> to vector<1x1xf32>
    %c2_151 = arith.constant 2 : index
    %c0_152 = arith.constant 0 : index
    %448 = vector.load %arg7[%c2_151, %c0_152] : memref<4x1xf32, #tpu.memory_space<vmem>>, vector<1x1xf32>
    tpu.vector_store %arg7[%c2_151, %c0_152], %447 {strides = array<i32>} : memref<4x1xf32, #tpu.memory_space<vmem>>, vector<1x1xf32>,
    %449 = vector.broadcast %447 : vector<1x1xf32> to vector<1x8xf32>
    %450 = arith.cmpf oeq, %255, %449 : vector<1x8xf32>
    %451 = arith.extui %450 : vector<1x8xi1> to vector<1x8xi32>
    %452 = arith.sitofp %451 : vector<1x8xi32> to vector<1x8xf32>
    %cst_153 = arith.constant dense<0.000000e+00> : vector<1x256xf32>
    %453 = tpu.matmul %452, %244, %cst_153 {dimension_numbers = #tpu.dot_dimension_numbers<[1], [0], [0], [1], [0, 0, 1, 1], [], []>} : vector<1x8xf32>, vector<8x256xf32>, vector<1x256xf32> -> vector<1x256xf32>
    %c0_154 = arith.constant 0 : index
    %c512_155 = arith.constant 512 : index
    %454 = vector.load %arg4[%c0_154, %c512_155] : memref<64x1280xf32, #tpu.memory_space<vmem>>, vector<64x256xf32>
    %cst_156 = arith.constant dense<0.000000e+00> : vector<1x256xf32>
    %455 = tpu.matmul %406, %454, %cst_156 {dimension_numbers = #tpu.dot_dimension_numbers<[1], [0], [0], [1], [0, 0, 1, 1], [], []>} : vector<1x64xf32>, vector<64x256xf32>, vector<1x256xf32> -> vector<1x256xf32>
    %456 = arith.addf %453, %455 : vector<1x256xf32>
    %457 = vector.extract_strided_slice %456 {offsets = [0, 0], sizes = [1, 192], strides = [1, 1]} : vector<1x256xf32> to vector<1x192xf32>
    %458 = arith.negf %457 : vector<1x192xf32>
    %459 = math.exp %458 : vector<1x192xf32>
    %cst_157 = arith.constant 1.000000e+00 : f32
    %460 = vector.broadcast %cst_157 : f32 to vector<1x192xf32>
    %461 = arith.addf %460, %459 : vector<1x192xf32>
    %462 = arith.divf %460, %461 : vector<1x192xf32>
    %463 = vector.extract_strided_slice %462 {offsets = [0, 64], sizes = [1, 64], strides = [1, 1]} : vector<1x192xf32> to vector<1x64xf32>
    %464 = arith.mulf %463, %403 : vector<1x64xf32>
    %465 = vector.extract_strided_slice %462 {offsets = [0, 0], sizes = [1, 64], strides = [1, 1]} : vector<1x192xf32> to vector<1x64xf32>
    %466 = vector.extract_strided_slice %456 {offsets = [0, 192], sizes = [1, 64], strides = [1, 1]} : vector<1x256xf32> to vector<1x64xf32>
    %467 = math.tanh %466 : vector<1x64xf32>
    %468 = arith.mulf %465, %467 : vector<1x64xf32>
    %469 = arith.addf %464, %468 : vector<1x64xf32>
    %470 = vector.extract_strided_slice %462 {offsets = [0, 128], sizes = [1, 64], strides = [1, 1]} : vector<1x192xf32> to vector<1x64xf32>
    %471 = math.tanh %469 : vector<1x64xf32>
    %472 = arith.mulf %470, %471 : vector<1x64xf32>
    %c0_158 = arith.constant 0 : index
    %c768_159 = arith.constant 768 : index
    %473 = vector.load %arg4[%c0_158, %c768_159] : memref<64x1280xf32, #tpu.memory_space<vmem>>, vector<64x64xf32>
    %cst_160 = arith.constant dense<0.000000e+00> : vector<1x64xf32>
    %474 = tpu.matmul %472, %473, %cst_160 {dimension_numbers = #tpu.dot_dimension_numbers<[1], [0], [0], [1], [0, 0, 1, 1], [], []>} : vector<1x64xf32>, vector<64x64xf32>, vector<1x64xf32> -> vector<1x64xf32>
    %475 = arith.addf %474, %251 : vector<1x64xf32>
    %476 = vector.broadcast %475 : vector<1x64xf32> to vector<8x64xf32>
    %477 = arith.addf %227, %476 : vector<8x64xf32>
    %478 = math.tanh %477 : vector<8x64xf32>
    %cst_161 = arith.constant dense<0.000000e+00> : vector<1x8xf32>
    %479 = tpu.matmul %250, %478, %cst_161 {dimension_numbers = #tpu.dot_dimension_numbers<[1], [1], [0], [0], [0, 0, 1, 0], [], []>} : vector<1x64xf32>, vector<8x64xf32>, vector<1x8xf32> -> vector<1x8xf32>
    %480 = arith.subf %479, %5 : vector<1x8xf32>
    %cst_162 = arith.constant dense<0xFF800000> : vector<1xf32>
    %481 = vector.multi_reduction <maximumf>, %480, %cst_162 [1] : vector<1x8xf32> to vector<1xf32>
    %482 = vector.shape_cast %481 : vector<1xf32> to vector<1x1xf32>
    %483 = vector.broadcast %482 : vector<1x1xf32> to vector<1x8xf32>
    %484 = arith.subf %480, %483 : vector<1x8xf32>
    %485 = math.exp %484 : vector<1x8xf32>
    %cst_163 = arith.constant dense<0.000000e+00> : vector<1xf32>
    %486 = vector.multi_reduction <add>, %485, %cst_163 [1] : vector<1x8xf32> to vector<1xf32>
    %487 = vector.shape_cast %486 : vector<1xf32> to vector<1x1xf32>
    %488 = tpu.reciprocal %487 {approx = true} : vector<1x1xf32> -> vector<1x1xf32>
    %489 = vector.broadcast %488 : vector<1x1xf32> to vector<1x8xf32>
    %490 = arith.mulf %485, %489 : vector<1x8xf32>
    %cst_164 = arith.constant dense<0.000000e+00> : vector<1x64xf32>
    %491 = tpu.matmul %490, %234, %cst_164 {dimension_numbers = #tpu.dot_dimension_numbers<[1], [0], [0], [1], [0, 0, 1, 1], [], []>} : vector<1x8xf32>, vector<8x64xf32>, vector<1x64xf32> -> vector<1x64xf32>
    %492 = arith.addf %491, %253 : vector<1x64xf32>
    %493 = vector.broadcast %492 : vector<1x64xf32> to vector<8x64xf32>
    %494 = arith.addf %232, %493 : vector<8x64xf32>
    %495 = math.tanh %494 : vector<8x64xf32>
    %cst_165 = arith.constant dense<0.000000e+00> : vector<1x8xf32>
    %496 = tpu.matmul %252, %495, %cst_165 {dimension_numbers = #tpu.dot_dimension_numbers<[1], [1], [0], [0], [0, 0, 1, 0], [], []>} : vector<1x64xf32>, vector<8x64xf32>, vector<1x8xf32> -> vector<1x8xf32>
    %497 = arith.subf %496, %5 : vector<1x8xf32>
    %cst_166 = arith.constant dense<0xFF800000> : vector<1xf32>
    %498 = vector.multi_reduction <maximumf>, %497, %cst_166 [1] : vector<1x8xf32> to vector<1xf32>
    %499 = vector.shape_cast %498 : vector<1xf32> to vector<1x1xf32>
    %500 = vector.broadcast %499 : vector<1x1xf32> to vector<1x8xf32>
    %501 = arith.subf %497, %500 : vector<1x8xf32>
    %502 = math.exp %501 : vector<1x8xf32>
    %cst_167 = arith.constant dense<0.000000e+00> : vector<1xf32>
    %503 = vector.multi_reduction <add>, %502, %cst_167 [1] : vector<1x8xf32> to vector<1xf32>
    %504 = vector.shape_cast %503 : vector<1xf32> to vector<1x1xf32>
    %505 = vector.broadcast %504 : vector<1x1xf32> to vector<1x8xf32>
    %506 = arith.divf %502, %505 : vector<1x8xf32>
    %c3_168 = arith.constant 3 : index
    %c0_169 = arith.constant 0 : index
    %507 = vector.load %arg6[%c3_168, %c0_169] : memref<4x8xf32, #tpu.memory_space<vmem>>, vector<1x8xf32>
    tpu.vector_store %arg6[%c3_168, %c0_169], %506 {strides = array<i32>} : memref<4x8xf32, #tpu.memory_space<vmem>>, vector<1x8xf32>,
    %508 = vector.broadcast %499 : vector<1x1xf32> to vector<1x8xf32>
    %509 = arith.cmpf oge, %497, %508 : vector<1x8xf32>
    %cst_170 = arith.constant 8.000000e+00 : f32
    %510 = vector.broadcast %cst_170 : f32 to vector<1x8xf32>
    %511 = arith.select %509, %255, %510 : vector<1x8xi1>, vector<1x8xf32>
    %cst_171 = arith.constant dense<0x7F800000> : vector<1xf32>
    %512 = vector.multi_reduction <minimumf>, %511, %cst_171 [1] : vector<1x8xf32> to vector<1xf32>
    %513 = vector.shape_cast %512 : vector<1xf32> to vector<1x1xf32>
    %c3_172 = arith.constant 3 : index
    %c0_173 = arith.constant 0 : index
    %514 = vector.load %arg7[%c3_172, %c0_173] : memref<4x1xf32, #tpu.memory_space<vmem>>, vector<1x1xf32>
    tpu.vector_store %arg7[%c3_172, %c0_173], %513 {strides = array<i32>} : memref<4x1xf32, #tpu.memory_space<vmem>>, vector<1x1xf32>,
    return
  }
}

</mosaic_0001>

<bundles_post_ra>
// kernel: masked_pointer_forward.1
= control target key start
LH: loop header
LB: loop body
LE: loop exit
PB: predicated region body
PF: predicated region fallthrough
CT: control target
= control target key end

     0   :  { %17 = vsyncpa [#allocation3], 0  ;;  %vm47_vm0 = vcmask 1041408   ;;  %v4627_v2 = vmov 0.0   ;;  %vm4628_vm1 = vmmov 0   ;;  %vm43_vm2 = vcmask 15360   ;;  %s5852_s0 = inlined_call_operand.vmem [shape: f32[8,2], index: 0, kind: input, shape index: {}]   ;;  %s5853_s1 = inlined_call_operand.vmem [shape: f32[1,8], index: 1, kind: input, shape index: {}]   ;;  %s5854_s2 = inlined_call_operand.vmem [shape: f32[2,256], index: 2, kind: input, shape index: {}]   ;;  %s5855_s3 = inlined_call_operand.vmem [shape: f32[32,256], index: 3, kind: input, shape index: {}]   ;;  %s5856_s4 = inlined_call_operand.vmem [shape: f32[64,1280], index: 4, kind: input, shape index: {}]   ;;  %s5857_s5 = inlined_call_operand.vmem [shape: f32[1,1536], index: 5, kind: input, shape index: {}]   ;;  %s5858_s6 = inlined_call_operand.vmem [shape: f32[4,8], index: 6, kind: output, shape index: {0}]   ;;  %s5859_s7 = inlined_call_operand.vmem [shape: f32[4,1], index: 7, kind: output, shape index: {1}]   ;;  %s5860_s8 = inlined_call_operand.hbm [shape: f32[8,64], index: 8, kind: output, shape index: {2}]   ;;  %s5861_s9 = inlined_call_operand.vmem [shape: f32[1,32], index: 9, kind: output, shape index: {3}]   ;;  %s5862_s10 = inlined_call_operand.vmem [shape: f32[1,32], index: 10, kind: output, shape index: {4}]   ;;  %s5863_s11 = inlined_call_operand.hbm [shape: f32[8,32], index: 11, kind: output, shape index: {5}]  }
   0x1   :  { %v35_v0 = vld [vmem:[%s5854_s2] sm:$0x3]  ;;  %4175 = vmatprep.subr.mxu0 %v4627_v2  ;;  %4177 = vmatprep.mubr.msk.f32.mxu0 %vm4628_vm1, %v4627_v2  ;;  %v130_v3 = vld [vmem:[%s5855_s3 + $0x38] sm:$0xff]  ;;  %v129_v4 = vld [vmem:[%s5855_s3 + $0x30] sm:$0xff] }
   0x2   :  { %v31_v1 = vld [vmem:[%s5852_s0] sm:$0xff]  ;;  %v128_v5 = vld [vmem:[%s5855_s3 + $0x28] sm:$0xff]  ;;  %4176 = vmatpush3.msk.msra.mxu0 %vm47_vm0, %v35_v0  ;;  %170 = vmatprep.subr.mxu1 %v130_v3  ;;  %v126_v7 = vld [vmem:[%s5855_s3 + $0x18] sm:$0xff] }
   0x3   :  { %v127_v6 = vld [vmem:[%s5855_s3 + $0x20] sm:$0xff]  ;;  %4178 = vmatmul.mubr.msk.f32.vlgmr.msra.gmra.mxu0 %vm43_vm2, %v31_v1  ;;  %171 = vmatpush1.msra.mxu1 %v129_v4 }
   0x4   :  { %18 = vsyncpa [#allocation5], 0  ;;  %172 = vmatprep.subr.mxu1 %v128_v5  ;;  %210 = vmatprep.mubr.f32.mxu1 %v4627_v2  ;;  %v125_v8 = vld [vmem:[%s5855_s3 + $0x10] sm:$0xff]  ;;  %v124_v9 = vld [vmem:[%s5855_s3 + $0x8] sm:$0xff]  ;;  %vm121_vm3 = vcmask 261120   ;;  %v133_v31 = vlaneseq  ;;  %vm225_vm5 = vcmask 64512  }
   0x5   :  { %173 = vmatpush1.msra.mxu1 %v127_v6  ;;  %293 = vmatprep.mubr.f32.mxu0 %v4627_v2  ;;  %v123_v10 = vld [vmem:[%s5855_s3] sm:$0xff]  ;;  %v4738_v15 = vld [vmem:[%s5856_s4 + $0x238] sm:$0xff]  ;;  %v4743_v16 = vld [vmem:[%s5856_s4 + $0x230] sm:$0xff]  ;;  %s4629_s14 = smov 64   ;;  %vm430_vm8 = vcmask 253952   ;;  %vm432_vm9 = vcmask 516352  }
   0x6   :  { %174 = vmatprep.subr.mxu1 %v126_v7  ;;  %v4000_v11 = vld [vmem:[%s5857_s5] ss:$0 sm:$0xff]  ;;  %v4749_v17 = vld [vmem:[%s5856_s4 + $0x1e8] sm:$0xff]  ;;  %v4761_v19 = vld [vmem:[%s5856_s4 + $0x198] sm:$0xff]  ;;  %v4832_v32 = vshrl.u32 %v133_v31, 7  ;;  %v4841_v36 = vand.u32 127, %v133_v31 }
   0x7   :  { %175 = vmatpush1.msra.mxu1 %v125_v8  ;;  %v4755_v18 = vld [vmem:[%s5856_s4 + $0x1e0] sm:$0xff]  ;;  %v4767_v20 = vld [vmem:[%s5856_s4 + $0x190] sm:$0xff]  ;;  %v4773_v21 = vld [vmem:[%s5856_s4 + $0x148] sm:$0xff]  ;;  %vm323_vm10 = vcmask 523264   ;;  %vm549_vm11 = vcmask 254977   ;;  %vm551_vm12 = vcmask 517377  }
   0x8   :  { %176 = vmatprep.subr.mxu1 %v124_v9  ;;  %v4779_v22 = vld [vmem:[%s5856_s4 + $0x140] sm:$0xff]  ;;  %v4785_v23 = vld [vmem:[%s5856_s4 + $0xf8] sm:$0xff]  ;;  %v4791_v24 = vld [vmem:[%s5856_s4 + $0xf0] sm:$0xff]  ;;  %v139_v33 = vsub.s32 1, %v4832_v32  ;;  %v4836_v34 = vsub.s32 0, %v4832_v32  ;;  %v221_v37 = vsub.s32 7, %v4832_v32 }
   0x9   :  { %177 = vmatpush1.msra.mxu1 %v123_v10  ;;  %v4797_v25 = vld [vmem:[%s5856_s4 + $0xa8] sm:$0xff]  ;;  %v4803_v26 = vld [vmem:[%s5856_s4 + $0xa0] sm:$0xff]  ;;  %v4809_v27 = vld [vmem:[%s5856_s4 + $0x58] sm:$0xff]  ;;  %v300_v45 = vadd.s32 128, %v4841_v36  ;;  %v301_v54 = vand.u32 63, %v4841_v36  ;;  %vm669_vm13 = vcmask 256002  }
   0xa   :  { %453 = vmatprep.subr.mxu1 %v4738_v15  ;;  %v4815_v28 = vld [vmem:[%s5856_s4 + $0x50] sm:$0xff]  ;;  %v4821_v29 = vld [vmem:[%s5856_s4 + $0x8] sm:$0xff]  ;;  %v4827_v30 = vld [vmem:[%s5856_s4] sm:$0xff]  ;;  %vm222_vm4 = vcmp.eq.s32.totalorder %v4841_v36, %v221_v37  ;;  %vm671_vm14 = vcmask 518402   ;;  %vm789_vm15 = vcmask 257027   ;;  %s4631_s24 = smov 96  }
   0xb   :  { %v131_v35 = vld [vmem:[%s5857_s5 + $0x1] sm:$0x3]  ;;  %v4004_v44 = vsel %vm222_vm4, 1.0, %v4627_v2  ;;  %v302_v47 = vand.u32 63, %v300_v45  ;;  %vm303_vm7 = vcmp.lt.s32.totalorder %v301_v54, 32  ;;  %vm909_vm4 = vcmask 258052  }
   0xc   :  { %v140_v38 = vrot.slane %v131_v35, %v139_v33  ;;  %v136_v39 = vrot.slane %v131_v35, %v4836_v34  ;;  %s4632_s25 = smov [#allocation2]   ;;  %s4633_s26 = smov [#allocation4]  }
   0xd   :  { %vm304_vm6 = vcmp.lt.s32.totalorder %v302_v47, 32  ;;  %s3980_s27 = sshll.u32 %s4633_s26, 4  ;;  %s3981_s27 = int_to_ptr.vmem [resolvable:$true] %s3980_s27 }
  0xc3   :  { %v117_v12 = vpop.f32.mrf.mxu0 }
  0xc4   :  { %v118_v13 = vadd.f32 %v4000_v11, %v117_v12 }
  0xc5   :  { %v4179_v14 = vpop.f32.mrf.mxu0 }
  0xc6   :  { %4003 = vmatmul.mubr.msk.f32.vlgmr.msra.gmra.mxu1 %vm121_vm3, %v118_v13  ;;  %122 = vst.msk [vmem:[#allocation4] sm:$0xff] %vm121_vm3, %v118_v13  ;;  %vm791_vm3 = vcmask 519427  }
  0xc7   :  { %501 = vmatprep.mubr.f32.mxu1 %v4627_v2  ;;  %454 = vmatpush1.msra.mxu1 %v4743_v16 }
  0xc8   :  { %455 = vmatprep.subr.mxu1 %v4749_v17 }
  0xc9   :  { %456 = vmatpush1.msra.mxu1 %v4755_v18 }
  0xca   :  { %457 = vmatprep.subr.mxu1 %v4761_v19 }
  0xcb   :  { %458 = vmatpush1.msra.mxu1 %v4767_v20 }
  0xcc   :  { %459 = vmatprep.subr.mxu1 %v4773_v21 }
  0xcd   :  { %460 = vmatpush1.msra.mxu1 %v4779_v22 }
  0xce   :  { %461 = vmatprep.subr.mxu1 %v4785_v23 }
  0xcf   :  { %462 = vmatpush1.msra.mxu1 %v4791_v24 }
  0xd0   :  { %463 = vmatprep.subr.mxu1 %v4797_v25 }
  0xd1   :  { %464 = vmatpush1.msra.mxu1 %v4803_v26 }
  0xd2   :  { %465 = vmatprep.subr.mxu1 %v4809_v27 }
  0xd3   :  { %466 = vmatpush1.msra.mxu1 %v4815_v28 }
  0xd4   :  { %467 = vmatprep.subr.mxu1 %v4821_v29 }
  0xd5   :  { %468 = vmatpush1.msra.mxu1 %v4827_v30 }
  0xd6   :  { %693 = vmatprep.subr.mxu1 %v4738_v15 }
 0x186   :  { %v212_v40 = vpop.f32.mrf.mxu1 }
 0x187   :  { %v213_v43 = vadd.f32 %v212_v40, %v136_v39 }
 0x188   :  { %v214_v41 = vpop.f32.mrf.mxu1 }
 0x189   :  { %v215_v42 = vadd.f32 %v214_v41, %v140_v38 }
 0x18b   :  { %259 = vmatprep.subr.mxu0 %v215_v42 }
 0x18c   :  { %260 = vmatpush1.msra.mxu0 %v213_v43 }
 0x18d   :  { %4005 = vmatmul.mubr.msk.f32.vlgmr.msra.gmra.mxu0 %vm225_vm5, %v4004_v44  ;;  %343 = vmatprep.subr.mxu0 %v4738_v15 }
 0x18e   :  { %344 = vmatpush1.msra.mxu0 %v4743_v16  ;;  %391 = vmatprep.mubr.f32.mxu0 %v4627_v2 }
 0x18f   :  { %345 = vmatprep.subr.mxu0 %v4749_v17 }
 0x190   :  { %346 = vmatpush1.msra.mxu0 %v4755_v18 }
 0x191   :  { %347 = vmatprep.subr.mxu0 %v4761_v19 }
 0x192   :  { %348 = vmatpush1.msra.mxu0 %v4767_v20 }
 0x193   :  { %349 = vmatprep.subr.mxu0 %v4773_v21 }
 0x194   :  { %350 = vmatpush1.msra.mxu0 %v4779_v22 }
 0x195   :  { %351 = vmatprep.subr.mxu0 %v4785_v23 }
 0x196   :  { %352 = vmatpush1.msra.mxu0 %v4791_v24 }
 0x197   :  { %353 = vmatprep.subr.mxu0 %v4797_v25 }
 0x198   :  { %354 = vmatpush1.msra.mxu0 %v4803_v26 }
 0x199   :  { %355 = vmatprep.subr.mxu0 %v4809_v27 }
 0x19a   :  { %356 = vmatpush1.msra.mxu0 %v4815_v28 }
 0x19b   :  { %357 = vmatprep.subr.mxu0 %v4821_v29 }
 0x19c   :  { %358 = vmatpush1.msra.mxu0 %v4827_v30 }
 0x19d   :  { %392 = vmatmul.mubr.f32.vlgmr.msra.gmra.mxu0 %v4627_v2  ;;  %573 = vmatprep.subr.mxu0 %v4738_v15 }
 0x19e   :  { %574 = vmatpush1.msra.mxu0 %v4743_v16  ;;  %621 = vmatprep.mubr.f32.mxu0 %v4627_v2 }
 0x19f   :  { %575 = vmatprep.subr.mxu0 %v4749_v17 }
 0x1a0   :  { %576 = vmatpush1.msra.mxu0 %v4755_v18 }
 0x1a1   :  { %577 = vmatprep.subr.mxu0 %v4761_v19 }
 0x1a2   :  { %578 = vmatpush1.msra.mxu0 %v4767_v20 }
 0x1a3   :  { %579 = vmatprep.subr.mxu0 %v4773_v21 }
 0x1a4   :  { %580 = vmatpush1.msra.mxu0 %v4779_v22 }
 0x1a5   :  { %581 = vmatprep.subr.mxu0 %v4785_v23 }
 0x1a6   :  { %582 = vmatpush1.msra.mxu0 %v4791_v24 }
 0x1a7   :  { %583 = vmatprep.subr.mxu0 %v4797_v25 }
 0x1a8   :  { %584 = vmatpush1.msra.mxu0 %v4803_v26 }
 0x1a9   :  { %585 = vmatprep.subr.mxu0 %v4809_v27 }
 0x1aa   :  { %586 = vmatpush1.msra.mxu0 %v4815_v28 }
 0x1ab   :  { %587 = vmatprep.subr.mxu0 %v4821_v29 }
 0x1ac   :  { %588 = vmatpush1.msra.mxu0 %v4827_v30 }
 0x1ad   :  { %813 = vmatprep.subr.mxu0 %v4738_v15 }
 0x24d   :  { %v295_v46 = vpop.f32.mrf.mxu0 }
 0x24e   :  { %v4892_v55 = vsel %vm303_vm7, %v213_v43, %v295_v46  ;;  %vm1029_vm7 = vcmask 259077  }
 0x24f   :  { %v297_v48 = vpop.f32.mrf.mxu0 }
 0x250   :  { %v4887_v50 = vsel %vm304_vm6, %v215_v42, %v297_v48  ;;  %vm911_vm6 = vcmask 520452  }
 0x25d   :  { %v393_v49 = vpop.f32.mrf.mxu0 }
 0x25e   :  { %v398_v56 = vadd.f32 %v393_v49, %v4892_v55 }
 0x25f   :  { %v395_v51 = vpop.f32.mrf.mxu0 }
 0x260   :  { %v399_v52 = vadd.f32 %v395_v51, %v4887_v50  ;;  %v4006_v57 = vmul.f32 -1.442695, %v398_v56 }
 0x262   :  { %4390 = vtanh.f32 %v399_v52  ;;  %v4007_v4 = vmul.f32 -1.442695, %v399_v52 }
 0x263   :  { %4392 = vpow2.f32 %v4006_v57 }
 0x26f   :  { %v4391_v53 = vpop.eup %4390 }
 0x270   :  { %415 = vrot.lane.b32.xlu0 %v4391_v53, %s4629_s14  ;;  %v4393_v58 = vpop.eup %4392 }
 0x271   :  { %v406_v59 = vadd.f32 1.0, %v4393_v58 }
 0x273   :  { %4394 = vrcp.f32 %v406_v59 }
 0x280   :  { %v4395_v60 = vpop.eup %4394 }
 0x281   :  { %v413_v63 = vmul.f32 0.0, %v4395_v60 }
 0x2e2   :  { %v416_v61 = vpop.permute.xlu0 %415 }
 0x2e3   :  { %v418_v62 = vmul.f32 %v4395_v60, %v416_v61 }
 0x2e5   :  { %420 = vrot.lane.b32.xlu0 %v418_v62, %s4629_s14 }
 0x357   :  { %v421_v0 = vpop.permute.xlu0 %420 }
 0x358   :  { %v423_v1 = vadd.f32 %v421_v0, %v413_v63 }
 0x35a   :  { %4396 = vtanh.f32 %v423_v1  ;;  %v530_v43 = vrot.slane %v423_v1, 7 }
 0x35b   :  { %4398 = vpow2.f32 %v4007_v4 }
 0x367   :  { %v4397_v3 = vpop.eup %4396 }
 0x368   :  { %426 = vrot.lane.b32.xlu1 %v4397_v3, %s4629_s14  ;;  %v4399_v5 = vpop.eup %4398 }
 0x369   :  { %v407_v6 = vadd.f32 1.0, %v4399_v5 }
 0x36b   :  { %4400 = vrcp.f32 %v407_v6 }
 0x378   :  { %v4401_v7 = vpop.eup %4400 }
 0x3da   :  { %v427_v8 = vpop.permute.xlu1 %426 }
 0x3db   :  { %v429_v9 = vmul.f32 %v4401_v7, %v427_v8 }
 0x3dd   :  { %431 = vst.msk [vmem:[#allocation2] sm:$0x1] %vm430_vm8, %v429_v9  ;;  %4008 = vmatmul.mubr.msk.f32.vlgmr.msra.gmra.mxu1 %vm323_vm10, %v429_v9  ;;  %vm1031_vm8 = vcmask 521477  }
 0x3de   :  { %433 = vst.msk [vmem:[#allocation2 + $0x7] sm:$0x1] %vm432_vm9, %v429_v9  ;;  %694 = vmatpush1.msra.mxu1 %v4743_v16  ;;  %741 = vmatprep.mubr.f32.mxu1 %v4627_v2  ;;  %vm1149_vm9 = vcmask 260102  }
 0x3df   :  { %695 = vmatprep.subr.mxu1 %v4749_v17 }
 0x3e0   :  { %696 = vmatpush1.msra.mxu1 %v4755_v18 }
 0x3e1   :  { %697 = vmatprep.subr.mxu1 %v4761_v19 }
 0x3e2   :  { %698 = vmatpush1.msra.mxu1 %v4767_v20 }
 0x3e3   :  { %699 = vmatprep.subr.mxu1 %v4773_v21 }
 0x3e4   :  { %700 = vmatpush1.msra.mxu1 %v4779_v22 }
 0x3e5   :  { %701 = vmatprep.subr.mxu1 %v4785_v23 }
 0x3e6   :  { %702 = vmatpush1.msra.mxu1 %v4791_v24 }
 0x3e7   :  { %703 = vmatprep.subr.mxu1 %v4797_v25 }
 0x3e8   :  { %704 = vmatpush1.msra.mxu1 %v4803_v26 }
 0x3e9   :  { %705 = vmatprep.subr.mxu1 %v4809_v27 }
 0x3ea   :  { %706 = vmatpush1.msra.mxu1 %v4815_v28 }
 0x3eb   :  { %707 = vmatprep.subr.mxu1 %v4821_v29 }
 0x3ec   :  { %708 = vmatpush1.msra.mxu1 %v4827_v30 }
 0x3ed   :  { %933 = vmatprep.subr.mxu1 %v4738_v15 }
 0x49d   :  { %v503_v10 = vpop.f32.mrf.mxu1 }
 0x49e   :  { %v510_v31 = vrot.slane %v503_v10, 7 }
 0x49f   :  { %v505_v11 = vpop.f32.mrf.mxu1 }
 0x4a0   :  { %v511_v12 = vrot.slane %v505_v11, 7  ;;  %v514_v35 = vadd.f32 %v510_v31, %v4892_v55 }
 0x4a2   :  { %v515_v13 = vadd.f32 %v511_v12, %v4887_v50  ;;  %v4009_v37 = vmul.f32 -1.442695, %v514_v35 }
 0x4a4   :  { %4402 = vtanh.f32 %v515_v13  ;;  %v4010_v48 = vmul.f32 -1.442695, %v515_v13 }
 0x4a5   :  { %4404 = vpow2.f32 %v4009_v37 }
 0x4b1   :  { %v4403_v14 = vpop.eup %4402 }
 0x4b2   :  { %534 = vrot.lane.b32.xlu1 %v4403_v14, %s4629_s14  ;;  %v4405_v38 = vpop.eup %4404 }
 0x4b3   :  { %v522_v39 = vadd.f32 1.0, %v4405_v38 }
 0x4b5   :  { %4406 = vrcp.f32 %v522_v39 }
 0x4c2   :  { %v4407_v40 = vpop.eup %4406 }
 0x4c3   :  { %v532_v44 = vmul.f32 %v4407_v40, %v530_v43 }
 0x524   :  { %v535_v41 = vpop.permute.xlu1 %534 }
 0x525   :  { %v537_v42 = vmul.f32 %v4407_v40, %v535_v41 }
 0x527   :  { %539 = vrot.lane.b32.xlu0 %v537_v42, %s4629_s14 }
 0x599   :  { %v540_v45 = vpop.permute.xlu0 %539 }
 0x59a   :  { %v542_v46 = vadd.f32 %v540_v45, %v532_v44 }
 0x59c   :  { %4408 = vtanh.f32 %v542_v46  ;;  %v650_v7 = vrot.slane %v542_v46, 7 }
 0x59d   :  { %4410 = vpow2.f32 %v4010_v48 }
 0x5a9   :  { %v4409_v47 = vpop.eup %4408 }
 0x5aa   :  { %545 = vrot.lane.b32.xlu1 %v4409_v47, %s4629_s14  ;;  %v4411_v49 = vpop.eup %4410 }
 0x5ab   :  { %v523_v51 = vadd.f32 1.0, %v4411_v49 }
 0x5ad   :  { %4412 = vrcp.f32 %v523_v51 }
 0x5ba   :  { %v4413_v52 = vpop.eup %4412 }
 0x61c   :  { %v546_v53 = vpop.permute.xlu1 %545 }
 0x61d   :  { %v548_v54 = vmul.f32 %v4413_v52, %v546_v53 }
 0x61f   :  { %550 = vst.msk [vmem:[#allocation2] sm:$0x2] %vm549_vm11, %v548_v54  ;;  %v554_v56 = vrot.slane %v548_v54, 1  ;;  %vm1151_vm11 = vcmask 522502  }
 0x620   :  { %552 = vst.msk [vmem:[#allocation2 + $0x5] sm:$0x2] %vm551_vm12, %v548_v54  ;;  %vm1269_vm12 = vcmask 261127  }
 0x621   :  { %4011 = vmatmul.mubr.msk.f32.vlgmr.msra.gmra.mxu0 %vm323_vm10, %v554_v56 }
 0x622   :  { %814 = vmatpush1.msra.mxu0 %v4743_v16  ;;  %861 = vmatprep.mubr.f32.mxu0 %v4627_v2 }
 0x623   :  { %815 = vmatprep.subr.mxu0 %v4749_v17 }
 0x624   :  { %816 = vmatpush1.msra.mxu0 %v4755_v18 }
 0x625   :  { %817 = vmatprep.subr.mxu0 %v4761_v19 }
 0x626   :  { %818 = vmatpush1.msra.mxu0 %v4767_v20 }
 0x627   :  { %819 = vmatprep.subr.mxu0 %v4773_v21 }
 0x628   :  { %820 = vmatpush1.msra.mxu0 %v4779_v22 }
 0x629   :  { %821 = vmatprep.subr.mxu0 %v4785_v23 }
 0x62a   :  { %822 = vmatpush1.msra.mxu0 %v4791_v24 }
 0x62b   :  { %823 = vmatprep.subr.mxu0 %v4797_v25 }
 0x62c   :  { %824 = vmatpush1.msra.mxu0 %v4803_v26 }
 0x62d   :  { %825 = vmatprep.subr.mxu0 %v4809_v27 }
 0x62e   :  { %826 = vmatpush1.msra.mxu0 %v4815_v28 }
 0x62f   :  { %827 = vmatprep.subr.mxu0 %v4821_v29 }
 0x630   :  { %828 = vmatpush1.msra.mxu0 %v4827_v30 }
 0x631   :  { %1053 = vmatprep.subr.mxu0 %v4738_v15 }
 0x6e1   :  { %v623_v57 = vpop.f32.mrf.mxu0 }
 0x6e2   :  { %v630_v62 = vrot.slane %v623_v57, 6 }
 0x6e3   :  { %v625_v58 = vpop.f32.mrf.mxu0 }
 0x6e4   :  { %v631_v59 = vrot.slane %v625_v58, 6  ;;  %v634_v63 = vadd.f32 %v630_v62, %v4892_v55 }
 0x6e6   :  { %v635_v60 = vadd.f32 %v631_v59, %v4887_v50  ;;  %v4012_v0 = vmul.f32 -1.442695, %v634_v63 }
 0x6e8   :  { %4414 = vtanh.f32 %v635_v60  ;;  %v4013_v12 = vmul.f32 -1.442695, %v635_v60 }
 0x6e9   :  { %4416 = vpow2.f32 %v4012_v0 }
 0x6f5   :  { %v4415_v61 = vpop.eup %4414 }
 0x6f6   :  { %654 = vrot.lane.b32.xlu0 %v4415_v61, %s4629_s14  ;;  %v4417_v1 = vpop.eup %4416 }
 0x6f7   :  { %v642_v3 = vadd.f32 1.0, %v4417_v1 }
 0x6f9   :  { %4418 = vrcp.f32 %v642_v3 }
 0x706   :  { %v4419_v4 = vpop.eup %4418 }
 0x707   :  { %v652_v8 = vmul.f32 %v4419_v4, %v650_v7 }
 0x768   :  { %v655_v5 = vpop.permute.xlu0 %654 }
 0x769   :  { %v657_v6 = vmul.f32 %v4419_v4, %v655_v5 }
 0x76b   :  { %659 = vrot.lane.b32.xlu1 %v657_v6, %s4629_s14 }
 0x7dd   :  { %v660_v9 = vpop.permute.xlu1 %659 }
 0x7de   :  { %v662_v10 = vadd.f32 %v660_v9, %v652_v8 }
 0x7e0   :  { %4420 = vtanh.f32 %v662_v10  ;;  %v770_v52 = vrot.slane %v662_v10, 7 }
 0x7e1   :  { %4422 = vpow2.f32 %v4013_v12 }
 0x7ed   :  { %v4421_v11 = vpop.eup %4420 }
 0x7ee   :  { %665 = vrot.lane.b32.xlu0 %v4421_v11, %s4629_s14  ;;  %v4423_v13 = vpop.eup %4422 }
 0x7ef   :  { %v643_v14 = vadd.f32 1.0, %v4423_v13 }
 0x7f1   :  { %4424 = vrcp.f32 %v643_v14 }
 0x7fe   :  { %v4425_v31 = vpop.eup %4424 }
 0x860   :  { %v666_v35 = vpop.permute.xlu0 %665 }
 0x861   :  { %v668_v37 = vmul.f32 %v4425_v31, %v666_v35 }
 0x863   :  { %670 = vst.msk [vmem:[#allocation2] sm:$0x4] %vm669_vm13, %v668_v37  ;;  %v674_v38 = vrot.slane %v668_v37, 2  ;;  %vm1271_vm13 = vcmask 523527  }
 0x864   :  { %672 = vst.msk [vmem:[#allocation2 + $0x3] sm:$0x4] %vm671_vm14, %v668_v37  ;;  %vm2343_vm14 = vcmask 0  }
 0x865   :  { %4014 = vmatmul.mubr.msk.f32.vlgmr.msra.gmra.mxu1 %vm323_vm10, %v674_v38 }
 0x866   :  { %934 = vmatpush1.msra.mxu1 %v4743_v16  ;;  %981 = vmatprep.mubr.f32.mxu1 %v4627_v2 }
 0x867   :  { %935 = vmatprep.subr.mxu1 %v4749_v17 }
 0x868   :  { %936 = vmatpush1.msra.mxu1 %v4755_v18 }
 0x869   :  { %937 = vmatprep.subr.mxu1 %v4761_v19 }
 0x86a   :  { %938 = vmatpush1.msra.mxu1 %v4767_v20 }
 0x86b   :  { %939 = vmatprep.subr.mxu1 %v4773_v21 }
 0x86c   :  { %940 = vmatpush1.msra.mxu1 %v4779_v22 }
 0x86d   :  { %941 = vmatprep.subr.mxu1 %v4785_v23 }
 0x86e   :  { %942 = vmatpush1.msra.mxu1 %v4791_v24 }
 0x86f   :  { %943 = vmatprep.subr.mxu1 %v4797_v25 }
 0x870   :  { %944 = vmatpush1.msra.mxu1 %v4803_v26 }
 0x871   :  { %945 = vmatprep.subr.mxu1 %v4809_v27 }
 0x872   :  { %946 = vmatpush1.msra.mxu1 %v4815_v28 }
 0x873   :  { %947 = vmatprep.subr.mxu1 %v4821_v29 }
 0x874   :  { %948 = vmatpush1.msra.mxu1 %v4827_v30 }
 0x875   :  { %1173 = vmatprep.subr.mxu1 %v4738_v15 }
 0x925   :  { %v743_v39 = vpop.f32.mrf.mxu1 }
 0x926   :  { %v750_v44 = vrot.slane %v743_v39, 5 }
 0x927   :  { %v745_v40 = vpop.f32.mrf.mxu1 }
 0x928   :  { %v751_v41 = vrot.slane %v745_v40, 5  ;;  %v754_v45 = vadd.f32 %v750_v44, %v4892_v55 }
 0x92a   :  { %v755_v42 = vadd.f32 %v751_v41, %v4887_v50  ;;  %v4015_v46 = vmul.f32 -1.442695, %v754_v45 }
 0x92c   :  { %4426 = vtanh.f32 %v755_v42  ;;  %v4016_v58 = vmul.f32 -1.442695, %v755_v42 }
 0x92d   :  { %4428 = vpow2.f32 %v4015_v46 }
 0x939   :  { %v4427_v43 = vpop.eup %4426 }
 0x93a   :  { %774 = vrot.lane.b32.xlu1 %v4427_v43, %s4629_s14  ;;  %v4429_v47 = vpop.eup %4428 }
 0x93b   :  { %v762_v48 = vadd.f32 1.0, %v4429_v47 }
 0x93d   :  { %4430 = vrcp.f32 %v762_v48 }
 0x94a   :  { %v4431_v49 = vpop.eup %4430 }
 0x94b   :  { %v772_v53 = vmul.f32 %v4431_v49, %v770_v52 }
 0x9ac   :  { %v775_v51 = vpop.permute.xlu1 %774 }
 0x9ad   :  { %v777_v15 = vmul.f32 %v4431_v49, %v775_v51 }
 0x9af   :  { %779 = vrot.lane.b32.xlu0 %v777_v15, %s4629_s14 }
 0xa21   :  { %v780_v54 = vpop.permute.xlu0 %779 }
 0xa22   :  { %v782_v56 = vadd.f32 %v780_v54, %v772_v53 }
 0xa24   :  { %4432 = vtanh.f32 %v782_v56  ;;  %v890_v31 = vrot.slane %v782_v56, 7 }
 0xa25   :  { %4434 = vpow2.f32 %v4016_v58 }
 0xa31   :  { %v4433_v57 = vpop.eup %4432 }
 0xa32   :  { %785 = vrot.lane.b32.xlu1 %v4433_v57, %s4629_s14  ;;  %v4435_v59 = vpop.eup %4434 }
 0xa33   :  { %v763_v60 = vadd.f32 1.0, %v4435_v59 }
 0xa35   :  { %4436 = vrcp.f32 %v763_v60 }
 0xa42   :  { %v4437_v61 = vpop.eup %4436 }
 0xaa4   :  { %v786_v62 = vpop.permute.xlu1 %785 }
 0xaa5   :  { %v788_v63 = vmul.f32 %v4437_v61, %v786_v62 }
 0xaa7   :  { %790 = vst.msk [vmem:[#allocation2] sm:$0x8] %vm789_vm15, %v788_v63  ;;  %v794_v0 = vrot.slane %v788_v63, 3 }
 0xaa8   :  { %792 = vst.msk [vmem:[#allocation2 + $0x1] sm:$0x8] %vm791_vm3, %v788_v63 }
 0xaa9   :  { %4017 = vmatmul.mubr.msk.f32.vlgmr.msra.gmra.mxu0 %vm323_vm10, %v794_v0 }
 0xaaa   :  { %1054 = vmatpush1.msra.mxu0 %v4743_v16  ;;  %1101 = vmatprep.mubr.f32.mxu0 %v4627_v2 }
 0xaab   :  { %1055 = vmatprep.subr.mxu0 %v4749_v17 }
 0xaac   :  { %1056 = vmatpush1.msra.mxu0 %v4755_v18 }
 0xaad   :  { %1057 = vmatprep.subr.mxu0 %v4761_v19 }
 0xaae   :  { %1058 = vmatpush1.msra.mxu0 %v4767_v20 }
 0xaaf   :  { %1059 = vmatprep.subr.mxu0 %v4773_v21 }
 0xab0   :  { %1060 = vmatpush1.msra.mxu0 %v4779_v22 }
 0xab1   :  { %1061 = vmatprep.subr.mxu0 %v4785_v23 }
 0xab2   :  { %1062 = vmatpush1.msra.mxu0 %v4791_v24 }
 0xab3   :  { %1063 = vmatprep.subr.mxu0 %v4797_v25 }
 0xab4   :  { %1064 = vmatpush1.msra.mxu0 %v4803_v26 }
 0xab5   :  { %1065 = vmatprep.subr.mxu0 %v4809_v27 }
 0xab6   :  { %1066 = vmatpush1.msra.mxu0 %v4815_v28 }
 0xab7   :  { %1067 = vmatprep.subr.mxu0 %v4821_v29 }
 0xab8   :  { %1068 = vmatpush1.msra.mxu0 %v4827_v30 }
 0xab9   :  { %4180 = vmatprep.subr.mxu0 %v4627_v2 }
 0xb69   :  { %v863_v1 = vpop.f32.mrf.mxu0 }
 0xb6a   :  { %v870_v7 = vrot.slane %v863_v1, 4 }
 0xb6b   :  { %v865_v3 = vpop.f32.mrf.mxu0 }
 0xb6c   :  { %v871_v4 = vrot.slane %v865_v3, 4  ;;  %v874_v8 = vadd.f32 %v870_v7, %v4892_v55 }
 0xb6e   :  { %v875_v5 = vadd.f32 %v871_v4, %v4887_v50  ;;  %v4018_v9 = vmul.f32 -1.442695, %v874_v8 }
 0xb70   :  { %4438 = vtanh.f32 %v875_v5  ;;  %v4019_v40 = vmul.f32 -1.442695, %v875_v5 }
 0xb71   :  { %4440 = vpow2.f32 %v4018_v9 }
 0xb7d   :  { %v4439_v6 = vpop.eup %4438 }
 0xb7e   :  { %894 = vrot.lane.b32.xlu0 %v4439_v6, %s4629_s14  ;;  %v4441_v10 = vpop.eup %4440 }
 0xb7f   :  { %v882_v11 = vadd.f32 1.0, %v4441_v10 }
 0xb81   :  { %4442 = vrcp.f32 %v882_v11 }
 0xb8e   :  { %v4443_v12 = vpop.eup %4442 }
 0xb8f   :  { %v892_v35 = vmul.f32 %v4443_v12, %v890_v31 }
 0xbf0   :  { %v895_v13 = vpop.permute.xlu0 %894 }
 0xbf1   :  { %v897_v14 = vmul.f32 %v4443_v12, %v895_v13 }
 0xbf3   :  { %899 = vrot.lane.b32.xlu1 %v897_v14, %s4629_s14 }
 0xc65   :  { %v900_v37 = vpop.permute.xlu1 %899 }
 0xc66   :  { %v902_v38 = vadd.f32 %v900_v37, %v892_v35 }
 0xc68   :  { %4444 = vtanh.f32 %v902_v38 }
 0xc69   :  { %4446 = vpow2.f32 %v4019_v40 }
 0xc75   :  { %v4445_v39 = vpop.eup %4444 }
 0xc76   :  { %905 = vrot.lane.b32.xlu0 %v4445_v39, %s4629_s14  ;;  %v4447_v41 = vpop.eup %4446 }
 0xc77   :  { %v883_v42 = vadd.f32 1.0, %v4447_v41 }
 0xc79   :  { %4448 = vrcp.f32 %v883_v42 }
 0xc86   :  { %v4449_v43 = vpop.eup %4448 }
 0xce8   :  { %v906_v44 = vpop.permute.xlu0 %905 }
 0xce9   :  { %v908_v45 = vmul.f32 %v4449_v43, %v906_v44 }
 0xceb   :  { %910 = vst.msk [vmem:[#allocation2] sm:$0x10] %vm909_vm4, %v908_v45  ;;  %v914_v46 = vrot.slane %v908_v45, 4 }
 0xcec   :  { %912 = vst.msk [vmem:[#allocation2 - $0x1] sm:$0x10] %vm911_vm6, %v908_v45 }
 0xced   :  { %4020 = vmatmul.mubr.msk.f32.vlgmr.msra.gmra.mxu1 %vm323_vm10, %v914_v46 }
 0xcee   :  { %1174 = vmatpush1.msra.mxu1 %v4743_v16  ;;  %1221 = vmatprep.mubr.f32.mxu1 %v4627_v2 }
 0xcef   :  { %1175 = vmatprep.subr.mxu1 %v4749_v17 }
 0xcf0   :  { %1176 = vmatpush1.msra.mxu1 %v4755_v18 }
 0xcf1   :  { %1177 = vmatprep.subr.mxu1 %v4761_v19 }
 0xcf2   :  { %1178 = vmatpush1.msra.mxu1 %v4767_v20 }
 0xcf3   :  { %1179 = vmatprep.subr.mxu1 %v4773_v21 }
 0xcf4   :  { %1180 = vmatpush1.msra.mxu1 %v4779_v22 }
 0xcf5   :  { %1181 = vmatprep.subr.mxu1 %v4785_v23 }
 0xcf6   :  { %1182 = vmatpush1.msra.mxu1 %v4791_v24 }
 0xcf7   :  { %1183 = vmatprep.subr.mxu1 %v4797_v25 }
 0xcf8   :  { %1184 = vmatpush1.msra.mxu1 %v4803_v26 }
 0xcf9   :  { %1185 = vmatprep.subr.mxu1 %v4809_v27 }
 0xcfa   :  { %1186 = vmatpush1.msra.mxu1 %v4815_v28 }
 0xcfb   :  { %1187 = vmatprep.subr.mxu1 %v4821_v29  ;;  %v1010_v29 = vrot.slane %v902_v38, 7 }
 0xcfc   :  { %1188 = vmatpush1.msra.mxu1 %v4827_v30 }
 0xcfd   :  { %4199 = vmatprep.subr.mxu1 %v4627_v2 }
 0xdad   :  { %v983_v16 = vpop.f32.mrf.mxu1 }
 0xdae   :  { %v990_v21 = vrot.slane %v983_v16, 3 }
 0xdaf   :  { %v985_v17 = vpop.f32.mrf.mxu1 }
 0xdb0   :  { %v991_v18 = vrot.slane %v985_v17, 3  ;;  %v994_v22 = vadd.f32 %v990_v21, %v4892_v55 }
 0xdb2   :  { %v995_v19 = vadd.f32 %v991_v18, %v4887_v50  ;;  %v4021_v23 = vmul.f32 -1.442695, %v994_v22  ;;  %v1375_v22 = vld [vmem:[%s5856_s4 + $0x278] sm:$0xff] }
 0xdb4   :  { %4450 = vtanh.f32 %v995_v19  ;;  %v4022_v51 = vmul.f32 -1.442695, %v995_v19 }
 0xdb5   :  { %4452 = vpow2.f32 %v4021_v23  ;;  %v1374_v23 = vld [vmem:[%s5856_s4 + $0x228] sm:$0xff] }
 0xdc1   :  { %v4451_v20 = vpop.eup %4450 }
 0xdc2   :  { %1014 = vrot.lane.b32.xlu1 %v4451_v20, %s4629_s14  ;;  %v4453_v24 = vpop.eup %4452 }
 0xdc3   :  { %v1002_v25 = vadd.f32 1.0, %v4453_v24  ;;  %v1285_v24 = vld [vmem:[%s5856_s4 + $0x1c8] sm:$0xff] }
 0xdc5   :  { %4454 = vrcp.f32 %v1002_v25  ;;  %v1373_v25 = vld [vmem:[%s5856_s4 + $0x1d8] sm:$0xff] }
 0xdd2   :  { %v4455_v26 = vpop.eup %4454 }
 0xdd3   :  { %v1012_v30 = vmul.f32 %v4455_v26, %v1010_v29 }
 0xe34   :  { %v1015_v27 = vpop.permute.xlu1 %1014 }
 0xe35   :  { %v1017_v28 = vmul.f32 %v4455_v26, %v1015_v27 }
 0xe37   :  { %1019 = vrot.lane.b32.xlu0 %v1017_v28, %s4629_s14 }
 0xea9   :  { %v1020_v47 = vpop.permute.xlu0 %1019 }
 0xeaa   :  { %v1022_v48 = vadd.f32 %v1020_v47, %v1012_v30  ;;  %v1284_v30 = vld [vmem:[%s5856_s4 + $0x178] sm:$0xff]  ;;  %v1372_v47 = vld [vmem:[%s5856_s4 + $0x188] sm:$0xff] }
 0xeac   :  { %4456 = vtanh.f32 %v1022_v48  ;;  %v1130_v8 = vrot.slane %v1022_v48, 7  ;;  %v1283_v48 = vld [vmem:[%s5856_s4 + $0x128] sm:$0xff] }
 0xead   :  { %4458 = vpow2.f32 %v4022_v51  ;;  %v1282_v51 = vld [vmem:[%s5856_s4 + $0xd8] sm:$0xff] }
 0xeb9   :  { %v4457_v49 = vpop.eup %4456 }
 0xeba   :  { %1025 = vrot.lane.b32.xlu1 %v4457_v49, %s4629_s14  ;;  %v4459_v15 = vpop.eup %4458  ;;  %v1371_v49 = vld [vmem:[%s5856_s4 + $0x138] sm:$0xff] }
 0xebb   :  { %v1003_v52 = vadd.f32 1.0, %v4459_v15  ;;  %v1370_v15 = vld [vmem:[%s5856_s4 + $0xe8] sm:$0xff] }
 0xebd   :  { %4460 = vrcp.f32 %v1003_v52  ;;  %v1281_v52 = vld [vmem:[%s5856_s4 + $0x88] sm:$0xff] }
 0xeca   :  { %v4461_v53 = vpop.eup %4460 }
 0xf2c   :  { %v1026_v54 = vpop.permute.xlu1 %1025 }
 0xf2d   :  { %v1028_v56 = vmul.f32 %v4461_v53, %v1026_v54  ;;  %v1369_v53 = vld [vmem:[%s5856_s4 + $0x98] sm:$0xff] }
 0xf2e   :  { %v1280_v54 = vld [vmem:[%s5856_s4 + $0x38] sm:$0xff] }
 0xf2f   :  { %1030 = vst.msk [vmem:[#allocation2] sm:$0x20] %vm1029_vm7, %v1028_v56  ;;  %v1034_v57 = vrot.slane %v1028_v56, 5 }
 0xf30   :  { %1032 = vst.msk [vmem:[#allocation2 - $0x3] sm:$0x20] %vm1031_vm8, %v1028_v56  ;;  %v1368_v56 = vld [vmem:[%s5856_s4 + $0x48] sm:$0xff] }
 0xf31   :  { %4023 = vmatmul.mubr.msk.f32.vlgmr.msra.gmra.mxu0 %vm323_vm10, %v1034_v57 }
 0xf32   :  { %4196 = vmatprep.mubr.msk.f32.mxu0 %vm4628_vm1, %v4627_v2 }
 0xff1   :  { %v1103_v58 = vpop.f32.mrf.mxu0 }
 0xff2   :  { %v1110_v63 = vrot.slane %v1103_v58, 2 }
 0xff3   :  { %v1105_v59 = vpop.f32.mrf.mxu0 }
 0xff4   :  { %v1111_v60 = vrot.slane %v1105_v59, 2  ;;  %v1114_v0 = vadd.f32 %v1110_v63, %v4892_v55 }
 0xff6   :  { %v1115_v61 = vadd.f32 %v1111_v60, %v4887_v50  ;;  %v4024_v1 = vmul.f32 -1.442695, %v1114_v0  ;;  %v5112_v0 = vld [vmem:[%s5854_s2 + $0x2] sm:$0x3] }
 0xff8   :  { %4462 = vtanh.f32 %v1115_v61  ;;  %v4025_v13 = vmul.f32 -1.442695, %v1115_v61 }
 0xff9   :  { %4464 = vpow2.f32 %v4024_v1 }
0x1005   :  { %v4463_v62 = vpop.eup %4462 }
0x1006   :  { %1134 = vrot.lane.b32.xlu0 %v4463_v62, %s4629_s14  ;;  %v4465_v3 = vpop.eup %4464 }
0x1007   :  { %v1122_v4 = vadd.f32 1.0, %v4465_v3  ;;  %v1460_v3 = vld [vmem:[%s5856_s4 + $0x270] sm:$0xff] }
0x1009   :  { %4466 = vrcp.f32 %v1122_v4  ;;  %v5120_v4 = vld [vmem:[%s5856_s4 + $0x248] sm:$0xff] }
0x1016   :  { %v4467_v5 = vpop.eup %4466 }
0x1017   :  { %v1132_v9 = vmul.f32 %v4467_v5, %v1130_v8  ;;  %v5144_v8 = vld [vmem:[%s5856_s4 + $0x1f8] sm:$0xff] }
0x1078   :  { %v1135_v6 = vpop.permute.xlu0 %1134 }
0x1079   :  { %v1137_v7 = vmul.f32 %v4467_v5, %v1135_v6  ;;  %v1459_v5 = vld [vmem:[%s5856_s4 + $0x220] sm:$0xff] }
0x107a   :  { %v5135_v6 = vld [vmem:[%s5856_s4 + $0x240] sm:$0xff] }
0x107b   :  { %1139 = vrot.lane.b32.xlu1 %v1137_v7, %s4629_s14  ;;  %v1458_v7 = vld [vmem:[%s5856_s4 + $0x1d0] sm:$0xff] }
0x10ed   :  { %v1140_v10 = vpop.permute.xlu1 %1139 }
0x10ee   :  { %v1142_v11 = vadd.f32 %v1140_v10, %v1132_v9  ;;  %v4582_v9 = vld [vmem:[%s5852_s0] sm:$0xff]  ;;  %v5155_v10 = vld [vmem:[%s5856_s4 + $0x1f0] sm:$0xff] }
0x10f0   :  { %4468 = vtanh.f32 %v1142_v11  ;;  %v1250_v26 = vrot.slane %v1142_v11, 7  ;;  %v1457_v11 = vld [vmem:[%s5856_s4 + $0x180] sm:$0xff] }
0x10f1   :  { %4470 = vpow2.f32 %v4025_v13  ;;  %v5171_v13 = vld [vmem:[%s5856_s4 + $0x1a0] sm:$0xff] }
0x10fd   :  { %v4469_v12 = vpop.eup %4468 }
0x10fe   :  { %1145 = vrot.lane.b32.xlu0 %v4469_v12, %s4629_s14  ;;  %v4471_v14 = vpop.eup %4470  ;;  %v5165_v12 = vld [vmem:[%s5856_s4 + $0x1a8] sm:$0xff] }
0x10ff   :  { %v1123_v31 = vadd.f32 1.0, %v4471_v14  ;;  %v1456_v14 = vld [vmem:[%s5856_s4 + $0x130] sm:$0xff] }
0x1101   :  { %4472 = vrcp.f32 %v1123_v31  ;;  %v5181_v31 = vld [vmem:[%s5856_s4 + $0x158] sm:$0xff] }
0x110e   :  { %v4473_v35 = vpop.eup %4472 }
0x1170   :  { %v1146_v37 = vpop.permute.xlu0 %1145 }
0x1171   :  { %v1148_v38 = vmul.f32 %v4473_v35, %v1146_v37  ;;  %v5187_v35 = vld [vmem:[%s5856_s4 + $0x150] sm:$0xff]  ;;  %v1455_v37 = vld [vmem:[%s5856_s4 + $0xe0] sm:$0xff] }
0x1173   :  { %1150 = vst.msk [vmem:[#allocation2] sm:$0x40] %vm1149_vm9, %v1148_v38  ;;  %v1154_v39 = vrot.slane %v1148_v38, 6 }
0x1174   :  { %1152 = vst.msk [vmem:[#allocation2 - $0x5] sm:$0x40] %vm1151_vm11, %v1148_v38  ;;  %v5197_v38 = vld [vmem:[%s5856_s4 + $0x108] sm:$0xff] }
0x1175   :  { %4026 = vmatmul.mubr.msk.f32.vlgmr.msra.gmra.mxu1 %vm323_vm10, %v1154_v39  ;;  %v5203_v39 = vld [vmem:[%s5856_s4 + $0x100] sm:$0xff] }
0x1176   :  { %4215 = vmatprep.mubr.msk.f32.mxu1 %vm4628_vm1, %v4627_v2  ;;  %4200 = vmatpush3.msra.mxu1 %v1375_v22 }
0x1177   :  { %4201 = vmatprep.subr.mxu1 %v4627_v2 }
0x1178   :  { %4202 = vmatpush3.msra.mxu1 %v1374_v23 }
0x1179   :  { %4203 = vmatprep.subr.mxu1 %v4627_v2 }
0x117a   :  { %4204 = vmatpush3.msra.mxu1 %v1373_v25 }
0x117b   :  { %4205 = vmatprep.subr.mxu1 %v4627_v2 }
0x117c   :  { %4206 = vmatpush3.msra.mxu1 %v1372_v47  ;;  %v5297_v47 = vld [vmem:[%s5856_s4 + $0x200] sm:$0xff] }
0x117d   :  { %4207 = vmatprep.subr.mxu1 %v4627_v2 }
0x117e   :  { %4208 = vmatpush3.msra.mxu1 %v1371_v49  ;;  %v5310_v49 = vld [vmem:[%s5856_s4 + $0x1b0] sm:$0xff] }
0x117f   :  { %4209 = vmatprep.subr.mxu1 %v4627_v2 }
0x1180   :  { %4210 = vmatpush3.msra.mxu1 %v1370_v15  ;;  %v5324_v15 = vld [vmem:[%s5856_s4 + $0x160] sm:$0xff] }
0x1181   :  { %4211 = vmatprep.subr.mxu1 %v4627_v2 }
0x1182   :  { %4212 = vmatpush3.msra.mxu1 %v1369_v53  ;;  %v5338_v53 = vld [vmem:[%s5856_s4 + $0x110] sm:$0xff] }
0x1183   :  { %4213 = vmatprep.subr.mxu1 %v4627_v2 }
0x1184   :  { %4214 = vmatpush3.msra.mxu1 %v1368_v56  ;;  %v5352_v56 = vld [vmem:[%s5856_s4 + $0xc0] sm:$0xff] }
0x1185   :  { %4237 = vmatprep.subr.mxu1 %v4627_v2 }
0x1235   :  { %v1223_v40 = vpop.f32.mrf.mxu1 }
0x1236   :  { %v1230_v45 = vrot.slane %v1223_v40, 1  ;;  %v1454_v40 = vld [vmem:[%s5856_s4 + $0x90] sm:$0xff] }
0x1237   :  { %v1225_v41 = vpop.f32.mrf.mxu1 }
0x1238   :  { %v1231_v42 = vrot.slane %v1225_v41, 1  ;;  %v1234_v46 = vadd.f32 %v1230_v45, %v4892_v55  ;;  %v1286_v55 = vld [vmem:[%s5856_s4 + $0x218] sm:$0xff]  ;;  %v5239_v45 = vld [vmem:[%s5856_s4 + $0x60] sm:$0xff] }
0x1239   :  { %v5217_v41 = vld [vmem:[%s5856_s4 + $0xb8] sm:$0xff] }
0x123a   :  { %v5024_v43 = vadd.f32 %v1231_v42, %v4887_v50  ;;  %v4027_v16 = vmul.f32 -1.442695, %v1234_v46  ;;  %v1287_v50 = vld [vmem:[%s5856_s4 + $0x268] sm:$0xff]  ;;  %v5223_v42 = vld [vmem:[%s5856_s4 + $0xb0] sm:$0xff]  ;;  %v5245_v46 = vld [vmem:[%s5856_s4 + $0x18] sm:$0xff] }
0x123b   :  { %4181 = vmatpush3.msra.mxu0 %v1287_v50 }
0x123c   :  { %4474 = vtanh.f32 %v5024_v43  ;;  %4182 = vmatprep.subr.mxu0 %v4627_v2  ;;  %v4028_v58 = vmul.f32 -1.442695, %v5024_v43  ;;  %v1453_v43 = vld [vmem:[%s5856_s4 + $0x40] sm:$0xff] }
0x123d   :  { %4476 = vpow2.f32 %v4027_v16  ;;  %4183 = vmatpush3.msra.mxu0 %v1286_v55  ;;  %v5252_v16 = vld [vmem:[%s5856_s4 + $0x10] sm:$0xff] }
0x123e   :  { %4184 = vmatprep.subr.mxu0 %v4627_v2 }
0x123f   :  { %4185 = vmatpush3.msra.mxu0 %v1285_v24 }
0x1240   :  { %4186 = vmatprep.subr.mxu0 %v4627_v2 }
0x1241   :  { %4187 = vmatpush3.msra.mxu0 %v1284_v30  ;;  %v4630_v30 = vmov -1.0  }
0x1242   :  { %4188 = vmatprep.subr.mxu0 %v4627_v2 }
0x1243   :  { %4189 = vmatpush3.msra.mxu0 %v1283_v48  ;;  %v5303_v48 = vld [vmem:[%s5856_s4 + $0x1b8] sm:$0xff] }
0x1244   :  { %4190 = vmatprep.subr.mxu0 %v4627_v2 }
0x1245   :  { %4191 = vmatpush3.msra.mxu0 %v1282_v51  ;;  %v5317_v51 = vld [vmem:[%s5856_s4 + $0x168] sm:$0xff] }
0x1246   :  { %4192 = vmatprep.subr.mxu0 %v4627_v2 }
0x1247   :  { %4193 = vmatpush3.msra.mxu0 %v1281_v52  ;;  %v5331_v52 = vld [vmem:[%s5856_s4 + $0x118] sm:$0xff] }
0x1248   :  { %4194 = vmatprep.subr.mxu0 %v4627_v2 }
0x1249   :  { %v4475_v44 = vpop.eup %4474  ;;  %4195 = vmatpush3.msra.mxu0 %v1280_v54  ;;  %v5345_v54 = vld [vmem:[%s5856_s4 + $0xc8] sm:$0xff] }
0x124a   :  { %1254 = vrot.lane.b32.xlu1 %v4475_v44, %s4629_s14  ;;  %v4477_v17 = vpop.eup %4476  ;;  %4218 = vmatprep.subr.mxu0 %v4627_v2  ;;  %v5233_v44 = vld [vmem:[%s5856_s4 + $0x68] sm:$0xff] }
0x124b   :  { %v1242_v18 = vadd.f32 1.0, %v4477_v17  ;;  %v5258_v17 = vld [vmem:[%s5856_s4 + $0x258] sm:$0xff] }
0x124d   :  { %4478 = vrcp.f32 %v1242_v18  ;;  %v4029_v18 = vld [vmem:[%s5857_s5 + $0x7] ss:$0 sm:$0xff] }
0x125a   :  { %v4479_v19 = vpop.eup %4478 }
0x125b   :  { %v1252_v27 = vmul.f32 %v4479_v19, %v1250_v26  ;;  %v5284_v26 = vld [vmem:[%s5856_s4 + $0x250] sm:$0xff] }
0x12bc   :  { %v1255_v20 = vpop.permute.xlu1 %1254 }
0x12bd   :  { %v1257_v21 = vmul.f32 %v4479_v19, %v1255_v20  ;;  %v5267_v19 = vld [vmem:[%s5857_s5 + $0x3] sm:$0x1] }
0x12be   :  { %v1557_v22 = vrot.slane %v5267_v19, %v4836_v34 }
0x12bf   :  { %1259 = vrot.lane.b32.xlu0 %v1257_v21, %s4629_s14 }
0x1331   :  { %v1260_v28 = vpop.permute.xlu0 %1259 }
0x1332   :  { %v5054_v29 = vadd.f32 %v1260_v28, %v1252_v27  ;;  %v5290_v27 = vld [vmem:[%s5856_s4 + $0x208] sm:$0xff] }
0x1334   :  { %4480 = vtanh.f32 %v5054_v29 }
0x1335   :  { %4482 = vpow2.f32 %v4028_v58  ;;  %v5366_v58 = vld [vmem:[%s5856_s4 + $0x70] sm:$0xff] }
0x1341   :  { %v4481_v57 = vpop.eup %4480 }
0x1342   :  { %1265 = vrot.lane.b32.xlu1 %v4481_v57, %s4629_s14  ;;  %v4483_v59 = vpop.eup %4482  ;;  %v5359_v57 = vld [vmem:[%s5856_s4 + $0x78] sm:$0xff] }
0x1343   :  { %v1243_v60 = vadd.f32 1.0, %v4483_v59  ;;  %v5373_v59 = vld [vmem:[%s5856_s4 + $0x28] sm:$0xff] }
0x1345   :  { %4484 = vrcp.f32 %v1243_v60  ;;  %v5380_v60 = vld [vmem:[%s5856_s4 + $0x20] sm:$0xff] }
0x1352   :  { %v4485_v61 = vpop.eup %4484 }
0x13b4   :  { %v1266_v62 = vpop.permute.xlu1 %1265 }
0x13b5   :  { %v5099_v63 = vmul.f32 %v4485_v61, %v1266_v62 }
0x13b7   :  { %1270 = vst.msk [vmem:[#allocation2] sm:$0x80] %vm1269_vm12, %v5099_v63  ;;  %1273 = vst.msk [vmem:[%s5861_s9 - $0x7] sm:$0x80] %vm1269_vm12, %v5099_v63  ;;  %v1885_v61 = vrot.slane %v5099_v63, 7 }
0x13b8   :  { %1272 = vst.msk [vmem:[#allocation2 - $0x7] sm:$0x80] %vm1271_vm13, %v5099_v63 }
0x13bf   :  { %v1279_v1 = vld [vmem:[#allocation2] sm:$0xff] }
0x13c0   :  { %4197 = vmatmul.mubr.msk.f32.vlgmr.msra.gmra.mxu0 %vm323_vm10, %v1279_v1  ;;  %4216 = vmatmul.mubr.msk.f32.vlgmr.msra.gmra.mxu1 %vm323_vm10, %v1279_v1 }
0x13c1   :  { %4238 = vmatpush3.msk.msra.mxu1 %vm47_vm0, %v5112_v0  ;;  %4239 = vmatprep.mubr.msk.f32.mxu1 %vm4628_vm1, %v4627_v2 }
0x13c2   :  { %4219 = vmatpush3.msra.mxu0 %v1460_v3  ;;  %1662 = vmatprep.subr.mxu1 %v5120_v4 }
0x13c3   :  { %4220 = vmatprep.subr.mxu0 %v4627_v2  ;;  %4234 = vmatprep.mubr.msk.f32.mxu0 %vm4628_vm1, %v4627_v2 }
0x13c4   :  { %4240 = vmatmul.mubr.msk.f32.vlgmr.msra.gmra.mxu1 %vm43_vm2, %v4582_v9  ;;  %4221 = vmatpush3.msra.mxu0 %v1459_v5  ;;  %v1536_v9 = vld [vmem:[%s5857_s5 + $0x4] sm:$0x3] }
0x13c5   :  { %4222 = vmatprep.subr.mxu0 %v4627_v2  ;;  %1663 = vmatpush1.msra.mxu1 %v5135_v6 }
0x13c6   :  { %4223 = vmatpush3.msra.mxu0 %v1458_v7  ;;  %1664 = vmatprep.subr.mxu1 %v5144_v8  ;;  %v5418_v7 = vld [vmem:[%s5856_s4 + $0x1c0] sm:$0xff] }
0x13c7   :  { %4224 = vmatprep.subr.mxu0 %v4627_v2  ;;  %1665 = vmatpush1.msra.mxu1 %v5155_v10 }
0x13c8   :  { %4225 = vmatpush3.msra.mxu0 %v1457_v11  ;;  %1666 = vmatprep.subr.mxu1 %v5165_v12 }
0x13c9   :  { %4226 = vmatprep.subr.mxu0 %v4627_v2  ;;  %1667 = vmatpush1.msra.mxu1 %v5171_v13 }
0x13ca   :  { %4227 = vmatpush3.msra.mxu0 %v1456_v14  ;;  %1668 = vmatprep.subr.mxu1 %v5181_v31  ;;  %v5451_v14 = vld [vmem:[%s5856_s4 + $0x80] sm:$0xff] }
0x13cb   :  { %4228 = vmatprep.subr.mxu0 %v4627_v2  ;;  %1669 = vmatpush1.msra.mxu1 %v5187_v35 }
0x13cc   :  { %4229 = vmatpush3.msra.mxu0 %v1455_v37  ;;  %1670 = vmatprep.subr.mxu1 %v5197_v38 }
0x13cd   :  { %4230 = vmatprep.subr.mxu0 %v4627_v2  ;;  %1671 = vmatpush1.msra.mxu1 %v5203_v39 }
0x13ce   :  { %1710 = vmatprep.mubr.f32.mxu1 %v4627_v2  ;;  %4231 = vmatpush3.msra.mxu0 %v1454_v40 }
0x13cf   :  { %1672 = vmatprep.subr.mxu1 %v5217_v41  ;;  %4232 = vmatprep.subr.mxu0 %v4627_v2 }
0x13d0   :  { %1673 = vmatpush1.msra.mxu1 %v5223_v42  ;;  %4233 = vmatpush3.msra.mxu0 %v1453_v43  ;;  %v1636_v43 = vrot.slane %v1536_v9, %v4836_v34 }
0x13d1   :  { %1674 = vmatprep.subr.mxu1 %v5233_v44  ;;  %4242 = vmatprep.subr.mxu0 %v4627_v2 }
0x13d2   :  { %1675 = vmatpush1.msra.mxu1 %v5239_v45 }
0x13d3   :  { %1676 = vmatprep.subr.mxu1 %v5245_v46 }
0x13d4   :  { %1677 = vmatpush1.msra.mxu1 %v5252_v16 }
0x13d5   :  { %1904 = vmatprep.subr.mxu1 %v5258_v17 }
0x1480   :  { %v1364_v20 = vpop.f32.mrf.mxu0  ;;  %v5269_v21 = vpop.f32.mrf.mxu1 }
0x1481   :  { %v5271_v50 = vadd.f32 %v4029_v18, %v1364_v20 }
0x1482   :  { %v4198_v55 = vpop.f32.mrf.mxu0  ;;  %v4217_v23 = vpop.f32.mrf.mxu1 }
0x1483   :  { %4235 = vmatmul.mubr.msk.f32.vlgmr.msra.gmra.mxu0 %vm323_vm10, %v5271_v50  ;;  %v1974_v55 = vrot.slane %v5054_v29, 7  ;;  %v5486_v29 = vld [vmem:[%s5857_s5 + $0x6] sm:$0x1] }
0x1484   :  { %v1628_v24 = vpop.f32.mrf.mxu1  ;;  %4243 = vmatpush3.msk.msra.mxu0 %vm47_vm0, %v5112_v0  ;;  %4244 = vmatprep.mubr.msk.f32.mxu0 %vm4628_vm1, %v4627_v2  ;;  %vm2158_vm0 = vcmask 57344  }
0x1485   :  { %v1629_v25 = vadd.f32 %v1628_v24, %v1557_v22  ;;  %1809 = vmatprep.subr.mxu0 %v5120_v4  ;;  %v5403_v4 = vld [vmem:[%s5856_s4 + $0x260] sm:$0xff] }
0x1486   :  { %v4241_v28 = vpop.f32.mrf.mxu1 }
0x1487   :  { %4036 = vmatmul.mubr.msk.f32.vlgmr.msra.gmra.mxu1 %vm323_vm10, %v1629_v25  ;;  %4245 = vmatmul.mubr.msk.f32.vlgmr.msra.gmra.mxu0 %vm43_vm2, %v4630_v30 }
0x1488   :  { %1905 = vmatpush1.msra.mxu1 %v5284_v26  ;;  %1952 = vmatprep.mubr.f32.mxu1 %v4627_v2 }
0x1489   :  { %1906 = vmatprep.subr.mxu1 %v5290_v27  ;;  %1810 = vmatpush1.msra.mxu0 %v5135_v6  ;;  %v5409_v6 = vld [vmem:[%s5856_s4 + $0x210] sm:$0xff] }
0x148a   :  { %1907 = vmatpush1.msra.mxu1 %v5297_v47  ;;  %1811 = vmatprep.subr.mxu0 %v5144_v8  ;;  %v5425_v8 = vld [vmem:[%s5856_s4 + $0x170] sm:$0xff] }
0x148b   :  { %1908 = vmatprep.subr.mxu1 %v5303_v48  ;;  %1812 = vmatpush1.msra.mxu0 %v5155_v10  ;;  %v5435_v10 = vld [vmem:[%s5856_s4 + $0x120] sm:$0xff] }
0x148c   :  { %1909 = vmatpush1.msra.mxu1 %v5310_v49  ;;  %1813 = vmatprep.subr.mxu0 %v5165_v12  ;;  %v1640_v12 = vrot.slane %v1536_v9, %v139_v33  ;;  %v5460_v33 = vld [vmem:[%s5856_s4 + $0x30] sm:$0xff] }
0x148d   :  { %1910 = vmatprep.subr.mxu1 %v5317_v51  ;;  %1814 = vmatpush1.msra.mxu0 %v5171_v13  ;;  %v5444_v13 = vld [vmem:[%s5856_s4 + $0xd0] sm:$0xff]  ;;  %s3966_s4 = sshll.u32 %s4632_s25, 4  ;;  %s3967_s4 = int_to_ptr.vmem [resolvable:$true] %s3966_s4 }
0x148e   :  { %1911 = vmatpush1.msra.mxu1 %v5324_v15  ;;  %1815 = vmatprep.subr.mxu0 %v5181_v31  ;;  %s4583_s28 = scalar_lea.vmem %s3967_s4, 128  ;;  %p4588_p1 = scmp.lt.s32.totalorder %s3967_s4, %s3967_s4 }
0x148f   :  { %1912 = vmatprep.subr.mxu1 %v5331_v52  ;;  %1816 = vmatpush1.msra.mxu0 %v5187_v35  ;;  %p4584_p0 = scmp.ne.s32.totalorder %s3967_s4, %s4583_s28  ;;  %p4589_p2 = scmp.lt.s32.totalorder %s4583_s28, %s4583_s28 }
0x1490   :  { %1913 = vmatpush1.msra.mxu1 %v5338_v53  ;;  %1817 = vmatprep.subr.mxu0 %v5197_v38 }
0x1491   :  { %1914 = vmatprep.subr.mxu1 %v5345_v54  ;;  %1818 = vmatpush1.msra.mxu0 %v5203_v39  ;;  %p4590_p3 = por %p4589_p2, %p4588_p1 }
0x1492   :  { %1915 = vmatpush1.msra.mxu1 %v5352_v56  ;;  %1819 = vmatprep.subr.mxu0 %v5217_v41 }
0x1493   :  { %1916 = vmatprep.subr.mxu1 %v5359_v57  ;;  %1820 = vmatpush1.msra.mxu0 %v5223_v42  ;;  %p4591_p4 = pnand %p4590_p3, %p4584_p0 }
0x1494   :  { %1917 = vmatpush1.msra.mxu1 %v5366_v58  ;;  %1821 = vmatprep.subr.mxu0 %v5233_v44 }
0x1495   :  { %1918 = vmatprep.subr.mxu1 %v5373_v59  ;;  %1822 = vmatpush1.msra.mxu0 %v5239_v45 }
0x1496   :  { %1919 = vmatpush1.msra.mxu1 %v5380_v60  ;;  %1823 = vmatprep.subr.mxu0 %v5245_v46 }
0x1497   :  { %4040 = vmatmul.mubr.msk.f32.vlgmr.msra.gmra.mxu1 %vm323_vm10, %v1885_v61  ;;  %1824 = vmatpush1.msra.mxu0 %v5252_v16 }
0x1498   :  { %1857 = vmatprep.mubr.f32.mxu0 %v4627_v2  ;;  %4247 = vmatprep.subr.mxu0 %v4627_v2 }
0x1499   :  { %4266 = vmatprep.subr.mxu1 %v4627_v2  ;;  %4268 = vmatprep.mubr.msk.f32.mxu1 %vm4628_vm1, %v4627_v2 }
0x1543   :  { %v5397_v62 = vpop.f32.mrf.mxu0 }
0x1545   :  { %v4236_v0 = vpop.f32.mrf.mxu0 }
0x1547   :  { %v1786_v1 = vpop.f32.mrf.mxu0  ;;  %v1712_v11 = vpop.f32.mrf.mxu1 }
0x1548   :  { %v1787_v3 = vadd.f32 %v1786_v1, %v5267_v19  ;;  %v5476_v9 = vadd.f32 %v1712_v11, %v1636_v43 }
0x1549   :  { %v4246_v5 = vpop.f32.mrf.mxu0  ;;  %v1714_v31 = vpop.f32.mrf.mxu1 }
0x154a   :  { %4039 = vmatmul.mubr.msk.f32.vlgmr.msra.gmra.mxu0 %vm323_vm10, %v1787_v3  ;;  %v5454_v32 = vadd.f32 %v1714_v31, %v1640_v12 }
0x154b   :  { %4248 = vmatpush3.msra.mxu0 %v5403_v4  ;;  %4263 = vmatprep.mubr.msk.f32.mxu0 %vm4628_vm1, %v4627_v2 }
0x154c   :  { %4249 = vmatprep.subr.mxu0 %v4627_v2 }
0x154d   :  { %4250 = vmatpush3.msra.mxu0 %v5409_v6 }
0x154e   :  { %4251 = vmatprep.subr.mxu0 %v4627_v2 }
0x154f   :  { %4252 = vmatpush3.msra.mxu0 %v5418_v7 }
0x1550   :  { %4253 = vmatprep.subr.mxu0 %v4627_v2 }
0x1551   :  { %4254 = vmatpush3.msra.mxu0 %v5425_v8 }
0x1552   :  { %4255 = vmatprep.subr.mxu0 %v4627_v2 }
0x1553   :  { %4256 = vmatpush3.msra.mxu0 %v5435_v10 }
0x1554   :  { %4257 = vmatprep.subr.mxu0 %v4627_v2 }
0x1555   :  { %4258 = vmatpush3.msra.mxu0 %v5444_v13 }
0x1556   :  { %4259 = vmatprep.subr.mxu0 %v4627_v2 }
0x1557   :  { %4260 = vmatpush3.msra.mxu0 %v5451_v14  ;;  %v1954_v35 = vpop.f32.mrf.mxu1 }
0x1558   :  { %4261 = vmatprep.subr.mxu0 %v4627_v2 }
0x1559   :  { %4262 = vmatpush3.msra.mxu0 %v5460_v33  ;;  %v1956_v40 = vpop.f32.mrf.mxu1 }
0x155a   :  { %2468 = vmatprep.subr.mxu0 %v5454_v32 }
0x160a   :  { %v1859_v37 = vpop.f32.mrf.mxu0 }
0x160b   :  { %v1860_v44 = vadd.f32 %v1859_v37, %v1636_v43 }
0x160c   :  { %v1861_v38 = vpop.f32.mrf.mxu0 }
0x160d   :  { %v1862_v39 = vadd.f32 %v1861_v38, %v1640_v12  ;;  %v1959_v45 = vadd.f32 %v1954_v35, %v1860_v44 }
0x160f   :  { %v1960_v41 = vadd.f32 %v1956_v40, %v1862_v39  ;;  %v4041_v46 = vmul.f32 -1.442695, %v1959_v45  ;;  %v5495_v39 = vld [vmem:[%s5857_s5 + $0x8] sm:$0x1]  ;;  %v32_v40 = vld [vmem:[%s5853_s1] sm:$0x1] }
0x1611   :  { %4486 = vtanh.f32 %v1960_v41  ;;  %v4042_v30 = vmul.f32 -1.442695, %v1960_v41  ;;  %v33_v41 = vsub.f32 1.0, %v32_v40 }
0x1612   :  { %4488 = vpow2.f32 %v4041_v46 }
0x161e   :  { %v4487_v42 = vpop.eup %4486 }
0x161f   :  { %1979 = vrot.lane.b32.xlu0 %v4487_v42, %s4629_s14  ;;  %v4489_v16 = vpop.eup %4488  ;;  %v5507_v42 = vmul.f32 1000000.0, %v33_v41  ;;  %v5565_v41 = vcvt.s32.f32 %v4841_v36 }
0x1620   :  { %v1967_v18 = vadd.f32 1.0, %v4489_v16 }
0x1622   :  { %4490 = vrcp.f32 %v1967_v18 }
0x162f   :  { %v4491_v19 = vpop.eup %4490 }
0x1630   :  { %v1976_v23 = vmul.f32 %v4491_v19, %v1974_v55 }
0x1691   :  { %v1980_v20 = vpop.permute.xlu0 %1979 }
0x1692   :  { %v1982_v22 = vmul.f32 %v4491_v19, %v1980_v20 }
0x1694   :  { %1984 = vrot.lane.b32.xlu1 %v1982_v22, %s4629_s14 }
0x1706   :  { %v1985_v24 = vpop.permute.xlu1 %1984 }
0x1707   :  { %v5470_v25 = vadd.f32 %v1985_v24, %v1976_v23 }
0x1709   :  { %4492 = vtanh.f32 %v5470_v25 }
0x170a   :  { %4494 = vpow2.f32 %v4042_v30  ;;  %v4031_v30 = vld [vmem:[%s5857_s5 + $0xa] ss:$0 sm:$0xff] }
0x1716   :  { %v4493_v28 = vpop.eup %4492 }
0x1717   :  { %1990 = vrot.lane.b32.xlu0 %v4493_v28, %s4629_s14  ;;  %v4495_v61 = vpop.eup %4494  ;;  %v5518_v28 = vld [vmem:[%s5857_s5 + $0x9] sm:$0x1] }
0x1718   :  { %v1968_v0 = vadd.f32 1.0, %v4495_v61 }
0x171a   :  { %4496 = vrcp.f32 %v1968_v0 }
0x1727   :  { %v4497_v1 = vpop.eup %4496 }
0x1789   :  { %v1991_v3 = vpop.permute.xlu0 %1990 }
0x178a   :  { %v5474_v5 = vmul.f32 %v4497_v1, %v1991_v3  ;;  %v5525_v3 = vadd.f32 %v4031_v30, %v5269_v21 }
0x178c   :  { %4264 = vmatmul.mubr.msk.f32.vlgmr.msra.gmra.mxu0 %vm323_vm10, %v5474_v5 }
0x178d   :  { %2469 = vmatpush1.msra.mxu0 %v5476_v9  ;;  %2502 = vmatprep.mubr.f32.mxu0 %v4627_v2 }
0x178e   :  { %4281 = vmatprep.subr.mxu0 %v4627_v2 }
0x184c   :  { %v2071_v12 = vpop.f32.mrf.mxu0 }
0x184d   :  { %v2072_v31 = vadd.f32 %v2071_v12, %v5486_v29 }
0x184e   :  { %v4265_v35 = vpop.f32.mrf.mxu0 }
0x184f   :  { %v2078_v11 = vrot.slane %v2072_v31, %v4836_v34 }
0x1851   :  { %v2079_v37 = vadd.f32 %v2078_v11, %v5271_v50  ;;  %v5533_v11 = vld [vmem:[%s5857_s5 + $0xb] sm:$0x1] }
0x1853   :  { %4498 = vtanh.f32 %v2079_v37 }
0x1860   :  { %v4499_v38 = vpop.eup %4498 }
0x1861   :  { %4267 = vmatpush3.xpose.msk.msra.mxu1 %vm323_vm10, %v4499_v38 }
0x1862   :  { %4271 = vmatprep.subr.mxu1 %v4627_v2 }
0x1864   :  { %4269 = vmatmul.mubr.msk.f32.vlgmr.msra.gmra.mxu1 %vm323_vm10, %v5495_v39 }
0x1865   :  { %4272 = vmatpush3.msra.mxu1 %v5397_v62  ;;  %4273 = vmatprep.mubr.msk.f32.mxu1 %vm4628_vm1, %v4627_v2 }
0x1866   :  { %4276 = vmatprep.subr.mxu1 %v4627_v2 }
0x1924   :  { %v2153_v43 = vpop.f32.mrf.mxu1 }
0x1925   :  { %v2157_v44 = vsub.f32 %v2153_v43, %v5507_v42 }
0x1926   :  { %v4270_v45 = vpop.f32.mrf.mxu1 }
0x1927   :  { %v2159_v46 = vsel %vm2158_vm0, %v2157_v44, -inf }
0x1928   :  { %2160 = vmax.xlane.f32.xlu1 %v2159_v46 }
0x19b1   :  { %v2161_v16 = vpop.xlane.xlu1 %2160 }
0x19b2   :  { %v2162_v18 = vsub.f32 %v2157_v44, %v2161_v16 }
0x19b4   :  { %v2163_v19 = vmul.f32 1.442695, %v2162_v18 }
0x19b6   :  { %4500 = vpow2.f32 %v2163_v19 }
0x19c3   :  { %v4501_v20 = vpop.eup %4500 }
0x19c4   :  { %v2165_v22 = vsel %vm2158_vm0, %v4501_v20, 0.0 }
0x19c5   :  { %2166 = vadd.xlane.f32.xlu0 %v2165_v22 }
0x1a4e   :  { %v2167_v55 = vpop.xlane.xlu0 %2166 }
0x1a4f   :  { %4502 = vrcp.f32 %v2167_v55 }
0x1a5c   :  { %v4503_v23 = vpop.eup %4502 }
0x1a5d   :  { %v2169_v24 = vmul.f32 %v4503_v23, %v4501_v20 }
0x1a5f   :  { %4274 = vmatmul.mubr.msk.f32.vlgmr.msra.gmra.mxu1 %vm225_vm5, %v2169_v24 }
0x1a60   :  { %4278 = vmatprep.mubr.msk.f32.mxu1 %vm4628_vm1, %v4627_v2 }
0x1b1f   :  { %v2239_v61 = vpop.f32.mrf.mxu1 }
0x1b20   :  { %v2240_v0 = vadd.f32 %v2239_v61, %v5518_v28 }
0x1b21   :  { %v4275_v1 = vpop.f32.mrf.mxu1 }
0x1b22   :  { %v2246_v12 = vrot.slane %v2240_v0, %v4836_v34 }
0x1b24   :  { %v2247_v31 = vadd.f32 %v2246_v12, %v5525_v3 }
0x1b26   :  { %4504 = vtanh.f32 %v2247_v31 }
0x1b33   :  { %v4505_v35 = vpop.eup %4504 }
0x1b34   :  { %4277 = vmatpush3.xpose.msk.msra.mxu1 %vm323_vm10, %v4505_v35 }
0x1b35   :  { %2380 = vmatprep.subr.mxu1 %v5258_v17 }
0x1b37   :  { %4279 = vmatmul.mubr.msk.f32.vlgmr.msra.gmra.mxu1 %vm323_vm10, %v5533_v11 }
0x1b38   :  { %2381 = vmatpush1.msra.mxu1 %v5284_v26  ;;  %2428 = vmatprep.mubr.f32.mxu1 %v4627_v2 }
0x1b39   :  { %2382 = vmatprep.subr.mxu1 %v5290_v27 }
0x1b3a   :  { %2383 = vmatpush1.msra.mxu1 %v5297_v47 }
0x1b3b   :  { %2384 = vmatprep.subr.mxu1 %v5303_v48 }
0x1b3c   :  { %2385 = vmatpush1.msra.mxu1 %v5310_v49 }
0x1b3d   :  { %2386 = vmatprep.subr.mxu1 %v5317_v51 }
0x1b3e   :  { %2387 = vmatpush1.msra.mxu1 %v5324_v15 }
0x1b3f   :  { %2388 = vmatprep.subr.mxu1 %v5331_v52 }
0x1b40   :  { %2389 = vmatpush1.msra.mxu1 %v5338_v53 }
0x1b41   :  { %2390 = vmatprep.subr.mxu1 %v5345_v54 }
0x1b42   :  { %2391 = vmatpush1.msra.mxu1 %v5352_v56 }
0x1b43   :  { %2392 = vmatprep.subr.mxu1 %v5359_v57 }
0x1b44   :  { %2393 = vmatpush1.msra.mxu1 %v5366_v58 }
0x1b45   :  { %2394 = vmatprep.subr.mxu1 %v5373_v59 }
0x1b46   :  { %2395 = vmatpush1.msra.mxu1 %v5380_v60 }
0x1b47   :  { %4050 = vmatmul.mubr.msk.f32.vlgmr.msra.gmra.mxu1 %vm323_vm10, %v5474_v5  ;;  %4300 = vmatprep.subr.mxu1 %v4627_v2 }
0x1b48   :  { %4302 = vmatprep.mubr.msk.f32.mxu1 %vm4628_vm1, %v4627_v2 }
0x1bf7   :  { %v2321_v21 = vpop.f32.mrf.mxu1 }
0x1bf8   :  { %v5560_v37 = vsub.f32 %v2321_v21, %v5507_v42 }
0x1bf9   :  { %v4280_v38 = vpop.f32.mrf.mxu1 }
0x1bfa   :  { %v2326_v40 = vsel %vm2158_vm0, %v5560_v37, -inf }
0x1bfb   :  { %2327 = vmax.xlane.f32.xlu0 %v2326_v40 }
0x1c07   :  { %v2430_v46 = vpop.f32.mrf.mxu1 }
0x1c09   :  { %v2432_v18 = vpop.f32.mrf.mxu1 }
0x1c84   :  { %v5567_v43 = vpop.xlane.xlu0 %2327 }
0x1c85   :  { %vm2338_vm2 = vcmp.ge.f32.partialorder %v5560_v37, %v5567_v43 }
0x1c86   :  { %v2339_v5 = vsel %vm2338_vm2, %v5565_v41, 8.0 }
0x1c87   :  { %v2340_v44 = vsel %vm2158_vm0, %v2339_v5, inf }
0x1c88   :  { %2341 = vmin.xlane.f32.xlu1 %v2340_v44 }
0x1d11   :  { %v2342_v45 = vpop.xlane.xlu1 %2341 }
0x1d12   :  { %2344 = vst.msk [vmem:[%s5859_s7] sm:$0x1] %vm2343_vm14, %v2342_v45  ;;  %vm2345_vm15 = vcmp.eq.f32.partialorder %v5565_v41, %v2342_v45 }
0x1d13   :  { %v4049_v36 = vsel %vm2345_vm15, 1.0, %v4627_v2 }
0x1d14   :  { %4051 = vmatmul.mubr.msk.f32.vlgmr.msra.gmra.mxu0 %vm225_vm5, %v4049_v36 }
0x1d15   :  { %4282 = vmatpush3.msra.mxu0 %v5403_v4  ;;  %4297 = vmatprep.mubr.msk.f32.mxu0 %vm4628_vm1, %v4627_v2 }
0x1d16   :  { %4283 = vmatprep.subr.mxu0 %v4627_v2 }
0x1d17   :  { %4284 = vmatpush3.msra.mxu0 %v5409_v6 }
0x1d18   :  { %4285 = vmatprep.subr.mxu0 %v4627_v2 }
0x1d19   :  { %4286 = vmatpush3.msra.mxu0 %v5418_v7 }
0x1d1a   :  { %4287 = vmatprep.subr.mxu0 %v4627_v2 }
0x1d1b   :  { %4288 = vmatpush3.msra.mxu0 %v5425_v8 }
0x1d1c   :  { %4289 = vmatprep.subr.mxu0 %v4627_v2 }
0x1d1d   :  { %4290 = vmatpush3.msra.mxu0 %v5435_v10 }
0x1d1e   :  { %4291 = vmatprep.subr.mxu0 %v4627_v2 }
0x1d1f   :  { %4292 = vmatpush3.msra.mxu0 %v5444_v13 }
0x1d20   :  { %4293 = vmatprep.subr.mxu0 %v4627_v2 }
0x1d21   :  { %4294 = vmatpush3.msra.mxu0 %v5451_v14 }
0x1d22   :  { %4295 = vmatprep.subr.mxu0 %v4627_v2 }
0x1d23   :  { %4296 = vmatpush3.msra.mxu0 %v5460_v33 }
0x1d24   :  { %4310 = vmatprep.subr.mxu0 %v4627_v2 }
0x1dd4   :  { %v2504_v16 = vpop.f32.mrf.mxu0 }
0x1dd5   :  { %v2505_v55 = vadd.f32 %v2504_v16, %v2430_v46 }
0x1dd6   :  { %v2506_v19 = vpop.f32.mrf.mxu0 }
0x1dd7   :  { %v2507_v20 = vadd.f32 %v2506_v19, %v2432_v18  ;;  %v4052_v23 = vmul.f32 -1.442695, %v2505_v55 }
0x1dd9   :  { %4506 = vtanh.f32 %v2507_v20  ;;  %v4053_v38 = vmul.f32 -1.442695, %v2507_v20 }
0x1dda   :  { %4508 = vpow2.f32 %v4052_v23 }
0x1de6   :  { %v4507_v22 = vpop.eup %4506 }
0x1de7   :  { %2524 = vrot.lane.b32.xlu0 %v4507_v22, %s4629_s14  ;;  %v4509_v24 = vpop.eup %4508 }
0x1de8   :  { %v2515_v30 = vadd.f32 1.0, %v4509_v24 }
0x1dea   :  { %4510 = vrcp.f32 %v2515_v30 }
0x1df7   :  { %v4511_v61 = vpop.eup %4510 }
0x1df8   :  { %v2521_v12 = vmul.f32 %v4511_v61, %v5470_v25 }
0x1e59   :  { %v2525_v0 = vpop.permute.xlu0 %2524 }
0x1e5a   :  { %v2527_v1 = vmul.f32 %v4511_v61, %v2525_v0 }
0x1e5c   :  { %2529 = vrot.lane.b32.xlu1 %v2527_v1, %s4629_s14 }
0x1ece   :  { %v2530_v31 = vpop.permute.xlu1 %2529 }
0x1ecf   :  { %v5601_v35 = vadd.f32 %v2530_v31, %v2521_v12 }
0x1ed1   :  { %4512 = vtanh.f32 %v5601_v35 }
0x1ed2   :  { %4514 = vpow2.f32 %v4053_v38 }
0x1ede   :  { %v4513_v21 = vpop.eup %4512 }
0x1edf   :  { %2535 = vrot.lane.b32.xlu1 %v4513_v21, %s4629_s14  ;;  %v4515_v40 = vpop.eup %4514 }
0x1ee0   :  { %v2516_v5 = vadd.f32 1.0, %v4515_v40 }
0x1ee2   :  { %4516 = vrcp.f32 %v2516_v5 }
0x1eef   :  { %v4517_v44 = vpop.eup %4516 }
0x1f51   :  { %v2536_v45 = vpop.permute.xlu1 %2535 }
0x1f52   :  { %v2538_v36 = vmul.f32 %v4517_v44, %v2536_v45 }
0x1f54   :  { %4298 = vmatmul.mubr.msk.f32.vlgmr.msra.gmra.mxu0 %vm323_vm10, %v2538_v36 }
0x1f55   :  { %4312 = vmatprep.mubr.msk.f32.mxu0 %vm4628_vm1, %v4627_v2 }
0x2014   :  { %v2616_v25 = vpop.f32.mrf.mxu0 }
0x2015   :  { %v2617_v46 = vadd.f32 %v2616_v25, %v5486_v29 }
0x2016   :  { %v4299_v16 = vpop.f32.mrf.mxu0 }
0x2017   :  { %v2623_v18 = vrot.slane %v2617_v46, %v4836_v34 }
0x2019   :  { %v2624_v19 = vadd.f32 %v2623_v18, %v5271_v50 }
0x201b   :  { %4518 = vtanh.f32 %v2624_v19 }
0x2028   :  { %v4519_v20 = vpop.eup %4518 }
0x2029   :  { %4301 = vmatpush3.xpose.msk.msra.mxu1 %vm323_vm10, %v4519_v20 }
0x202a   :  { %4305 = vmatprep.subr.mxu1 %v4627_v2 }
0x202c   :  { %4303 = vmatmul.mubr.msk.f32.vlgmr.msra.gmra.mxu1 %vm323_vm10, %v5495_v39 }
0x202d   :  { %4306 = vmatpush3.msra.mxu1 %v5397_v62  ;;  %4307 = vmatprep.mubr.msk.f32.mxu1 %vm4628_vm1, %v4627_v2 }
0x202e   :  { %2917 = vmatprep.subr.mxu1 %v5258_v17 }
0x20ec   :  { %v2695_v22 = vpop.f32.mrf.mxu1 }
0x20ed   :  { %v2699_v55 = vsub.f32 %v2695_v22, %v5507_v42 }
0x20ee   :  { %v4304_v23 = vpop.f32.mrf.mxu1 }
0x20ef   :  { %v2700_v24 = vsel %vm2158_vm0, %v2699_v55, -inf }
0x20f0   :  { %2701 = vmax.xlane.f32.xlu0 %v2700_v24 }
0x2179   :  { %v2702_v30 = vpop.xlane.xlu0 %2701 }
0x217a   :  { %v2703_v61 = vsub.f32 %v2699_v55, %v2702_v30 }
0x217c   :  { %v2704_v0 = vmul.f32 1.442695, %v2703_v61 }
0x217e   :  { %4520 = vpow2.f32 %v2704_v0 }
0x218b   :  { %v4521_v1 = vpop.eup %4520 }
0x218c   :  { %v2706_v12 = vsel %vm2158_vm0, %v4521_v1, 0.0 }
0x218d   :  { %2707 = vadd.xlane.f32.xlu1 %v2706_v12 }
0x2216   :  { %v2708_v31 = vpop.xlane.xlu1 %2707 }
0x2217   :  { %4522 = vrcp.f32 %v2708_v31 }
0x2224   :  { %v4523_v21 = vpop.eup %4522 }
0x2225   :  { %v2710_v38 = vmul.f32 %v4523_v21, %v4521_v1 }
0x2227   :  { %4308 = vmatmul.mubr.msk.f32.vlgmr.msra.gmra.mxu1 %vm225_vm5, %v2710_v38 }
0x2228   :  { %2918 = vmatpush1.msra.mxu1 %v5284_v26  ;;  %2965 = vmatprep.mubr.f32.mxu1 %v4627_v2 }
0x2229   :  { %2919 = vmatprep.subr.mxu1 %v5290_v27 }
0x222a   :  { %2920 = vmatpush1.msra.mxu1 %v5297_v47 }
0x222b   :  { %2921 = vmatprep.subr.mxu1 %v5303_v48 }
0x222c   :  { %2922 = vmatpush1.msra.mxu1 %v5310_v49 }
0x222d   :  { %2923 = vmatprep.subr.mxu1 %v5317_v51 }
0x222e   :  { %2924 = vmatpush1.msra.mxu1 %v5324_v15 }
0x222f   :  { %2925 = vmatprep.subr.mxu1 %v5331_v52 }
0x2230   :  { %2926 = vmatpush1.msra.mxu1 %v5338_v53 }
0x2231   :  { %2927 = vmatprep.subr.mxu1 %v5345_v54 }
0x2232   :  { %2928 = vmatpush1.msra.mxu1 %v5352_v56 }
0x2233   :  { %2929 = vmatprep.subr.mxu1 %v5359_v57 }
0x2234   :  { %2930 = vmatpush1.msra.mxu1 %v5366_v58 }
0x2235   :  { %2931 = vmatprep.subr.mxu1 %v5373_v59 }
0x2236   :  { %2932 = vmatpush1.msra.mxu1 %v5380_v60 }
0x2237   :  { %4061 = vmatmul.mubr.msk.f32.vlgmr.msra.gmra.mxu1 %vm323_vm10, %v2538_v36  ;;  %4334 = vmatprep.subr.mxu1 %v4627_v2 }
0x2238   :  { %4336 = vmatprep.mubr.msk.f32.mxu1 %vm4628_vm1, %v4627_v2 }
0x22e7   :  { %v2780_v40 = vpop.f32.mrf.mxu1 }
0x22e8   :  { %v2781_v5 = vadd.f32 %v2780_v40, %v5518_v28 }
0x22e9   :  { %v4309_v44 = vpop.f32.mrf.mxu1 }
0x22ea   :  { %v2787_v45 = vrot.slane %v2781_v5, %v4836_v34 }
0x22ec   :  { %v2788_v25 = vadd.f32 %v2787_v45, %v5525_v3 }
0x22ee   :  { %4524 = vtanh.f32 %v2788_v25 }
0x22f7   :  { %v2967_v30 = vpop.f32.mrf.mxu1 }
0x22f9   :  { %v2969_v0 = vpop.f32.mrf.mxu1 }
0x22fb   :  { %v4525_v46 = vpop.eup %4524 }
0x22fc   :  { %4311 = vmatpush3.xpose.msk.msra.mxu0 %vm323_vm10, %v4525_v46 }
0x22fd   :  { %3005 = vmatprep.subr.mxu0 %v5454_v32 }
0x22ff   :  { %4313 = vmatmul.mubr.msk.f32.vlgmr.msra.gmra.mxu0 %vm323_vm10, %v5533_v11 }
0x2300   :  { %3006 = vmatpush1.msra.mxu0 %v5476_v9  ;;  %3039 = vmatprep.mubr.f32.mxu0 %v4627_v2 }
0x2301   :  { %4315 = vmatprep.subr.mxu0 %v4627_v2 }
0x23bf   :  { %v2859_v36 = vpop.f32.mrf.mxu0 }
0x23c0   :  { %v5654_v16 = vsub.f32 %v2859_v36, %v5507_v42 }
0x23c1   :  { %v4314_v18 = vpop.f32.mrf.mxu0 }
0x23c2   :  { %v2864_v19 = vsel %vm2158_vm0, %v5654_v16, -inf }
0x23c3   :  { %2865 = vmax.xlane.f32.xlu0 %v2864_v19 }
0x244c   :  { %v5658_v20 = vpop.xlane.xlu0 %2865 }
0x244d   :  { %vm2876_vm3 = vcmp.ge.f32.partialorder %v5654_v16, %v5658_v20 }
0x244e   :  { %v2877_v22 = vsel %vm2876_vm3, %v5565_v41, 8.0 }
0x244f   :  { %v2878_v55 = vsel %vm2158_vm0, %v2877_v22, inf }
0x2450   :  { %2879 = vmin.xlane.f32.xlu0 %v2878_v55 }
0x24d9   :  { %v2880_v23 = vpop.xlane.xlu0 %2879 }
0x24da   :  { %2881 = vst.msk [vmem:[%s5859_s7 + $0x1] sm:$0x1] %vm2343_vm14, %v2880_v23  ;;  %vm2882_vm4 = vcmp.eq.f32.partialorder %v5565_v41, %v2880_v23 }
0x24db   :  { %v4060_v24 = vsel %vm2882_vm4, 1.0, %v4627_v2 }
0x24dc   :  { %4062 = vmatmul.mubr.msk.f32.vlgmr.msra.gmra.mxu0 %vm225_vm5, %v4060_v24 }
0x24dd   :  { %4316 = vmatpush3.msra.mxu0 %v5403_v4  ;;  %4331 = vmatprep.mubr.msk.f32.mxu0 %vm4628_vm1, %v4627_v2 }
0x24de   :  { %4317 = vmatprep.subr.mxu0 %v4627_v2 }
0x24df   :  { %4318 = vmatpush3.msra.mxu0 %v5409_v6 }
0x24e0   :  { %4319 = vmatprep.subr.mxu0 %v4627_v2 }
0x24e1   :  { %4320 = vmatpush3.msra.mxu0 %v5418_v7 }
0x24e2   :  { %4321 = vmatprep.subr.mxu0 %v4627_v2 }
0x24e3   :  { %4322 = vmatpush3.msra.mxu0 %v5425_v8 }
0x24e4   :  { %4323 = vmatprep.subr.mxu0 %v4627_v2 }
0x24e5   :  { %4324 = vmatpush3.msra.mxu0 %v5435_v10 }
0x24e6   :  { %4325 = vmatprep.subr.mxu0 %v4627_v2 }
0x24e7   :  { %4326 = vmatpush3.msra.mxu0 %v5444_v13 }
0x24e8   :  { %4327 = vmatprep.subr.mxu0 %v4627_v2 }
0x24e9   :  { %4328 = vmatpush3.msra.mxu0 %v5451_v14 }
0x24ea   :  { %4329 = vmatprep.subr.mxu0 %v4627_v2 }
0x24eb   :  { %4330 = vmatpush3.msra.mxu0 %v5460_v33 }
0x24ec   :  { %4344 = vmatprep.subr.mxu0 %v4627_v2 }
0x259c   :  { %v3041_v61 = vpop.f32.mrf.mxu0 }
0x259d   :  { %v3042_v21 = vadd.f32 %v3041_v61, %v2967_v30 }
0x259e   :  { %v3043_v1 = vpop.f32.mrf.mxu0 }
0x259f   :  { %v3044_v12 = vadd.f32 %v3043_v1, %v2969_v0  ;;  %v4063_v38 = vmul.f32 -1.442695, %v3042_v21 }
0x25a1   :  { %4526 = vtanh.f32 %v3044_v12  ;;  %v4064_v22 = vmul.f32 -1.442695, %v3044_v12 }
0x25a2   :  { %4528 = vpow2.f32 %v4063_v38 }
0x25ae   :  { %v4527_v31 = vpop.eup %4526 }
0x25af   :  { %3061 = vrot.lane.b32.xlu1 %v4527_v31, %s4629_s14  ;;  %v4529_v40 = vpop.eup %4528 }
0x25b0   :  { %v3052_v5 = vadd.f32 1.0, %v4529_v40 }
0x25b2   :  { %4530 = vrcp.f32 %v3052_v5 }
0x25bf   :  { %v4531_v44 = vpop.eup %4530 }
0x25c0   :  { %v3058_v46 = vmul.f32 %v4531_v44, %v5601_v35 }
0x2621   :  { %v3062_v45 = vpop.permute.xlu1 %3061 }
0x2622   :  { %v3064_v25 = vmul.f32 %v4531_v44, %v3062_v45 }
0x2624   :  { %3066 = vrot.lane.b32.xlu0 %v3064_v25, %s4629_s14 }
0x2696   :  { %v3067_v36 = vpop.permute.xlu0 %3066 }
0x2697   :  { %v5692_v18 = vadd.f32 %v3067_v36, %v3058_v46 }
0x2699   :  { %4532 = vtanh.f32 %v5692_v18 }
0x269a   :  { %4534 = vpow2.f32 %v4064_v22 }
0x26a6   :  { %v4533_v19 = vpop.eup %4532 }
0x26a7   :  { %3072 = vrot.lane.b32.xlu1 %v4533_v19, %s4629_s14  ;;  %v4535_v55 = vpop.eup %4534 }
0x26a8   :  { %v3053_v23 = vadd.f32 1.0, %v4535_v55 }
0x26aa   :  { %4536 = vrcp.f32 %v3053_v23 }
0x26b7   :  { %v4537_v24 = vpop.eup %4536 }
0x2719   :  { %v3073_v30 = vpop.permute.xlu1 %3072 }
0x271a   :  { %v3075_v61 = vmul.f32 %v4537_v24, %v3073_v30 }
0x271c   :  { %4332 = vmatmul.mubr.msk.f32.vlgmr.msra.gmra.mxu0 %vm323_vm10, %v3075_v61 }
0x271d   :  { %4346 = vmatprep.mubr.msk.f32.mxu0 %vm4628_vm1, %v4627_v2 }
0x27dc   :  { %v3153_v35 = vpop.f32.mrf.mxu0 }
0x27dd   :  { %v3154_v0 = vadd.f32 %v3153_v35, %v5486_v29 }
0x27de   :  { %v4333_v1 = vpop.f32.mrf.mxu0 }
0x27df   :  { %v3160_v31 = vrot.slane %v3154_v0, %v4836_v34 }
0x27e1   :  { %v3161_v12 = vadd.f32 %v3160_v31, %v5271_v50 }
0x27e3   :  { %4538 = vtanh.f32 %v3161_v12 }
0x27f0   :  { %v4539_v21 = vpop.eup %4538 }
0x27f1   :  { %4335 = vmatpush3.xpose.msk.msra.mxu1 %vm323_vm10, %v4539_v21 }
0x27f2   :  { %4339 = vmatprep.subr.mxu1 %v4627_v2 }
0x27f4   :  { %4337 = vmatmul.mubr.msk.f32.vlgmr.msra.gmra.mxu1 %vm323_vm10, %v5495_v39 }
0x27f5   :  { %4340 = vmatpush3.msra.mxu1 %v5397_v62  ;;  %4341 = vmatprep.mubr.msk.f32.mxu1 %vm4628_vm1, %v4627_v2 }
0x27f6   :  { %3454 = vmatprep.subr.mxu1 %v5258_v17 }
0x28b4   :  { %v3232_v38 = vpop.f32.mrf.mxu1 }
0x28b5   :  { %v3236_v40 = vsub.f32 %v3232_v38, %v5507_v42 }
0x28b6   :  { %v4338_v5 = vpop.f32.mrf.mxu1 }
0x28b7   :  { %v3237_v44 = vsel %vm2158_vm0, %v3236_v40, -inf }
0x28b8   :  { %3238 = vmax.xlane.f32.xlu1 %v3237_v44 }
0x2941   :  { %v3239_v45 = vpop.xlane.xlu1 %3238 }
0x2942   :  { %v3240_v25 = vsub.f32 %v3236_v40, %v3239_v45 }
0x2944   :  { %v3241_v46 = vmul.f32 1.442695, %v3240_v25 }
0x2946   :  { %4540 = vpow2.f32 %v3241_v46 }
0x2953   :  { %v4541_v36 = vpop.eup %4540 }
0x2954   :  { %v3243_v19 = vsel %vm2158_vm0, %v4541_v36, 0.0 }
0x2955   :  { %3244 = vadd.xlane.f32.xlu0 %v3243_v19 }
0x29de   :  { %v3245_v22 = vpop.xlane.xlu0 %3244 }
0x29df   :  { %4542 = vrcp.f32 %v3245_v22 }
0x29ec   :  { %v4543_v55 = vpop.eup %4542 }
0x29ed   :  { %v3247_v23 = vmul.f32 %v4543_v55, %v4541_v36  ;;  %v2867_v55 = vsub.f32 %v5654_v16, %v5658_v20 }
0x29ef   :  { %4342 = vmatmul.mubr.msk.f32.vlgmr.msra.gmra.mxu1 %vm225_vm5, %v3247_v23 }
0x29f0   :  { %3455 = vmatpush1.msra.mxu1 %v5284_v26  ;;  %3502 = vmatprep.mubr.f32.mxu1 %v4627_v2 }
0x29f1   :  { %3456 = vmatprep.subr.mxu1 %v5290_v27 }
0x29f2   :  { %3457 = vmatpush1.msra.mxu1 %v5297_v47 }
0x29f3   :  { %3458 = vmatprep.subr.mxu1 %v5303_v48 }
0x29f4   :  { %3459 = vmatpush1.msra.mxu1 %v5310_v49 }
0x29f5   :  { %3460 = vmatprep.subr.mxu1 %v5317_v51 }
0x29f6   :  { %3461 = vmatpush1.msra.mxu1 %v5324_v15 }
0x29f7   :  { %3462 = vmatprep.subr.mxu1 %v5331_v52 }
0x29f8   :  { %3463 = vmatpush1.msra.mxu1 %v5338_v53 }
0x29f9   :  { %3464 = vmatprep.subr.mxu1 %v5345_v54 }
0x29fa   :  { %3465 = vmatpush1.msra.mxu1 %v5352_v56 }
0x29fb   :  { %3466 = vmatprep.subr.mxu1 %v5359_v57 }
0x29fc   :  { %3467 = vmatpush1.msra.mxu1 %v5366_v58 }
0x29fd   :  { %3468 = vmatprep.subr.mxu1 %v5373_v59 }
0x29fe   :  { %3469 = vmatpush1.msra.mxu1 %v5380_v60 }
0x29ff   :  { %4072 = vmatmul.mubr.msk.f32.vlgmr.msra.gmra.mxu1 %vm323_vm10, %v3075_v61  ;;  %4368 = vmatprep.subr.mxu1 %v4627_v2 }
0x2a00   :  { %4370 = vmatprep.mubr.msk.f32.mxu1 %vm4628_vm1, %v4627_v2 }
0x2aaf   :  { %v3317_v17 = vpop.f32.mrf.mxu1 }
0x2ab0   :  { %v3318_v26 = vadd.f32 %v3317_v17, %v5518_v28 }
0x2ab1   :  { %v4343_v27 = vpop.f32.mrf.mxu1 }
0x2ab2   :  { %v3324_v47 = vrot.slane %v3318_v26, %v4836_v34  ;;  %v2868_v26 = vmul.f32 1.442695, %v2867_v55 }
0x2ab4   :  { %v3325_v48 = vadd.f32 %v3324_v47, %v5525_v3 }
0x2ab6   :  { %4544 = vtanh.f32 %v3325_v48 }
0x2abf   :  { %v3504_v60 = vpop.f32.mrf.mxu1 }
0x2ac3   :  { %v4545_v49 = vpop.eup %4544 }
0x2ac4   :  { %4345 = vmatpush3.xpose.msk.msra.mxu0 %vm323_vm10, %v4545_v49 }
0x2ac5   :  { %3542 = vmatprep.subr.mxu0 %v5454_v32 }
0x2ac7   :  { %4347 = vmatmul.mubr.msk.f32.vlgmr.msra.gmra.mxu0 %vm323_vm10, %v5533_v11 }
0x2ac8   :  { %3543 = vmatpush1.msra.mxu0 %v5476_v9  ;;  %3576 = vmatprep.mubr.f32.mxu0 %v4627_v2 }
0x2ac9   :  { %4349 = vmatprep.subr.mxu0 %v4627_v2 }
0x2b87   :  { %v3396_v51 = vpop.f32.mrf.mxu0 }
0x2b88   :  { %v5745_v15 = vsub.f32 %v3396_v51, %v5507_v42 }
0x2b89   :  { %v4348_v52 = vpop.f32.mrf.mxu0 }
0x2b8a   :  { %v3401_v53 = vsel %vm2158_vm0, %v5745_v15, -inf }
0x2b8b   :  { %3402 = vmax.xlane.f32.xlu0 %v3401_v53 }
0x2c14   :  { %v5749_v54 = vpop.xlane.xlu0 %3402 }
0x2c15   :  { %vm3413_vm6 = vcmp.ge.f32.partialorder %v5745_v15, %v5749_v54 }
0x2c16   :  { %v3414_v56 = vsel %vm3413_vm6, %v5565_v41, 8.0 }
0x2c17   :  { %v3415_v57 = vsel %vm2158_vm0, %v3414_v56, inf }
0x2c18   :  { %3416 = vmin.xlane.f32.xlu1 %v3415_v57 }
0x2ca1   :  { %v3417_v58 = vpop.xlane.xlu1 %3416 }
0x2ca2   :  { %3418 = vst.msk [vmem:[%s5859_s7 + $0x2] sm:$0x1] %vm2343_vm14, %v3417_v58  ;;  %vm3419_vm7 = vcmp.eq.f32.partialorder %v5565_v41, %v3417_v58 }
0x2ca3   :  { %v4071_v59 = vsel %vm3419_vm7, 1.0, %v4627_v2 }
0x2ca4   :  { %4073 = vmatmul.mubr.msk.f32.vlgmr.msra.gmra.mxu0 %vm225_vm5, %v4071_v59 }
0x2ca5   :  { %4350 = vmatpush3.msra.mxu0 %v5403_v4  ;;  %4365 = vmatprep.mubr.msk.f32.mxu0 %vm4628_vm1, %v4627_v2 }
0x2ca6   :  { %4351 = vmatprep.subr.mxu0 %v4627_v2 }
0x2ca7   :  { %4352 = vmatpush3.msra.mxu0 %v5409_v6  ;;  %v3506_v6 = vpop.f32.mrf.mxu1 }
0x2ca8   :  { %4353 = vmatprep.subr.mxu0 %v4627_v2 }
0x2ca9   :  { %4354 = vmatpush3.msra.mxu0 %v5418_v7 }
0x2caa   :  { %4355 = vmatprep.subr.mxu0 %v4627_v2 }
0x2cab   :  { %4356 = vmatpush3.msra.mxu0 %v5425_v8 }
0x2cac   :  { %4357 = vmatprep.subr.mxu0 %v4627_v2 }
0x2cad   :  { %4358 = vmatpush3.msra.mxu0 %v5435_v10 }
0x2cae   :  { %4359 = vmatprep.subr.mxu0 %v4627_v2 }
0x2caf   :  { %4360 = vmatpush3.msra.mxu0 %v5444_v13 }
0x2cb0   :  { %4361 = vmatprep.subr.mxu0 %v4627_v2 }
0x2cb1   :  { %4362 = vmatpush3.msra.mxu0 %v5451_v14 }
0x2cb2   :  { %4363 = vmatprep.subr.mxu0 %v4627_v2 }
0x2cb3   :  { %4364 = vmatpush3.msra.mxu0 %v5460_v33 }
0x2cb4   :  { %4378 = vmatprep.subr.mxu0 %v4627_v2 }
0x2d64   :  { %v3578_v4 = vpop.f32.mrf.mxu0 }
0x2d65   :  { %v3579_v13 = vadd.f32 %v3578_v4, %v3504_v60  ;;  %v2329_v4 = vsub.f32 %v5560_v37, %v5567_v43 }
0x2d66   :  { %v3580_v7 = vpop.f32.mrf.mxu0 }
0x2d67   :  { %v3581_v8 = vadd.f32 %v3580_v7, %v3506_v6  ;;  %v4074_v32 = vmul.f32 -1.442695, %v3579_v13  ;;  %v2330_v6 = vmul.f32 1.442695, %v2329_v4  ;;  %v3404_v7 = vsub.f32 %v5745_v15, %v5749_v54 }
0x2d69   :  { %4546 = vtanh.f32 %v3581_v8  ;;  %v4075_v31 = vmul.f32 -1.442695, %v3581_v8 }
0x2d6a   :  { %4548 = vpow2.f32 %v4074_v32 }
0x2d76   :  { %v4547_v10 = vpop.eup %4546 }
0x2d77   :  { %3598 = vrot.lane.b32.xlu0 %v4547_v10, %s4629_s14  ;;  %v4549_v9 = vpop.eup %4548 }
0x2d78   :  { %v3589_v14 = vadd.f32 1.0, %v4549_v9 }
0x2d7a   :  { %4550 = vrcp.f32 %v3589_v14 }
0x2d87   :  { %v4551_v24 = vpop.eup %4550 }
0x2d88   :  { %v3595_v61 = vmul.f32 %v4551_v24, %v5692_v18 }
0x2de9   :  { %v3599_v30 = vpop.permute.xlu0 %3598 }
0x2dea   :  { %v3601_v33 = vmul.f32 %v4551_v24, %v3599_v30 }
0x2dec   :  { %3603 = vrot.lane.b32.xlu1 %v3601_v33, %s4629_s14 }
0x2e5e   :  { %v3604_v35 = vpop.permute.xlu1 %3603 }
0x2e5f   :  { %v3606_v0 = vadd.f32 %v3604_v35, %v3595_v61 }
0x2e61   :  { %4552 = vtanh.f32 %v3606_v0 }
0x2e62   :  { %4554 = vpow2.f32 %v4075_v31 }
0x2e6e   :  { %v4553_v1 = vpop.eup %4552 }
0x2e6f   :  { %3609 = vrot.lane.b32.xlu1 %v4553_v1, %s4629_s14  ;;  %v4555_v12 = vpop.eup %4554 }
0x2e70   :  { %v3590_v21 = vadd.f32 1.0, %v4555_v12 }
0x2e72   :  { %4556 = vrcp.f32 %v3590_v21 }
0x2e7f   :  { %v4557_v38 = vpop.eup %4556 }
0x2ee1   :  { %v3610_v40 = vpop.permute.xlu1 %3609 }
0x2ee2   :  { %v3612_v5 = vmul.f32 %v4557_v38, %v3610_v40 }
0x2ee4   :  { %4366 = vmatmul.mubr.msk.f32.vlgmr.msra.gmra.mxu0 %vm323_vm10, %v3612_v5 }
0x2ee5   :  { %4380 = vmatprep.mubr.msk.f32.mxu0 %vm4628_vm1, %v4627_v2 }
0x2fa4   :  { %v3690_v18 = vpop.f32.mrf.mxu0 }
0x2fa5   :  { %v3691_v44 = vadd.f32 %v3690_v18, %v5486_v29 }
0x2fa6   :  { %v4367_v45 = vpop.f32.mrf.mxu0 }
0x2fa7   :  { %v3697_v25 = vrot.slane %v3691_v44, %v4836_v34 }
0x2fa9   :  { %v3698_v46 = vadd.f32 %v3697_v25, %v5271_v50 }
0x2fab   :  { %4558 = vtanh.f32 %v3698_v46 }
0x2fb8   :  { %v4559_v36 = vpop.eup %4558 }
0x2fb9   :  { %4369 = vmatpush3.xpose.msk.msra.mxu1 %vm323_vm10, %v4559_v36 }
0x2fba   :  { %4373 = vmatprep.subr.mxu1 %v4627_v2 }
0x2fbc   :  { %4371 = vmatmul.mubr.msk.f32.vlgmr.msra.gmra.mxu1 %vm323_vm10, %v5495_v39 }
0x2fbd   :  { %4374 = vmatpush3.msra.mxu1 %v5397_v62  ;;  %4375 = vmatprep.mubr.msk.f32.mxu1 %vm4628_vm1, %v4627_v2 }
0x307c   :  { %v3769_v29 = vpop.f32.mrf.mxu1 }
0x307d   :  { %v3773_v19 = vsub.f32 %v3769_v29, %v5507_v42 }
0x307e   :  { %v4372_v22 = vpop.f32.mrf.mxu1 }
0x307f   :  { %v3774_v50 = vsel %vm2158_vm0, %v3773_v19, -inf }
0x3080   :  { %3775 = vmax.xlane.f32.xlu0 %v3774_v50 }
0x3109   :  { %v3776_v23 = vpop.xlane.xlu0 %3775 }
0x310a   :  { %v3777_v17 = vsub.f32 %v3773_v19, %v3776_v23 }
0x310c   :  { %v3778_v27 = vmul.f32 1.442695, %v3777_v17 }
0x310e   :  { %4560 = vpow2.f32 %v3778_v27 }
0x310f   :  { %4562 = vpow2.f32 %v2868_v26 }
0x311b   :  { %v4561_v62 = vpop.eup %4560 }
0x311c   :  { %v3780_v39 = vsel %vm2158_vm0, %v4561_v62, 0.0  ;;  %v4563_v2 = vpop.eup %4562 }
0x311d   :  { %3781 = vadd.xlane.f32.xlu1 %v3780_v39  ;;  %v2870_v47 = vsel %vm2158_vm0, %v4563_v2, 0.0 }
0x3121   :  { %2871 = vadd.xlane.f32.xlu1 %v2870_v47 }
0x31a6   :  { %v3782_v48 = vpop.xlane.xlu1 %3781 }
0x31a7   :  { %4564 = vrcp.f32 %v3782_v48 }
0x31aa   :  { %v2872_v49 = vpop.xlane.xlu1 %2871 }
0x31ab   :  { %4566 = vrcp.f32 %v2872_v49 }
0x31b4   :  { %v4565_v51 = vpop.eup %4564 }
0x31b5   :  { %v3784_v16 = vmul.f32 %v4565_v51, %v4561_v62 }
0x31b7   :  { %4376 = vmatmul.mubr.msk.f32.vlgmr.msra.gmra.mxu1 %vm225_vm5, %v3784_v16 }
0x31b8   :  { %v4567_v20 = vpop.eup %4566 }
0x31b9   :  { %v2874_v52 = vmul.f32 %v4567_v20, %v4563_v2 }
0x31bb   :  { %2875 = vst.msk [vmem:[%s5858_s6 + $0x1] sm:$0x1] %vm2158_vm0, %v2874_v52 }
0x3277   :  { %v3854_v53 = vpop.f32.mrf.mxu1 }
0x3278   :  { %v3855_v56 = vadd.f32 %v3854_v53, %v5518_v28  ;;  %v3405_v28 = vmul.f32 1.442695, %v3404_v7 }
0x3279   :  { %v4377_v57 = vpop.f32.mrf.mxu1 }
0x327a   :  { %v3861_v58 = vrot.slane %v3855_v56, %v4836_v34 }
0x327c   :  { %v3862_v59 = vadd.f32 %v3861_v58, %v5525_v3 }
0x327e   :  { %4568 = vtanh.f32 %v3862_v59 }
0x327f   :  { %4570 = vpow2.f32 %v2330_v6 }
0x3280   :  { %4572 = vpow2.f32 %v3405_v28 }
0x328b   :  { %v4569_v60 = vpop.eup %4568 }
0x328c   :  { %4379 = vmatpush3.xpose.msk.msra.mxu0 %vm323_vm10, %v4569_v60  ;;  %v4571_v13 = vpop.eup %4570 }
0x328d   :  { %v4573_v32 = vpop.eup %4572 }
0x328e   :  { %v3407_v37 = vsel %vm2158_vm0, %v4573_v32, 0.0 }
0x328f   :  { %4381 = vmatmul.mubr.msk.f32.vlgmr.msra.gmra.mxu0 %vm323_vm10, %v5533_v11  ;;  %v2332_v11 = vsel %vm2158_vm0, %v4571_v13, 0.0 }
0x334f   :  { %v3933_v34 = vpop.f32.mrf.mxu0 }
0x3350   :  { %v3937_v3 = vsub.f32 %v3933_v34, %v5507_v42 }
0x3351   :  { %v4382_v8 = vpop.f32.mrf.mxu0 }
0x3352   :  { %v3938_v10 = vsel %vm2158_vm0, %v3937_v3, -inf }
0x3353   :  { %3939 = vmax.xlane.f32.xlu0 %v3938_v10 }
0x3357   :  { %2333 = vadd.xlane.f32.xlu0 %v2332_v11 }
0x335b   :  { %3408 = vadd.xlane.f32.xlu0 %v3407_v37 }
0x33dc   :  { %v3940_v43 = vpop.xlane.xlu0 %3939 }
0x33dd   :  { %v3941_v15 = vsub.f32 %v3937_v3, %v3940_v43  ;;  %vm3950_vm1 = vcmp.ge.f32.partialorder %v3937_v3, %v3940_v43 }
0x33de   :  { %v3951_v54 = vsel %vm3950_vm1, %v5565_v41, 8.0 }
0x33df   :  { %v3942_v9 = vmul.f32 1.442695, %v3941_v15  ;;  %v3952_v42 = vsel %vm2158_vm0, %v3951_v54, inf }
0x33e0   :  { %3953 = vmin.xlane.f32.xlu0 %v3952_v42  ;;  %v2334_v14 = vpop.xlane.xlu0 %2333 }
0x33e1   :  { %4574 = vpow2.f32 %v3942_v9 }
0x33e2   :  { %4576 = vrcp.f32 %v2334_v14 }
0x33e4   :  { %v3409_v24 = vpop.xlane.xlu0 %3408 }
0x33e5   :  { %4578 = vrcp.f32 %v3409_v24 }
0x33ee   :  { %v4575_v30 = vpop.eup %4574 }
0x33ef   :  { %v4577_v33 = vpop.eup %4576  ;;  %v3944_v61 = vsel %vm2158_vm0, %v4575_v30, 0.0 }
0x33f0   :  { %v2336_v35 = vmul.f32 %v4577_v33, %v4571_v13  ;;  %3945 = vadd.xlane.f32.xlu1 %v3944_v61 }
0x33f2   :  { %v4579_v0 = vpop.eup %4578  ;;  %2337 = vst.msk [vmem:[%s5858_s6] sm:$0x1] %vm2158_vm0, %v2336_v35 }
0x33f3   :  { %v3411_v41 = vmul.f32 %v4579_v0, %v4573_v32 }
0x33f5   :  { %3412 = vst.msk [vmem:[%s5858_s6 + $0x2] sm:$0x1] %vm2158_vm0, %v3411_v41 }
0x3401   :  { %1275 = vrot.lane.b32.xlu1 %v5099_v63, %s4631_s24 }
0x3402   :  { %4594 = shalt.err (!%p4591_p4)
}
0x3403   :  { %3969 = dma.vmem_to_hbm [thread:$0]  %s3967_s4, 128, %s5860_s8, [#allocation3]  }
0x3404   :  { %s4603_s1 = scalar_lea.vmem %s3981_s27, 128  ;;  %p4608_p6 = scmp.lt.s32.totalorder %s3981_s27, %s3981_s27 }
0x3405   :  { %p4604_p5 = scmp.ne.s32.totalorder %s3981_s27, %s4603_s1  ;;  %p4609_p7 = scmp.lt.s32.totalorder %s4603_s1, %s4603_s1 }
0x3407   :  { %p4610_p8 = por %p4609_p7, %p4608_p6 }
0x3409   :  { %p4611_p9 = pnand %p4610_p8, %p4604_p5 }
0x340b   :  { %4614 = shalt.err (!%p4611_p9)
}
0x340c   :  { %3983 = dma.vmem_to_hbm [thread:$0]  %s3981_s27, 128, %s5863_s11, [#allocation5]  }
0x3469   :  { %v3954_v63 = vpop.xlane.xlu0 %3953 }
0x346a   :  { %3955 = vst.msk [vmem:[%s5859_s7 + $0x3] sm:$0x1] %vm2343_vm14, %v3954_v63 }
0x3479   :  { %v3946_v1 = vpop.xlane.xlu1 %3945 }
0x347a   :  { %4580 = vrcp.f32 %v3946_v1 }
0x347d   :  { %v1276_v31 = vpop.permute.xlu1 %1275 }
0x347e   :  { %1278 = vst.msk [vmem:[%s5862_s10 - $0x7] sm:$0x80] %vm1269_vm12, %v1276_v31 }
0x3487   :  { %v4581_v12 = vpop.eup %4580 }
0x3488   :  { %v3948_v21 = vmul.f32 %v4581_v12, %v4575_v30 }
0x348a   :  { %3949 = vst.msk [vmem:[%s5858_s6 + $0x3] sm:$0x1] %vm2158_vm0, %v3948_v21 }
0x348b   :  { %4623 = dma.done.wait [#allocation3], 128  }
0x348c   :  { %4624 = vsyncadd [#allocation3], 4294967168 }
0x348d   :  { %4625 = dma.done.wait [#allocation5], 128  }
0x348e   :  { %4626 = vsyncadd [#allocation5], 4294967168 }
0x348f   :  { %3998 = vsyncpa [#allocation3], 1 }
0x3490   :  { %3999 = vsyncpa [#allocation5], 1 }

</bundles_post_ra>
